<compile_context>
chip_gen: v5e
topology: v5e:2x2
jax: 0.10.0
libtpu: 0.0.40
codegen_flags: <defaults>
</compile_context>

<pallas_src>
import jax
import jax.numpy as jnp
from jax import lax
from jax.experimental import pallas as pl
from jax.experimental.pallas import tpu as pltpu


# ---------------------------------------------------------------------------
# Fused conv(5x5, stride 1, pad 2) + bias + 2x2 max-pool kernel
# ---------------------------------------------------------------------------
def _conv_bias_pool_kernel(w_ref, b_ref, p_ref, o_ref):
    # w_ref: (Cout, Kp) bf16 (resident), b_ref: (Cout, 1) f32 (resident),
    # p_ref: (4, Kp, TM) bf16 (M-tiled), o_ref: (Cout, TM) f32.
    w = w_ref[...]
    t0 = jnp.dot(w, p_ref[0], preferred_element_type=jnp.float32)
    t1 = jnp.dot(w, p_ref[1], preferred_element_type=jnp.float32)
    t2 = jnp.dot(w, p_ref[2], preferred_element_type=jnp.float32)
    t3 = jnp.dot(w, p_ref[3], preferred_element_type=jnp.float32)
    m = jnp.maximum(jnp.maximum(t0, t1), jnp.maximum(t2, t3))
    # Bias is constant over the 2x2 window -> add once after the max.
    o_ref[...] = (m + b_ref[...]).astype(o_ref.dtype)


def _pick_tile(m):
    for t in (512, 256, 128):
        if m % t == 0:
            return t
    return m  # tiny fallback; block == full dim is always a legal BlockSpec


def conv5x5_pool(x_nhwc, w_kp, b_col):
    """x_nhwc: (N, H, W, Cin) f32; w_kp: (Cout, Kp) bf16 pre-packed (ky,kx,cin)
    order with zero-padded K; b_col: (Cout, 1) f32.
    Returns pooled activation (N, H//2, W//2, Cout) f32."""
    N, H, W, cin = x_nhwc.shape
    cout, kp = w_kp.shape
    H2, W2 = H // 2, W // 2
    M4 = N * H2 * W2
    K = 25 * cin

    # im2col glue (plain JAX): 25 shifted views regrouped as
    # (tap = 2x2 pool offset, K = (ky, kx, cin), M = (n, h2, w2)).
    xp = jnp.pad(x_nhwc, ((0, 0), (2, 2), (2, 2), (0, 0))).astype(jnp.bfloat16)
    taps = [xp[:, ky:ky + H, kx:kx + W, :] for ky in range(5) for kx in range(5)]
    p = jnp.stack(taps, axis=0)                            # (25, N, H, W, Cin)
    p = p.reshape(25, N, H2, 2, W2, 2, cin)
    p = jnp.transpose(p, (3, 5, 0, 6, 1, 2, 4))            # (2,2,25,Cin,N,H2,W2)
    p = p.reshape(4, K, M4)
    if kp != K:
        p = jnp.pad(p, ((0, 0), (0, kp - K), (0, 0)))      # zero-pad contraction
    # TODO(synk): build patches per M-tile inside the kernel (manual DMA of a
    # padded row band) to avoid the 25x im2col HBM inflation at large batch.

    tm = _pick_tile(M4)
    out = pl.pallas_call(
        _conv_bias_pool_kernel,
        out_shape=jax.ShapeDtypeStruct((cout, M4), jnp.float32),
        grid=(M4 // tm,),
        in_specs=[
            pl.BlockSpec((cout, kp), lambda i: (0, 0)),      # weights resident
            pl.BlockSpec((cout, 1), lambda i: (0, 0)),       # bias resident
            pl.BlockSpec((4, kp, tm), lambda i: (0, 0, i)),  # patches, M-tiled
        ],
        out_specs=pl.BlockSpec((cout, tm), lambda i: (0, i)),
        compiler_params=pltpu.CompilerParams(
            dimension_semantics=("parallel",)),
    )(w_kp, b_col, p)
    # (Cout, N*H2*W2) -> NHWC for the next stage
    return jnp.transpose(out.reshape(cout, N, H2, W2), (1, 2, 3, 0))


# ---------------------------------------------------------------------------
# Fused fc1 + fc2 kernel
# ---------------------------------------------------------------------------
def _fc2_kernel(x_ref, w1_ref, b1_ref, w2_ref, b2_ref, o_ref):
    h = jnp.dot(x_ref[...], w1_ref[...], preferred_element_type=jnp.float32)
    h = h + b1_ref[...]
    o = jnp.dot(h.astype(w2_ref.dtype), w2_ref[...],
                preferred_element_type=jnp.float32)
    o_ref[...] = o + b2_ref[...]


def fused_fc(x, w1, b1, w2, b2):
    """x: (N, 1024) bf16; w1: (1024, 64) bf16; w2: (64, 10) bf16."""
    N, K = x.shape
    Hd = w1.shape[1]
    Od = w2.shape[1]
    tn = N
    for t in (256, 128, 8):
        if N % t == 0:
            tn = t
            break
    return pl.pallas_call(
        _fc2_kernel,
        out_shape=jax.ShapeDtypeStruct((N, Od), jnp.float32),
        grid=(N // tn,),
        in_specs=[
            pl.BlockSpec((tn, K), lambda i: (i, 0)),
            pl.BlockSpec((K, Hd), lambda i: (0, 0)),
            pl.BlockSpec((1, Hd), lambda i: (0, 0)),
            pl.BlockSpec((Hd, Od), lambda i: (0, 0)),
            pl.BlockSpec((1, Od), lambda i: (0, 0)),
        ],
        out_specs=pl.BlockSpec((tn, Od), lambda i: (i, 0)),
        compiler_params=pltpu.CompilerParams(
            dimension_semantics=("parallel",)),
    )(x, w1, b1, w2, b2)


# ---------------------------------------------------------------------------
# Parameters (PyTorch layout) + one-time repacking for the kernels
# ---------------------------------------------------------------------------
def init_params(key):
    ks = jax.random.split(key, 10)
    s = 0.05
    return {
        "c1_w": jax.random.normal(ks[0], (32, 3, 5, 5), jnp.float32) * s,
        "c1_b": jax.random.normal(ks[1], (32,), jnp.float32) * s,
        "c2_w": jax.random.normal(ks[2], (32, 32, 5, 5), jnp.float32) * s,
        "c2_b": jax.random.normal(ks[3], (32,), jnp.float32) * s,
        "c3_w": jax.random.normal(ks[4], (64, 32, 5, 5), jnp.float32) * s,
        "c3_b": jax.random.normal(ks[5], (64,), jnp.float32) * s,
        "fc1_w": jax.random.normal(ks[6], (64, 64 * 4 * 4), jnp.float32) * s,
        "fc1_b": jax.random.normal(ks[7], (64,), jnp.float32) * s,
        "fc2_w": jax.random.normal(ks[8], (10, 64), jnp.float32) * s,
        "fc2_b": jax.random.normal(ks[9], (10,), jnp.float32) * s,
    }


def _round_up(x, m):
    return (x + m - 1) // m * m


def _pack_conv_w(w_oihw, kp):
    cout, cin = w_oihw.shape[0], w_oihw.shape[1]
    w = jnp.transpose(w_oihw, (0, 2, 3, 1)).reshape(cout, 25 * cin)  # (ky,kx,cin)
    if kp != 25 * cin:
        w = jnp.pad(w, ((0, 0), (0, kp - 25 * cin)))
    return w.astype(jnp.bfloat16)


def prepare_params(params):
    """One-time (offline) repacking: conv weights -> zero-padded (Cout, Kp)
    bf16 matrices; FC weights pre-transposed to (in, out) bf16, with fc1
    columns permuted to NHWC-flatten order (kills the runtime transpose)."""
    kp1 = _round_up(25 * 3, 128)    # 75  -> 128
    kp2 = _round_up(25 * 32, 128)   # 800 -> 896
    # fc1: PyTorch columns are (c, h, w); re-order to (h, w, c) for NHWC flatten.
    w1 = params["fc1_w"].reshape(64, 64, 4, 4)
    w1 = jnp.transpose(w1, (0, 2, 3, 1)).reshape(64, 64 * 4 * 4)
    return {
        "c1_w": _pack_conv_w(params["c1_w"], kp1),
        "c1_b": params["c1_b"].reshape(32, 1),
        "c2_w": _pack_conv_w(params["c2_w"], kp2),
        "c2_b": params["c2_b"].reshape(32, 1),
        "c3_w": _pack_conv_w(params["c3_w"], kp2),
        "c3_b": params["c3_b"].reshape(64, 1),
        "fc1_w": w1.T.astype(jnp.bfloat16),            # (1024, 64)
        "fc1_b": params["fc1_b"].reshape(1, 64),
        "fc2_w": params["fc2_w"].T.astype(jnp.bfloat16),  # (64, 10)
        "fc2_b": params["fc2_b"].reshape(1, 10),
    }


def model_forward(prepped, x_nchw):
    """x_nchw: (N, 3, 32, 32) f32 -> logits (N, 10) f32."""
    x = jnp.transpose(x_nchw, (0, 2, 3, 1))                 # NCHW -> NHWC
    x = conv5x5_pool(x, prepped["c1_w"], prepped["c1_b"])   # (N, 16, 16, 32)
    x = conv5x5_pool(x, prepped["c2_w"], prepped["c2_b"])   # (N,  8,  8, 32)
    x = conv5x5_pool(x, prepped["c3_w"], prepped["c3_b"])   # (N,  4,  4, 64)
    N = x.shape[0]
    xf = x.reshape(N, 4 * 4 * 64).astype(jnp.bfloat16)      # NHWC flatten (w1 pre-permuted)
    return fused_fc(xf, prepped["fc1_w"], prepped["fc1_b"],
                    prepped["fc2_w"], prepped["fc2_b"])


# ---------------------------------------------------------------------------
# Plain-JAX reference (same bf16 cast points) for a correctness sanity check
# ---------------------------------------------------------------------------
def reference_forward(params, x_nchw):
    x = jnp.transpose(x_nchw, (0, 2, 3, 1))

    def conv(x, w, b):
        y = lax.conv_general_dilated(
            x.astype(jnp.bfloat16),
            jnp.transpose(w, (2, 3, 1, 0)).astype(jnp.bfloat16),
            window_strides=(1, 1), padding=((2, 2), (2, 2)),
            dimension_numbers=("NHWC", "HWIO", "NHWC"),
            preferred_element_type=jnp.float32)
        return y + b.reshape(1, 1, 1, -1)

    def pool(x):
        n, h, w, c = x.shape
        return jnp.max(x.reshape(n, h // 2, 2, w // 2, 2, c), axis=(2, 4))

    x = pool(conv(x, params["c1_w"], params["c1_b"]))
    x = pool(conv(x, params["c2_w"], params["c2_b"]))
    x = pool(conv(x, params["c3_w"], params["c3_b"]))
    n = x.shape[0]
    xf = jnp.transpose(x, (0, 3, 1, 2)).reshape(n, -1).astype(jnp.bfloat16)
    h = jnp.dot(xf, params["fc1_w"].T.astype(jnp.bfloat16),
                preferred_element_type=jnp.float32) + params["fc1_b"]
    return jnp.dot(h.astype(jnp.bfloat16), params["fc2_w"].T.astype(jnp.bfloat16),
                   preferred_element_type=jnp.float32) + params["fc2_b"]


if __name__ == "__main__":
    key = jax.random.PRNGKey(0)
    kx, kp = jax.random.split(key)
    params = init_params(kp)
    prepped = prepare_params(params)

    # CIFAR10-shaped input: (batch=2, 3, 32, 32) so Flatten yields 64*4*4.
    x = jax.random.normal(kx, (2, 3, 32, 32), jnp.float32)

    out = jax.jit(model_forward)(prepped, x)
    out = jax.block_until_ready(out)
    assert out.shape == (2, 10) and out.dtype == jnp.float32

    ref = jax.block_until_ready(jax.jit(reference_forward)(params, x))
    err = float(jnp.max(jnp.abs(out - ref)))
    assert err < 5e-2, f"numerical mismatch vs reference: max abs err {err}"

    print("KERNEL_OK")
</pallas_src>

<mosaic_0001>
module attributes {stable_mosaic.version = 11 : i64} {
  func.func @_conv_bias_pool_kernel(%arg0: i32, %arg1: memref<32x128xbf16, #tpu.memory_space<vmem>>, %arg2: memref<32x1xf32, #tpu.memory_space<vmem>>, %arg3: memref<4x128x512xbf16, #tpu.memory_space<vmem>>, %arg4: memref<32x512xf32, #tpu.memory_space<vmem>>) attributes {dimension_semantics = [#tpu.dimension_semantics<parallel>], iteration_bounds = array<i64: 1>, scalar_prefetch = 0 : i64, scratch_operands = 0 : i64, tpu.core_type = #tpu.core_type<tc>, window_params = [{pipeline_mode = #tpu.pipeline_mode<synchronous>, transform_indices = @transform_0, window_bounds = array<i64: 32, 128>}, {pipeline_mode = #tpu.pipeline_mode<synchronous>, transform_indices = @transform_1, window_bounds = array<i64: 32, 1>}, {transform_indices = @transform_2, window_bounds = array<i64: 4, 128, 512>}, {transform_indices = @transform_3, window_bounds = array<i64: 32, 512>}]} {
    %c0 = arith.constant 0 : index
    %c0_0 = arith.constant 0 : index
    %0 = vector.load %arg1[%c0, %c0_0] : memref<32x128xbf16, #tpu.memory_space<vmem>>, vector<32x128xbf16>
    %c0_1 = arith.constant 0 : index
    %c0_2 = arith.constant 0 : index
    %c0_3 = arith.constant 0 : index
    %1 = vector.load %arg3[%c0_1, %c0_2, %c0_3] : memref<4x128x512xbf16, #tpu.memory_space<vmem>>, vector<1x128x512xbf16>
    %2 = vector.shape_cast %1 : vector<1x128x512xbf16> to vector<128x512xbf16>
    %cst = arith.constant dense<0.000000e+00> : vector<32x512xf32>
    %3 = tpu.matmul %0, %2, %cst {dimension_numbers = #tpu.dot_dimension_numbers<[1], [0], [0], [1], [0, 0, 1, 1], [], []>} : vector<32x128xbf16>, vector<128x512xbf16>, vector<32x512xf32> -> vector<32x512xf32>
    %c1 = arith.constant 1 : index
    %c0_4 = arith.constant 0 : index
    %c0_5 = arith.constant 0 : index
    %4 = vector.load %arg3[%c1, %c0_4, %c0_5] : memref<4x128x512xbf16, #tpu.memory_space<vmem>>, vector<1x128x512xbf16>
    %5 = vector.shape_cast %4 : vector<1x128x512xbf16> to vector<128x512xbf16>
    %cst_6 = arith.constant dense<0.000000e+00> : vector<32x512xf32>
    %6 = tpu.matmul %0, %5, %cst_6 {dimension_numbers = #tpu.dot_dimension_numbers<[1], [0], [0], [1], [0, 0, 1, 1], [], []>} : vector<32x128xbf16>, vector<128x512xbf16>, vector<32x512xf32> -> vector<32x512xf32>
    %c2 = arith.constant 2 : index
    %c0_7 = arith.constant 0 : index
    %c0_8 = arith.constant 0 : index
    %7 = vector.load %arg3[%c2, %c0_7, %c0_8] : memref<4x128x512xbf16, #tpu.memory_space<vmem>>, vector<1x128x512xbf16>
    %8 = vector.shape_cast %7 : vector<1x128x512xbf16> to vector<128x512xbf16>
    %cst_9 = arith.constant dense<0.000000e+00> : vector<32x512xf32>
    %9 = tpu.matmul %0, %8, %cst_9 {dimension_numbers = #tpu.dot_dimension_numbers<[1], [0], [0], [1], [0, 0, 1, 1], [], []>} : vector<32x128xbf16>, vector<128x512xbf16>, vector<32x512xf32> -> vector<32x512xf32>
    %c3 = arith.constant 3 : index
    %c0_10 = arith.constant 0 : index
    %c0_11 = arith.constant 0 : index
    %10 = vector.load %arg3[%c3, %c0_10, %c0_11] : memref<4x128x512xbf16, #tpu.memory_space<vmem>>, vector<1x128x512xbf16>
    %11 = vector.shape_cast %10 : vector<1x128x512xbf16> to vector<128x512xbf16>
    %cst_12 = arith.constant dense<0.000000e+00> : vector<32x512xf32>
    %12 = tpu.matmul %0, %11, %cst_12 {dimension_numbers = #tpu.dot_dimension_numbers<[1], [0], [0], [1], [0, 0, 1, 1], [], []>} : vector<32x128xbf16>, vector<128x512xbf16>, vector<32x512xf32> -> vector<32x512xf32>
    %13 = arith.maximumf %3, %6 : vector<32x512xf32>
    %14 = arith.maximumf %9, %12 : vector<32x512xf32>
    %15 = arith.maximumf %13, %14 : vector<32x512xf32>
    %c0_13 = arith.constant 0 : index
    %c0_14 = arith.constant 0 : index
    %16 = vector.load %arg2[%c0_13, %c0_14] : memref<32x1xf32, #tpu.memory_space<vmem>>, vector<32x1xf32>
    %17 = vector.broadcast %16 : vector<32x1xf32> to vector<32x512xf32>
    %18 = arith.addf %15, %17 : vector<32x512xf32>
    %c0_15 = arith.constant 0 : index
    %c0_16 = arith.constant 0 : index
    %19 = vector.load %arg4[%c0_15, %c0_16] : memref<32x512xf32, #tpu.memory_space<vmem>>, vector<32x512xf32>
    tpu.vector_store %arg4[%c0_15, %c0_16], %18 {strides = array<i32>} : memref<32x512xf32, #tpu.memory_space<vmem>>, vector<32x512xf32>,
    return
  }
  func.func @transform_0(%arg0: i32) -> (i32, i32) {
    %c0_i32 = arith.constant 0 : i32
    %c0_i32_0 = arith.constant 0 : i32
    %c0_i32_1 = arith.constant 0 : i32
    return %c0_i32, %c0_i32_0 : i32, i32
  }
  func.func @transform_1(%arg0: i32) -> (i32, i32) {
    %c0_i32 = arith.constant 0 : i32
    %c0_i32_0 = arith.constant 0 : i32
    %c0_i32_1 = arith.constant 0 : i32
    return %c0_i32, %c0_i32_0 : i32, i32
  }
  func.func @transform_2(%arg0: i32) -> (i32, i32, i32) {
    %c0_i32 = arith.constant 0 : i32
    %c0_i32_0 = arith.constant 0 : i32
    %c0_i32_1 = arith.constant 0 : i32
    return %c0_i32, %c0_i32_0, %arg0 : i32, i32, i32
  }
  func.func @transform_3(%arg0: i32) -> (i32, i32) {
    %c0_i32 = arith.constant 0 : i32
    %c0_i32_0 = arith.constant 0 : i32
    return %c0_i32, %arg0 : i32, i32
  }
}

module attributes {stable_mosaic.version = 11 : i64} {
  func.func @_conv_bias_pool_kernel(%arg0: i32, %arg1: memref<32x896xbf16, #tpu.memory_space<vmem>>, %arg2: memref<32x1xf32, #tpu.memory_space<vmem>>, %arg3: memref<4x896x128xbf16, #tpu.memory_space<vmem>>, %arg4: memref<32x128xf32, #tpu.memory_space<vmem>>) attributes {dimension_semantics = [#tpu.dimension_semantics<parallel>], iteration_bounds = array<i64: 1>, scalar_prefetch = 0 : i64, scratch_operands = 0 : i64, tpu.core_type = #tpu.core_type<tc>, window_params = [{pipeline_mode = #tpu.pipeline_mode<synchronous>, transform_indices = @transform_0, window_bounds = array<i64: 32, 896>}, {pipeline_mode = #tpu.pipeline_mode<synchronous>, transform_indices = @transform_1, window_bounds = array<i64: 32, 1>}, {transform_indices = @transform_2, window_bounds = array<i64: 4, 896, 128>}, {transform_indices = @transform_3, window_bounds = array<i64: 32, 128>}]} {
    %c0 = arith.constant 0 : index
    %c0_0 = arith.constant 0 : index
    %0 = vector.load %arg1[%c0, %c0_0] : memref<32x896xbf16, #tpu.memory_space<vmem>>, vector<32x896xbf16>
    %c0_1 = arith.constant 0 : index
    %c0_2 = arith.constant 0 : index
    %c0_3 = arith.constant 0 : index
    %1 = vector.load %arg3[%c0_1, %c0_2, %c0_3] : memref<4x896x128xbf16, #tpu.memory_space<vmem>>, vector<1x896x128xbf16>
    %2 = vector.shape_cast %1 : vector<1x896x128xbf16> to vector<896x128xbf16>
    %cst = arith.constant dense<0.000000e+00> : vector<32x128xf32>
    %3 = tpu.matmul %0, %2, %cst {dimension_numbers = #tpu.dot_dimension_numbers<[1], [0], [0], [1], [0, 0, 1, 1], [], []>} : vector<32x896xbf16>, vector<896x128xbf16>, vector<32x128xf32> -> vector<32x128xf32>
    %c1 = arith.constant 1 : index
    %c0_4 = arith.constant 0 : index
    %c0_5 = arith.constant 0 : index
    %4 = vector.load %arg3[%c1, %c0_4, %c0_5] : memref<4x896x128xbf16, #tpu.memory_space<vmem>>, vector<1x896x128xbf16>
    %5 = vector.shape_cast %4 : vector<1x896x128xbf16> to vector<896x128xbf16>
    %cst_6 = arith.constant dense<0.000000e+00> : vector<32x128xf32>
    %6 = tpu.matmul %0, %5, %cst_6 {dimension_numbers = #tpu.dot_dimension_numbers<[1], [0], [0], [1], [0, 0, 1, 1], [], []>} : vector<32x896xbf16>, vector<896x128xbf16>, vector<32x128xf32> -> vector<32x128xf32>
    %c2 = arith.constant 2 : index
    %c0_7 = arith.constant 0 : index
    %c0_8 = arith.constant 0 : index
    %7 = vector.load %arg3[%c2, %c0_7, %c0_8] : memref<4x896x128xbf16, #tpu.memory_space<vmem>>, vector<1x896x128xbf16>
    %8 = vector.shape_cast %7 : vector<1x896x128xbf16> to vector<896x128xbf16>
    %cst_9 = arith.constant dense<0.000000e+00> : vector<32x128xf32>
    %9 = tpu.matmul %0, %8, %cst_9 {dimension_numbers = #tpu.dot_dimension_numbers<[1], [0], [0], [1], [0, 0, 1, 1], [], []>} : vector<32x896xbf16>, vector<896x128xbf16>, vector<32x128xf32> -> vector<32x128xf32>
    %c3 = arith.constant 3 : index
    %c0_10 = arith.constant 0 : index
    %c0_11 = arith.constant 0 : index
    %10 = vector.load %arg3[%c3, %c0_10, %c0_11] : memref<4x896x128xbf16, #tpu.memory_space<vmem>>, vector<1x896x128xbf16>
    %11 = vector.shape_cast %10 : vector<1x896x128xbf16> to vector<896x128xbf16>
    %cst_12 = arith.constant dense<0.000000e+00> : vector<32x128xf32>
    %12 = tpu.matmul %0, %11, %cst_12 {dimension_numbers = #tpu.dot_dimension_numbers<[1], [0], [0], [1], [0, 0, 1, 1], [], []>} : vector<32x896xbf16>, vector<896x128xbf16>, vector<32x128xf32> -> vector<32x128xf32>
    %13 = arith.maximumf %3, %6 : vector<32x128xf32>
    %14 = arith.maximumf %9, %12 : vector<32x128xf32>
    %15 = arith.maximumf %13, %14 : vector<32x128xf32>
    %c0_13 = arith.constant 0 : index
    %c0_14 = arith.constant 0 : index
    %16 = vector.load %arg2[%c0_13, %c0_14] : memref<32x1xf32, #tpu.memory_space<vmem>>, vector<32x1xf32>
    %17 = vector.broadcast %16 : vector<32x1xf32> to vector<32x128xf32>
    %18 = arith.addf %15, %17 : vector<32x128xf32>
    %c0_15 = arith.constant 0 : index
    %c0_16 = arith.constant 0 : index
    %19 = vector.load %arg4[%c0_15, %c0_16] : memref<32x128xf32, #tpu.memory_space<vmem>>, vector<32x128xf32>
    tpu.vector_store %arg4[%c0_15, %c0_16], %18 {strides = array<i32>} : memref<32x128xf32, #tpu.memory_space<vmem>>, vector<32x128xf32>,
    return
  }
  func.func @transform_0(%arg0: i32) -> (i32, i32) {
    %c0_i32 = arith.constant 0 : i32
    %c0_i32_0 = arith.constant 0 : i32
    %c0_i32_1 = arith.constant 0 : i32
    return %c0_i32, %c0_i32_0 : i32, i32
  }
  func.func @transform_1(%arg0: i32) -> (i32, i32) {
    %c0_i32 = arith.constant 0 : i32
    %c0_i32_0 = arith.constant 0 : i32
    %c0_i32_1 = arith.constant 0 : i32
    return %c0_i32, %c0_i32_0 : i32, i32
  }
  func.func @transform_2(%arg0: i32) -> (i32, i32, i32) {
    %c0_i32 = arith.constant 0 : i32
    %c0_i32_0 = arith.constant 0 : i32
    %c0_i32_1 = arith.constant 0 : i32
    return %c0_i32, %c0_i32_0, %arg0 : i32, i32, i32
  }
  func.func @transform_3(%arg0: i32) -> (i32, i32) {
    %c0_i32 = arith.constant 0 : i32
    %c0_i32_0 = arith.constant 0 : i32
    return %c0_i32, %arg0 : i32, i32
  }
}

module attributes {stable_mosaic.version = 11 : i64} {
  func.func @_conv_bias_pool_kernel(%arg0: i32, %arg1: memref<64x896xbf16, #tpu.memory_space<vmem>>, %arg2: memref<64x1xf32, #tpu.memory_space<vmem>>, %arg3: memref<4x896x32xbf16, #tpu.memory_space<vmem>>, %arg4: memref<64x32xf32, #tpu.memory_space<vmem>>) attributes {dimension_semantics = [#tpu.dimension_semantics<parallel>], iteration_bounds = array<i64: 1>, scalar_prefetch = 0 : i64, scratch_operands = 0 : i64, tpu.core_type = #tpu.core_type<tc>, window_params = [{pipeline_mode = #tpu.pipeline_mode<synchronous>, transform_indices = @transform_0, window_bounds = array<i64: 64, 896>}, {pipeline_mode = #tpu.pipeline_mode<synchronous>, transform_indices = @transform_1, window_bounds = array<i64: 64, 1>}, {transform_indices = @transform_2, window_bounds = array<i64: 4, 896, 32>}, {transform_indices = @transform_3, window_bounds = array<i64: 64, 32>}]} {
    %c0 = arith.constant 0 : index
    %c0_0 = arith.constant 0 : index
    %0 = vector.load %arg1[%c0, %c0_0] : memref<64x896xbf16, #tpu.memory_space<vmem>>, vector<64x896xbf16>
    %c0_1 = arith.constant 0 : index
    %c0_2 = arith.constant 0 : index
    %c0_3 = arith.constant 0 : index
    %1 = vector.load %arg3[%c0_1, %c0_2, %c0_3] : memref<4x896x32xbf16, #tpu.memory_space<vmem>>, vector<1x896x32xbf16>
    %2 = vector.shape_cast %1 : vector<1x896x32xbf16> to vector<896x32xbf16>
    %cst = arith.constant dense<0.000000e+00> : vector<64x32xf32>
    %3 = tpu.matmul %0, %2, %cst {dimension_numbers = #tpu.dot_dimension_numbers<[1], [0], [0], [1], [0, 0, 1, 1], [], []>} : vector<64x896xbf16>, vector<896x32xbf16>, vector<64x32xf32> -> vector<64x32xf32>
    %c1 = arith.constant 1 : index
    %c0_4 = arith.constant 0 : index
    %c0_5 = arith.constant 0 : index
    %4 = vector.load %arg3[%c1, %c0_4, %c0_5] : memref<4x896x32xbf16, #tpu.memory_space<vmem>>, vector<1x896x32xbf16>
    %5 = vector.shape_cast %4 : vector<1x896x32xbf16> to vector<896x32xbf16>
    %cst_6 = arith.constant dense<0.000000e+00> : vector<64x32xf32>
    %6 = tpu.matmul %0, %5, %cst_6 {dimension_numbers = #tpu.dot_dimension_numbers<[1], [0], [0], [1], [0, 0, 1, 1], [], []>} : vector<64x896xbf16>, vector<896x32xbf16>, vector<64x32xf32> -> vector<64x32xf32>
    %c2 = arith.constant 2 : index
    %c0_7 = arith.constant 0 : index
    %c0_8 = arith.constant 0 : index
    %7 = vector.load %arg3[%c2, %c0_7, %c0_8] : memref<4x896x32xbf16, #tpu.memory_space<vmem>>, vector<1x896x32xbf16>
    %8 = vector.shape_cast %7 : vector<1x896x32xbf16> to vector<896x32xbf16>
    %cst_9 = arith.constant dense<0.000000e+00> : vector<64x32xf32>
    %9 = tpu.matmul %0, %8, %cst_9 {dimension_numbers = #tpu.dot_dimension_numbers<[1], [0], [0], [1], [0, 0, 1, 1], [], []>} : vector<64x896xbf16>, vector<896x32xbf16>, vector<64x32xf32> -> vector<64x32xf32>
    %c3 = arith.constant 3 : index
    %c0_10 = arith.constant 0 : index
    %c0_11 = arith.constant 0 : index
    %10 = vector.load %arg3[%c3, %c0_10, %c0_11] : memref<4x896x32xbf16, #tpu.memory_space<vmem>>, vector<1x896x32xbf16>
    %11 = vector.shape_cast %10 : vector<1x896x32xbf16> to vector<896x32xbf16>
    %cst_12 = arith.constant dense<0.000000e+00> : vector<64x32xf32>
    %12 = tpu.matmul %0, %11, %cst_12 {dimension_numbers = #tpu.dot_dimension_numbers<[1], [0], [0], [1], [0, 0, 1, 1], [], []>} : vector<64x896xbf16>, vector<896x32xbf16>, vector<64x32xf32> -> vector<64x32xf32>
    %13 = arith.maximumf %3, %6 : vector<64x32xf32>
    %14 = arith.maximumf %9, %12 : vector<64x32xf32>
    %15 = arith.maximumf %13, %14 : vector<64x32xf32>
    %c0_13 = arith.constant 0 : index
    %c0_14 = arith.constant 0 : index
    %16 = vector.load %arg2[%c0_13, %c0_14] : memref<64x1xf32, #tpu.memory_space<vmem>>, vector<64x1xf32>
    %17 = vector.broadcast %16 : vector<64x1xf32> to vector<64x32xf32>
    %18 = arith.addf %15, %17 : vector<64x32xf32>
    %c0_15 = arith.constant 0 : index
    %c0_16 = arith.constant 0 : index
    %19 = vector.load %arg4[%c0_15, %c0_16] : memref<64x32xf32, #tpu.memory_space<vmem>>, vector<64x32xf32>
    tpu.vector_store %arg4[%c0_15, %c0_16], %18 {strides = array<i32>} : memref<64x32xf32, #tpu.memory_space<vmem>>, vector<64x32xf32>,
    return
  }
  func.func @transform_0(%arg0: i32) -> (i32, i32) {
    %c0_i32 = arith.constant 0 : i32
    %c0_i32_0 = arith.constant 0 : i32
    %c0_i32_1 = arith.constant 0 : i32
    return %c0_i32, %c0_i32_0 : i32, i32
  }
  func.func @transform_1(%arg0: i32) -> (i32, i32) {
    %c0_i32 = arith.constant 0 : i32
    %c0_i32_0 = arith.constant 0 : i32
    %c0_i32_1 = arith.constant 0 : i32
    return %c0_i32, %c0_i32_0 : i32, i32
  }
  func.func @transform_2(%arg0: i32) -> (i32, i32, i32) {
    %c0_i32 = arith.constant 0 : i32
    %c0_i32_0 = arith.constant 0 : i32
    %c0_i32_1 = arith.constant 0 : i32
    return %c0_i32, %c0_i32_0, %arg0 : i32, i32, i32
  }
  func.func @transform_3(%arg0: i32) -> (i32, i32) {
    %c0_i32 = arith.constant 0 : i32
    %c0_i32_0 = arith.constant 0 : i32
    return %c0_i32, %arg0 : i32, i32
  }
}

module attributes {stable_mosaic.version = 11 : i64} {
  func.func @_fc2_kernel(%arg0: i32, %arg1: memref<2x1024xbf16, #tpu.memory_space<vmem>>, %arg2: memref<1024x64xbf16, #tpu.memory_space<vmem>>, %arg3: memref<1x64xf32, #tpu.memory_space<vmem>>, %arg4: memref<64x10xbf16, #tpu.memory_space<vmem>>, %arg5: memref<1x10xf32, #tpu.memory_space<vmem>>, %arg6: memref<2x10xf32, #tpu.memory_space<vmem>>) attributes {dimension_semantics = [#tpu.dimension_semantics<parallel>], iteration_bounds = array<i64: 1>, scalar_prefetch = 0 : i64, scratch_operands = 0 : i64, tpu.core_type = #tpu.core_type<tc>, window_params = [{transform_indices = @transform_0, window_bounds = array<i64: 2, 1024>}, {pipeline_mode = #tpu.pipeline_mode<synchronous>, transform_indices = @transform_1, window_bounds = array<i64: 1024, 64>}, {pipeline_mode = #tpu.pipeline_mode<synchronous>, transform_indices = @transform_2, window_bounds = array<i64: 1, 64>}, {pipeline_mode = #tpu.pipeline_mode<synchronous>, transform_indices = @transform_3, window_bounds = array<i64: 64, 10>}, {pipeline_mode = #tpu.pipeline_mode<synchronous>, transform_indices = @transform_4, window_bounds = array<i64: 1, 10>}, {transform_indices = @transform_5, window_bounds = array<i64: 2, 10>}]} {
    %c0 = arith.constant 0 : index
    %c0_0 = arith.constant 0 : index
    %0 = vector.load %arg1[%c0, %c0_0] : memref<2x1024xbf16, #tpu.memory_space<vmem>>, vector<2x1024xbf16>
    %c0_1 = arith.constant 0 : index
    %c0_2 = arith.constant 0 : index
    %1 = vector.load %arg2[%c0_1, %c0_2] : memref<1024x64xbf16, #tpu.memory_space<vmem>>, vector<1024x64xbf16>
    %cst = arith.constant dense<0.000000e+00> : vector<2x64xf32>
    %2 = tpu.matmul %0, %1, %cst {dimension_numbers = #tpu.dot_dimension_numbers<[1], [0], [0], [1], [0, 0, 1, 1], [], []>} : vector<2x1024xbf16>, vector<1024x64xbf16>, vector<2x64xf32> -> vector<2x64xf32>
    %c0_3 = arith.constant 0 : index
    %c0_4 = arith.constant 0 : index
    %3 = vector.load %arg3[%c0_3, %c0_4] : memref<1x64xf32, #tpu.memory_space<vmem>>, vector<1x64xf32>
    %4 = vector.broadcast %3 : vector<1x64xf32> to vector<2x64xf32>
    %5 = arith.addf %2, %4 : vector<2x64xf32>
    %6 = arith.truncf %5 : vector<2x64xf32> to vector<2x64xbf16>
    %c0_5 = arith.constant 0 : index
    %c0_6 = arith.constant 0 : index
    %7 = vector.load %arg4[%c0_5, %c0_6] : memref<64x10xbf16, #tpu.memory_space<vmem>>, vector<64x10xbf16>
    %cst_7 = arith.constant dense<0.000000e+00> : vector<2x10xf32>
    %8 = tpu.matmul %6, %7, %cst_7 {dimension_numbers = #tpu.dot_dimension_numbers<[1], [0], [0], [1], [0, 0, 1, 1], [], []>} : vector<2x64xbf16>, vector<64x10xbf16>, vector<2x10xf32> -> vector<2x10xf32>
    %c0_8 = arith.constant 0 : index
    %c0_9 = arith.constant 0 : index
    %9 = vector.load %arg5[%c0_8, %c0_9] : memref<1x10xf32, #tpu.memory_space<vmem>>, vector<1x10xf32>
    %10 = vector.broadcast %9 : vector<1x10xf32> to vector<2x10xf32>
    %11 = arith.addf %8, %10 : vector<2x10xf32>
    %c0_10 = arith.constant 0 : index
    %c0_11 = arith.constant 0 : index
    %12 = vector.load %arg6[%c0_10, %c0_11] : memref<2x10xf32, #tpu.memory_space<vmem>>, vector<2x10xf32>
    tpu.vector_store %arg6[%c0_10, %c0_11], %11 {strides = array<i32>} : memref<2x10xf32, #tpu.memory_space<vmem>>, vector<2x10xf32>,
    return
  }
  func.func @transform_0(%arg0: i32) -> (i32, i32) {
    %c0_i32 = arith.constant 0 : i32
    %c0_i32_0 = arith.constant 0 : i32
    return %arg0, %c0_i32 : i32, i32
  }
  func.func @transform_1(%arg0: i32) -> (i32, i32) {
    %c0_i32 = arith.constant 0 : i32
    %c0_i32_0 = arith.constant 0 : i32
    %c0_i32_1 = arith.constant 0 : i32
    return %c0_i32, %c0_i32_0 : i32, i32
  }
  func.func @transform_2(%arg0: i32) -> (i32, i32) {
    %c0_i32 = arith.constant 0 : i32
    %c0_i32_0 = arith.constant 0 : i32
    %c0_i32_1 = arith.constant 0 : i32
    return %c0_i32, %c0_i32_0 : i32, i32
  }
  func.func @transform_3(%arg0: i32) -> (i32, i32) {
    %c0_i32 = arith.constant 0 : i32
    %c0_i32_0 = arith.constant 0 : i32
    %c0_i32_1 = arith.constant 0 : i32
    return %c0_i32, %c0_i32_0 : i32, i32
  }
  func.func @transform_4(%arg0: i32) -> (i32, i32) {
    %c0_i32 = arith.constant 0 : i32
    %c0_i32_0 = arith.constant 0 : i32
    %c0_i32_1 = arith.constant 0 : i32
    return %c0_i32, %c0_i32_0 : i32, i32
  }
  func.func @transform_5(%arg0: i32) -> (i32, i32) {
    %c0_i32 = arith.constant 0 : i32
    %c0_i32_0 = arith.constant 0 : i32
    return %arg0, %c0_i32 : i32, i32
  }
}

</mosaic_0001>

<bundles_post_ra>
// kernel: model_forward.4
= control target key start
LH: loop header
LB: loop body
LE: loop exit
PB: predicated region body
PF: predicated region fallthrough
CT: control target
= control target key end

     0   :  { %s2994_s2 = inlined_call_operand.vmem [shape: bf16[4,128,512], index: 2, kind: input, shape index: {}]   ;;  %s2995_s0 = inlined_call_operand.vmem [shape: bf16[32,128], index: 0, kind: input, shape index: {}]   ;;  %s2996_s1 = inlined_call_operand.vmem [shape: f32[32,1], index: 1, kind: input, shape index: {}]   ;;  %s2997_s3 = inlined_call_operand.vmem [shape: f32[32,512], index: 3, kind: output, shape index: {}]  }
   0x1   :  { %v1335_v0 = vld [vmem:[%s2994_s2 + $0xe0] sm:$0xf]  ;;  %v1861_v1 = vld [vmem:[%s2994_s2 + $0xec] sm:$0xf0]  ;;  %v1859_v2 = vld [vmem:[%s2994_s2 + $0xe4] sm:$0xf] }
   0x2   :  { %v1336_v3 = vor.u32 %v1861_v1, %v1335_v0  ;;  %v1337_v4 = vld [vmem:[%s2994_s2 + $0xf0] sm:$0xf0]  ;;  %v1343_v5 = vld [vmem:[%s2994_s2 + $0xe8] sm:$0xf]  ;;  %v1862_v6 = vld [vmem:[%s2994_s2 + $0xf4] sm:$0xf0] }
   0x3   :  { %v1340_v7 = vor.u32 %v1859_v2, %v1337_v4  ;;  %v1344_v8 = vor.u32 %v1862_v6, %v1343_v5  ;;  %v1860_v9 = vld [vmem:[%s2994_s2 + $0xec] sm:$0xf]  ;;  %v1345_v10 = vld [vmem:[%s2994_s2 + $0xf8] sm:$0xf0]  ;;  %v1319_v11 = vld [vmem:[%s2994_s2 + $0xc0] sm:$0xf] }
   0x4   :  { %222 = vmatpush.bf16.msra.mxu0 %v1336_v3  ;;  %v1348_v12 = vor.u32 %v1860_v9, %v1345_v10  ;;  %v1857_v13 = vld [vmem:[%s2994_s2 + $0xcc] sm:$0xf0]  ;;  %v1855_v14 = vld [vmem:[%s2994_s2 + $0xc4] sm:$0xf]  ;;  %v1321_v15 = vld [vmem:[%s2994_s2 + $0xd0] sm:$0xf0] }
   0x5   :  { %241 = vmatpush.bf16.msra.mxu1 %v1340_v7  ;;  %260 = vmatpush.bf16.msra.mxu2 %v1344_v8  ;;  %v1320_v16 = vor.u32 %v1857_v13, %v1319_v11  ;;  %v1324_v17 = vor.u32 %v1855_v14, %v1321_v15  ;;  %v1327_v18 = vld [vmem:[%s2994_s2 + $0xc8] sm:$0xf]  ;;  %v1858_v19 = vld [vmem:[%s2994_s2 + $0xd4] sm:$0xf0]  ;;  %v1856_v20 = vld [vmem:[%s2994_s2 + $0xcc] sm:$0xf] }
   0x6   :  { %279 = vmatpush.bf16.msra.mxu3 %v1348_v12  ;;  %v1328_v21 = vor.u32 %v1858_v19, %v1327_v18  ;;  %v1329_v22 = vld [vmem:[%s2994_s2 + $0xd8] sm:$0xf0]  ;;  %v1303_v23 = vld [vmem:[%s2994_s2 + $0xa0] sm:$0xf]  ;;  %v1853_v24 = vld [vmem:[%s2994_s2 + $0xac] sm:$0xf0] }
   0x7   :  { %v1332_v25 = vor.u32 %v1856_v20, %v1329_v22  ;;  %v1851_v26 = vld [vmem:[%s2994_s2 + $0xa4] sm:$0xf]  ;;  %v1305_v27 = vld [vmem:[%s2994_s2 + $0xb0] sm:$0xf0]  ;;  %v1311_v28 = vld [vmem:[%s2994_s2 + $0xa8] sm:$0xf]  ;;  %v1304_v29 = vor.u32 %v1853_v24, %v1303_v23 }
   0x8   :  { %223 = vmatpush.bf16.msra.mxu0 %v1320_v16  ;;  %v1854_v30 = vld [vmem:[%s2994_s2 + $0xb4] sm:$0xf0]  ;;  %v1852_v31 = vld [vmem:[%s2994_s2 + $0xac] sm:$0xf]  ;;  %v1313_v32 = vld [vmem:[%s2994_s2 + $0xb8] sm:$0xf0]  ;;  %v1308_v33 = vor.u32 %v1851_v26, %v1305_v27 }
   0x9   :  { %242 = vmatpush.bf16.msra.mxu1 %v1324_v17  ;;  %261 = vmatpush.bf16.msra.mxu2 %v1328_v21  ;;  %v1312_v34 = vor.u32 %v1854_v30, %v1311_v28  ;;  %v1287_v35 = vld [vmem:[%s2994_s2 + $0x80] sm:$0xf]  ;;  %v1849_v36 = vld [vmem:[%s2994_s2 + $0x8c] sm:$0xf0]  ;;  %v1847_v37 = vld [vmem:[%s2994_s2 + $0x84] sm:$0xf]  ;;  %v1316_v38 = vor.u32 %v1852_v31, %v1313_v32 }
   0xa   :  { %280 = vmatpush.bf16.msra.mxu3 %v1332_v25  ;;  %v1289_v39 = vld [vmem:[%s2994_s2 + $0x90] sm:$0xf0]  ;;  %v1295_v40 = vld [vmem:[%s2994_s2 + $0x88] sm:$0xf]  ;;  %v1850_v41 = vld [vmem:[%s2994_s2 + $0x94] sm:$0xf0]  ;;  %v1288_v44 = vor.u32 %v1849_v36, %v1287_v35 }
   0xb   :  { %v1848_v42 = vld [vmem:[%s2994_s2 + $0x8c] sm:$0xf]  ;;  %v1297_v43 = vld [vmem:[%s2994_s2 + $0x98] sm:$0xf0]  ;;  %v1292_v45 = vor.u32 %v1847_v37, %v1289_v39  ;;  %v1296_v46 = vor.u32 %v1850_v41, %v1295_v40  ;;  %v1271_v47 = vld [vmem:[%s2994_s2 + $0x60] sm:$0xf] }
   0xc   :  { %224 = vmatpush.bf16.msra.mxu0 %v1304_v29  ;;  %v1845_v48 = vld [vmem:[%s2994_s2 + $0x6c] sm:$0xf0]  ;;  %v1843_v49 = vld [vmem:[%s2994_s2 + $0x64] sm:$0xf]  ;;  %v1300_v50 = vor.u32 %v1848_v42, %v1297_v43  ;;  %v1273_v51 = vld [vmem:[%s2994_s2 + $0x70] sm:$0xf0] }
   0xd   :  { %243 = vmatpush.bf16.msra.mxu1 %v1308_v33  ;;  %262 = vmatpush.bf16.msra.mxu2 %v1312_v34  ;;  %v1279_v52 = vld [vmem:[%s2994_s2 + $0x68] sm:$0xf]  ;;  %v1846_v53 = vld [vmem:[%s2994_s2 + $0x74] sm:$0xf0]  ;;  %v1844_v54 = vld [vmem:[%s2994_s2 + $0x6c] sm:$0xf]  ;;  %v1272_v56 = vor.u32 %v1845_v48, %v1271_v47  ;;  %v1276_v57 = vor.u32 %v1843_v49, %v1273_v51 }
   0xe   :  { %281 = vmatpush.bf16.msra.mxu3 %v1316_v38  ;;  %v1281_v55 = vld [vmem:[%s2994_s2 + $0x78] sm:$0xf0]  ;;  %v1280_v58 = vor.u32 %v1846_v53, %v1279_v52  ;;  %v1255_v59 = vld [vmem:[%s2994_s2 + $0x40] sm:$0xf]  ;;  %v1841_v60 = vld [vmem:[%s2994_s2 + $0x4c] sm:$0xf0] }
   0xf   :  { %v1839_v61 = vld [vmem:[%s2994_s2 + $0x44] sm:$0xf]  ;;  %v1284_v62 = vor.u32 %v1844_v54, %v1281_v55  ;;  %v1257_v63 = vld [vmem:[%s2994_s2 + $0x50] sm:$0xf0]  ;;  %v1263_v0 = vld [vmem:[%s2994_s2 + $0x48] sm:$0xf]  ;;  %v1256_v4 = vor.u32 %v1841_v60, %v1255_v59 }
  0x10   :  { %225 = vmatpush.bf16.msra.mxu0 %v1288_v44  ;;  %v1842_v1 = vld [vmem:[%s2994_s2 + $0x54] sm:$0xf0]  ;;  %v1840_v2 = vld [vmem:[%s2994_s2 + $0x4c] sm:$0xf]  ;;  %v1265_v3 = vld [vmem:[%s2994_s2 + $0x58] sm:$0xf0]  ;;  %v1260_v5 = vor.u32 %v1839_v61, %v1257_v63 }
  0x11   :  { %244 = vmatpush.bf16.msra.mxu1 %v1292_v45  ;;  %263 = vmatpush.bf16.msra.mxu2 %v1296_v46  ;;  %v1264_v6 = vor.u32 %v1842_v1, %v1263_v0  ;;  %v1239_v7 = vld [vmem:[%s2994_s2 + $0x20] sm:$0xf]  ;;  %v1837_v8 = vld [vmem:[%s2994_s2 + $0x2c] sm:$0xf0]  ;;  %v1835_v9 = vld [vmem:[%s2994_s2 + $0x24] sm:$0xf]  ;;  %v1268_v10 = vor.u32 %v1840_v2, %v1265_v3 }
  0x12   :  { %282 = vmatpush.bf16.msra.mxu3 %v1300_v50  ;;  %v1241_v11 = vld [vmem:[%s2994_s2 + $0x30] sm:$0xf0]  ;;  %v1247_v12 = vld [vmem:[%s2994_s2 + $0x28] sm:$0xf]  ;;  %v1838_v13 = vld [vmem:[%s2994_s2 + $0x34] sm:$0xf0]  ;;  %v1240_v16 = vor.u32 %v1837_v8, %v1239_v7 }
  0x13   :  { %v1836_v14 = vld [vmem:[%s2994_s2 + $0x2c] sm:$0xf]  ;;  %v1249_v15 = vld [vmem:[%s2994_s2 + $0x38] sm:$0xf0]  ;;  %v1223_v17 = vld [vmem:[%s2994_s2] sm:$0xf]  ;;  %v1244_v18 = vor.u32 %v1835_v9, %v1241_v11  ;;  %v1248_v19 = vor.u32 %v1838_v13, %v1247_v12 }
  0x14   :  { %226 = vmatpush.bf16.msra.mxu0 %v1272_v56  ;;  %v1833_v20 = vld [vmem:[%s2994_s2 + $0xc] sm:$0xf0]  ;;  %v1831_v21 = vld [vmem:[%s2994_s2 + $0x4] sm:$0xf]  ;;  %v1225_v22 = vld [vmem:[%s2994_s2 + $0x10] sm:$0xf0]  ;;  %v1252_v23 = vor.u32 %v1836_v14, %v1249_v15 }
  0x15   :  { %245 = vmatpush.bf16.msra.mxu1 %v1276_v57  ;;  %264 = vmatpush.bf16.msra.mxu2 %v1280_v58  ;;  %v1231_v24 = vld [vmem:[%s2994_s2 + $0x8] sm:$0xf]  ;;  %v1834_v25 = vld [vmem:[%s2994_s2 + $0x14] sm:$0xf0]  ;;  %v1832_v26 = vld [vmem:[%s2994_s2 + $0xc] sm:$0xf]  ;;  %v1224_v30 = vor.u32 %v1833_v20, %v1223_v17  ;;  %v1228_v33 = vor.u32 %v1831_v21, %v1225_v22 }
  0x16   :  { %283 = vmatpush.bf16.msra.mxu3 %v1284_v62  ;;  %v1233_v27 = vld [vmem:[%s2994_s2 + $0x18] sm:$0xf0]  ;;  %v1503_v28 = vld [vmem:[%s2994_s2 + $0x1e8] sm:$0xf]  ;;  %v1894_v29 = vld [vmem:[%s2994_s2 + $0x1f4] sm:$0xf0]  ;;  %v1232_v34 = vor.u32 %v1834_v25, %v1231_v24 }
  0x17   :  { %v1892_v31 = vld [vmem:[%s2994_s2 + $0x1ec] sm:$0xf]  ;;  %v1505_v32 = vld [vmem:[%s2994_s2 + $0x1f8] sm:$0xf0]  ;;  %v2190_v35 = vld [vmem:[%s2995_s0] sm:$0xff]  ;;  %v1236_v36 = vor.u32 %v1832_v26, %v1233_v27  ;;  %v1504_v37 = vor.u32 %v1894_v29, %v1503_v28 }
  0x18   :  { %227 = vmatpush.bf16.msra.mxu0 %v1256_v4  ;;  %v1495_v38 = vld [vmem:[%s2994_s2 + $0x1e0] sm:$0xf]  ;;  %v1893_v39 = vld [vmem:[%s2994_s2 + $0x1ec] sm:$0xf0]  ;;  %v1891_v40 = vld [vmem:[%s2994_s2 + $0x1e4] sm:$0xf]  ;;  %v1508_v41 = vor.u32 %v1892_v31, %v1505_v32 }
  0x19   :  { %246 = vmatpush.bf16.msra.mxu1 %v1260_v5  ;;  %265 = vmatpush.bf16.msra.mxu2 %v1264_v6  ;;  %v1497_v42 = vld [vmem:[%s2994_s2 + $0x1f0] sm:$0xf0]  ;;  %v1487_v43 = vld [vmem:[%s2994_s2 + $0x1c8] sm:$0xf]  ;;  %v1890_v44 = vld [vmem:[%s2994_s2 + $0x1d4] sm:$0xf0]  ;;  %v1496_v47 = vor.u32 %v1893_v39, %v1495_v38 }
  0x1a   :  { %284 = vmatpush.bf16.msra.mxu3 %v1268_v10  ;;  %v1888_v45 = vld [vmem:[%s2994_s2 + $0x1cc] sm:$0xf]  ;;  %v1489_v46 = vld [vmem:[%s2994_s2 + $0x1d8] sm:$0xf0]  ;;  %v1500_v48 = vor.u32 %v1891_v40, %v1497_v42  ;;  %v1488_v49 = vor.u32 %v1890_v44, %v1487_v43  ;;  %v1479_v50 = vld [vmem:[%s2994_s2 + $0x1c0] sm:$0xf] }
  0x1b   :  { %v1889_v51 = vld [vmem:[%s2994_s2 + $0x1cc] sm:$0xf0]  ;;  %v1887_v52 = vld [vmem:[%s2994_s2 + $0x1c4] sm:$0xf]  ;;  %v1492_v53 = vor.u32 %v1888_v45, %v1489_v46  ;;  %v1481_v54 = vld [vmem:[%s2994_s2 + $0x1d0] sm:$0xf0] }
  0x1c   :  { %228 = vmatpush.bf16.msra.mxu0 %v1240_v16  ;;  %v1471_v55 = vld [vmem:[%s2994_s2 + $0x1a8] sm:$0xf]  ;;  %v1886_v56 = vld [vmem:[%s2994_s2 + $0x1b4] sm:$0xf0]  ;;  %v1884_v57 = vld [vmem:[%s2994_s2 + $0x1ac] sm:$0xf]  ;;  %v1480_v59 = vor.u32 %v1889_v51, %v1479_v50  ;;  %v1484_v60 = vor.u32 %v1887_v52, %v1481_v54 }
  0x1d   :  { %247 = vmatpush.bf16.msra.mxu1 %v1244_v18  ;;  %266 = vmatpush.bf16.msra.mxu2 %v1248_v19  ;;  %v1473_v58 = vld [vmem:[%s2994_s2 + $0x1b8] sm:$0xf0]  ;;  %v1472_v61 = vor.u32 %v1886_v56, %v1471_v55  ;;  %v1463_v62 = vld [vmem:[%s2994_s2 + $0x1a0] sm:$0xf]  ;;  %v1885_v63 = vld [vmem:[%s2994_s2 + $0x1ac] sm:$0xf0] }
  0x1e   :  { %285 = vmatpush.bf16.msra.mxu3 %v1252_v23  ;;  %v1883_v0 = vld [vmem:[%s2994_s2 + $0x1a4] sm:$0xf]  ;;  %v1476_v1 = vor.u32 %v1884_v57, %v1473_v58  ;;  %v1465_v2 = vld [vmem:[%s2994_s2 + $0x1b0] sm:$0xf0]  ;;  %v1455_v3 = vld [vmem:[%s2994_s2 + $0x188] sm:$0xf]  ;;  %v1464_v7 = vor.u32 %v1885_v63, %v1463_v62 }
  0x1f   :  { %v1882_v4 = vld [vmem:[%s2994_s2 + $0x194] sm:$0xf0]  ;;  %v1880_v5 = vld [vmem:[%s2994_s2 + $0x18c] sm:$0xf]  ;;  %v1457_v6 = vld [vmem:[%s2994_s2 + $0x198] sm:$0xf0]  ;;  %v1468_v8 = vor.u32 %v1883_v0, %v1465_v2 }
  0x20   :  { %229 = vmatpush.bf16.msra.mxu0 %v1224_v30  ;;  %v1456_v9 = vor.u32 %v1882_v4, %v1455_v3  ;;  %v1447_v10 = vld [vmem:[%s2994_s2 + $0x180] sm:$0xf]  ;;  %v1881_v11 = vld [vmem:[%s2994_s2 + $0x18c] sm:$0xf0]  ;;  %v1879_v12 = vld [vmem:[%s2994_s2 + $0x184] sm:$0xf]  ;;  %v1460_v13 = vor.u32 %v1880_v5, %v1457_v6 }
  0x21   :  { %248 = vmatpush.bf16.msra.mxu1 %v1228_v33  ;;  %267 = vmatpush.bf16.msra.mxu2 %v1232_v34  ;;  %v1449_v14 = vld [vmem:[%s2994_s2 + $0x190] sm:$0xf0]  ;;  %v1439_v15 = vld [vmem:[%s2994_s2 + $0x168] sm:$0xf]  ;;  %v1878_v16 = vld [vmem:[%s2994_s2 + $0x174] sm:$0xf0]  ;;  %v1448_v19 = vor.u32 %v1881_v11, %v1447_v10 }
  0x22   :  { %286 = vmatpush.bf16.msra.mxu3 %v1236_v36  ;;  %v1876_v17 = vld [vmem:[%s2994_s2 + $0x16c] sm:$0xf]  ;;  %v1441_v18 = vld [vmem:[%s2994_s2 + $0x178] sm:$0xf0]  ;;  %v1452_v21 = vor.u32 %v1879_v12, %v1449_v14  ;;  %v1440_v22 = vor.u32 %v1878_v16, %v1439_v15  ;;  %v1431_v23 = vld [vmem:[%s2994_s2 + $0x160] sm:$0xf] }
  0x23   :  { %230 = vmatmul.bf16.vlgmr.msra.gmra.mxu0 %v2190_v35  ;;  %v2295_v20 = vld [vmem:[%s2995_s0 + $0x8] sm:$0xff]  ;;  %v1877_v24 = vld [vmem:[%s2994_s2 + $0x16c] sm:$0xf0]  ;;  %v1875_v25 = vld [vmem:[%s2994_s2 + $0x164] sm:$0xf]  ;;  %v1444_v26 = vor.u32 %v1876_v17, %v1441_v18 }
  0x24   :  { %249 = vmatmul.bf16.vlgmr.msra.gmra.mxu1 %v2190_v35  ;;  %268 = vmatmul.bf16.vlgmr.msra.gmra.mxu2 %v2190_v35  ;;  %v1433_v27 = vld [vmem:[%s2994_s2 + $0x170] sm:$0xf0]  ;;  %v1423_v28 = vld [vmem:[%s2994_s2 + $0x148] sm:$0xf]  ;;  %v1874_v29 = vld [vmem:[%s2994_s2 + $0x154] sm:$0xf0]  ;;  %v1432_v32 = vor.u32 %v1877_v24, %v1431_v23 }
  0x25   :  { %529 = vmatpush.bf16.msrb.mxu2 %v1504_v37  ;;  %287 = vmatmul.bf16.vlgmr.msra.gmra.mxu3 %v2190_v35  ;;  %v1872_v30 = vld [vmem:[%s2994_s2 + $0x14c] sm:$0xf]  ;;  %v1425_v31 = vld [vmem:[%s2994_s2 + $0x158] sm:$0xf0]  ;;  %v1436_v33 = vor.u32 %v1875_v25, %v1433_v27  ;;  %v1424_v34 = vor.u32 %v1874_v29, %v1423_v28  ;;  %v1415_v36 = vld [vmem:[%s2994_s2 + $0x140] sm:$0xf] }
  0x26   :  { %548 = vmatpush.bf16.msrb.mxu3 %v1508_v41  ;;  %491 = vmatpush.bf16.msrb.mxu0 %v1496_v47  ;;  %v1873_v37 = vld [vmem:[%s2994_s2 + $0x14c] sm:$0xf0]  ;;  %v1871_v38 = vld [vmem:[%s2994_s2 + $0x144] sm:$0xf]  ;;  %v1428_v39 = vor.u32 %v1872_v30, %v1425_v31  ;;  %v1417_v40 = vld [vmem:[%s2994_s2 + $0x150] sm:$0xf0] }
  0x27   :  { %510 = vmatpush.bf16.msrb.mxu1 %v1500_v48  ;;  %v1407_v41 = vld [vmem:[%s2994_s2 + $0x128] sm:$0xf]  ;;  %v1870_v42 = vld [vmem:[%s2994_s2 + $0x134] sm:$0xf0]  ;;  %v1868_v43 = vld [vmem:[%s2994_s2 + $0x12c] sm:$0xf]  ;;  %v1416_v45 = vor.u32 %v1873_v37, %v1415_v36  ;;  %v1420_v47 = vor.u32 %v1871_v38, %v1417_v40 }
  0x28   :  { %v1409_v44 = vld [vmem:[%s2994_s2 + $0x138] sm:$0xf0]  ;;  %v1399_v46 = vld [vmem:[%s2994_s2 + $0x120] sm:$0xf]  ;;  %v1408_v48 = vor.u32 %v1870_v42, %v1407_v41  ;;  %v1867_v50 = vld [vmem:[%s2994_s2 + $0x124] sm:$0xf] }
  0x29   :  { %530 = vmatpush.bf16.msrb.mxu2 %v1488_v49  ;;  %v1869_v49 = vld [vmem:[%s2994_s2 + $0x12c] sm:$0xf0]  ;;  %v1401_v51 = vld [vmem:[%s2994_s2 + $0x130] sm:$0xf0]  ;;  %v1412_v52 = vor.u32 %v1868_v43, %v1409_v44  ;;  %v1866_v54 = vld [vmem:[%s2994_s2 + $0x114] sm:$0xf0] }
  0x2a   :  { %549 = vmatpush.bf16.msrb.mxu3 %v1492_v53  ;;  %492 = vmatpush.bf16.msrb.mxu0 %v1480_v59  ;;  %v1391_v53 = vld [vmem:[%s2994_s2 + $0x108] sm:$0xf]  ;;  %v1864_v55 = vld [vmem:[%s2994_s2 + $0x10c] sm:$0xf]  ;;  %v1393_v56 = vld [vmem:[%s2994_s2 + $0x118] sm:$0xf0]  ;;  %v1400_v59 = vor.u32 %v1869_v49, %v1399_v46  ;;  %v1404_v63 = vor.u32 %v1867_v50, %v1401_v51 }
  0x2b   :  { %511 = vmatpush.bf16.msrb.mxu1 %v1484_v60  ;;  %v1663_v57 = vld [vmem:[%s2994_s2 + $0x2e8] sm:$0xf]  ;;  %v1926_v58 = vld [vmem:[%s2994_s2 + $0x2f4] sm:$0xf0]  ;;  %v1383_v60 = vld [vmem:[%s2994_s2 + $0x100] sm:$0xf]  ;;  %v1392_v0 = vor.u32 %v1866_v54, %v1391_v53  ;;  %v1396_v4 = vor.u32 %v1864_v55, %v1393_v56 }
  0x2c   :  { %v1665_v62 = vld [vmem:[%s2994_s2 + $0x2f8] sm:$0xf0]  ;;  %v1863_v2 = vld [vmem:[%s2994_s2 + $0x104] sm:$0xf]  ;;  %v1385_v3 = vld [vmem:[%s2994_s2 + $0x110] sm:$0xf0]  ;;  %v1664_v5 = vor.u32 %v1926_v58, %v1663_v57 }
  0x2d   :  { %531 = vmatpush.bf16.msrb.mxu2 %v1472_v61  ;;  %v1924_v61 = vld [vmem:[%s2994_s2 + $0x2ec] sm:$0xf]  ;;  %v1655_v6 = vld [vmem:[%s2994_s2 + $0x2e0] sm:$0xf]  ;;  %v1657_v10 = vld [vmem:[%s2994_s2 + $0x2f0] sm:$0xf0]  ;;  %v1388_v14 = vor.u32 %v1863_v2, %v1385_v3 }
  0x2e   :  { %550 = vmatpush.bf16.msrb.mxu3 %v1476_v1  ;;  %493 = vmatpush.bf16.msrb.mxu0 %v1464_v7  ;;  %v1865_v1 = vld [vmem:[%s2994_s2 + $0x10c] sm:$0xf0]  ;;  %v1647_v11 = vld [vmem:[%s2994_s2 + $0x2c8] sm:$0xf]  ;;  %v1922_v12 = vld [vmem:[%s2994_s2 + $0x2d4] sm:$0xf0] }
  0x2f   :  { %512 = vmatpush.bf16.msrb.mxu1 %v1468_v8  ;;  %v1925_v7 = vld [vmem:[%s2994_s2 + $0x2ec] sm:$0xf0]  ;;  %v1923_v8 = vld [vmem:[%s2994_s2 + $0x2e4] sm:$0xf]  ;;  %v1920_v16 = vld [vmem:[%s2994_s2 + $0x2cc] sm:$0xf] }
  0x30   :  { %v1656_v15 = vor.u32 %v1925_v7, %v1655_v6  ;;  %v1649_v17 = vld [vmem:[%s2994_s2 + $0x2d8] sm:$0xf0]  ;;  %v1660_v18 = vor.u32 %v1923_v8, %v1657_v10  ;;  %v1919_v23 = vld [vmem:[%s2994_s2 + $0x2c4] sm:$0xf]  ;;  %v1641_v24 = vld [vmem:[%s2994_s2 + $0x2d0] sm:$0xf0] }
  0x31   :  { %532 = vmatpush.bf16.msrb.mxu2 %v1456_v9  ;;  %v1668_v9 = vor.u32 %v1924_v61, %v1665_v62  ;;  %v1631_v25 = vld [vmem:[%s2994_s2 + $0x2a8] sm:$0xf]  ;;  %v1652_v27 = vor.u32 %v1920_v16, %v1649_v17  ;;  %v1916_v29 = vld [vmem:[%s2994_s2 + $0x2ac] sm:$0xf]  ;;  %v1633_v30 = vld [vmem:[%s2994_s2 + $0x2b8] sm:$0xf0]  ;;  %v1644_v31 = vor.u32 %v1919_v23, %v1641_v24 }
  0x32   :  { %551 = vmatpush.bf16.msrb.mxu3 %v1460_v13  ;;  %494 = vmatpush.bf16.msrb.mxu0 %v1448_v19  ;;  %v1384_v13 = vor.u32 %v1865_v1, %v1383_v60  ;;  %v1648_v19 = vor.u32 %v1922_v12, %v1647_v11  ;;  %v1915_v36 = vld [vmem:[%s2994_s2 + $0x2a4] sm:$0xf]  ;;  %v1625_v37 = vld [vmem:[%s2994_s2 + $0x2b0] sm:$0xf0]  ;;  %v1615_v38 = vld [vmem:[%s2994_s2 + $0x288] sm:$0xf]  ;;  %v1636_v40 = vor.u32 %v1916_v29, %v1633_v30 }
  0x33   :  { %513 = vmatpush.bf16.msrb.mxu1 %v1452_v21  ;;  %235 = vmatmul.bf16.gmra.mxu0 %v2295_v20  ;;  %v1639_v21 = vld [vmem:[%s2994_s2 + $0x2c0] sm:$0xf]  ;;  %v1912_v42 = vld [vmem:[%s2994_s2 + $0x28c] sm:$0xf]  ;;  %v1617_v43 = vld [vmem:[%s2994_s2 + $0x298] sm:$0xf0]  ;;  %v1628_v44 = vor.u32 %v1915_v36, %v1625_v37 }
  0x34   :  { %254 = vmatmul.bf16.gmra.mxu1 %v2295_v20  ;;  %273 = vmatmul.bf16.gmra.mxu2 %v2295_v20  ;;  %v1607_v46 = vld [vmem:[%s2994_s2 + $0x280] sm:$0xf]  ;;  %v1609_v49 = vld [vmem:[%s2994_s2 + $0x290] sm:$0xf0]  ;;  %v1599_v50 = vld [vmem:[%s2994_s2 + $0x268] sm:$0xf] }
  0x35   :  { %533 = vmatpush.bf16.msrb.mxu2 %v1440_v22  ;;  %292 = vmatmul.bf16.gmra.mxu3 %v2295_v20  ;;  %v1921_v22 = vld [vmem:[%s2994_s2 + $0x2cc] sm:$0xf0]  ;;  %v1910_v51 = vld [vmem:[%s2994_s2 + $0x274] sm:$0xf0]  ;;  %v1908_v54 = vld [vmem:[%s2994_s2 + $0x26c] sm:$0xf] }
  0x36   :  { %552 = vmatpush.bf16.msrb.mxu3 %v1444_v26  ;;  %495 = vmatpush.bf16.msrb.mxu0 %v1432_v32  ;;  %v1918_v26 = vld [vmem:[%s2994_s2 + $0x2b4] sm:$0xf0]  ;;  %v1640_v28 = vor.u32 %v1921_v22, %v1639_v21  ;;  %v1601_v55 = vld [vmem:[%s2994_s2 + $0x278] sm:$0xf0]  ;;  %v1600_v57 = vor.u32 %v1910_v51, %v1599_v50  ;;  %v1591_v58 = vld [vmem:[%s2994_s2 + $0x260] sm:$0xf] }
  0x37   :  { %514 = vmatpush.bf16.msrb.mxu1 %v1436_v33  ;;  %v1632_v32 = vor.u32 %v1918_v26, %v1631_v25  ;;  %v1623_v33 = vld [vmem:[%s2994_s2 + $0x2a0] sm:$0xf]  ;;  %v1907_v60 = vld [vmem:[%s2994_s2 + $0x264] sm:$0xf]  ;;  %v1593_v61 = vld [vmem:[%s2994_s2 + $0x270] sm:$0xf0] }
  0x38   :  { %v1583_v62 = vld [vmem:[%s2994_s2 + $0x248] sm:$0xf]  ;;  %v1904_v2 = vld [vmem:[%s2994_s2 + $0x24c] sm:$0xf]  ;;  %v1585_v3 = vld [vmem:[%s2994_s2 + $0x258] sm:$0xf0] }
  0x39   :  { %534 = vmatpush.bf16.msrb.mxu2 %v1424_v34  ;;  %v1917_v34 = vld [vmem:[%s2994_s2 + $0x2ac] sm:$0xf0]  ;;  %v1575_v6 = vld [vmem:[%s2994_s2 + $0x240] sm:$0xf]  ;;  %v1903_v8 = vld [vmem:[%s2994_s2 + $0x244] sm:$0xf]  ;;  %v1588_v12 = vor.u32 %v1904_v2, %v1585_v3 }
  0x3a   :  { %553 = vmatpush.bf16.msrb.mxu3 %v1428_v39  ;;  %496 = vmatpush.bf16.msrb.mxu0 %v1416_v45  ;;  %v1914_v39 = vld [vmem:[%s2994_s2 + $0x294] sm:$0xf0]  ;;  %v1624_v41 = vor.u32 %v1917_v34, %v1623_v33  ;;  %v1905_v7 = vld [vmem:[%s2994_s2 + $0x24c] sm:$0xf0]  ;;  %v1567_v10 = vld [vmem:[%s2994_s2 + $0x228] sm:$0xf] }
  0x3b   :  { %515 = vmatpush.bf16.msrb.mxu1 %v1420_v47  ;;  %v1616_v45 = vor.u32 %v1914_v39, %v1615_v38  ;;  %v1913_v47 = vld [vmem:[%s2994_s2 + $0x28c] sm:$0xf0]  ;;  %v1902_v11 = vld [vmem:[%s2994_s2 + $0x234] sm:$0xf0]  ;;  %v1899_v21 = vld [vmem:[%s2994_s2 + $0x224] sm:$0xf] }
  0x3c   :  { %v1608_v53 = vor.u32 %v1913_v47, %v1607_v46  ;;  %v1568_v17 = vor.u32 %v1902_v11, %v1567_v10  ;;  %v1561_v22 = vld [vmem:[%s2994_s2 + $0x230] sm:$0xf0]  ;;  %v1551_v23 = vld [vmem:[%s2994_s2 + $0x208] sm:$0xf]  ;;  %v1898_v24 = vld [vmem:[%s2994_s2 + $0x214] sm:$0xf0] }
  0x3d   :  { %535 = vmatpush.bf16.msrb.mxu2 %v1408_v48  ;;  %v1911_v48 = vld [vmem:[%s2994_s2 + $0x284] sm:$0xf]  ;;  %v1823_v25 = vld [vmem:[%s2994_s2 + $0x3e8] sm:$0xf]  ;;  %v1958_v26 = vld [vmem:[%s2994_s2 + $0x3f4] sm:$0xf0]  ;;  %v1552_v33 = vor.u32 %v1898_v24, %v1551_v23 }
  0x3e   :  { %554 = vmatpush.bf16.msrb.mxu3 %v1412_v52  ;;  %497 = vmatpush.bf16.msrb.mxu0 %v1400_v59  ;;  %v1620_v52 = vor.u32 %v1912_v42, %v1617_v43  ;;  %v1612_v56 = vor.u32 %v1911_v48, %v1609_v49  ;;  %v1909_v59 = vld [vmem:[%s2994_s2 + $0x26c] sm:$0xf0]  ;;  %v1896_v29 = vld [vmem:[%s2994_s2 + $0x20c] sm:$0xf]  ;;  %v1553_v30 = vld [vmem:[%s2994_s2 + $0x218] sm:$0xf0]  ;;  %v1824_v38 = vor.u32 %v1958_v26, %v1823_v25 }
  0x3f   :  { %516 = vmatpush.bf16.msrb.mxu1 %v1404_v63  ;;  %v1906_v63 = vld [vmem:[%s2994_s2 + $0x254] sm:$0xf0]  ;;  %v1592_v1 = vor.u32 %v1909_v59, %v1591_v58  ;;  %v1897_v34 = vld [vmem:[%s2994_s2 + $0x20c] sm:$0xf0]  ;;  %v1895_v36 = vld [vmem:[%s2994_s2 + $0x204] sm:$0xf] }
  0x40   :  { %v1545_v37 = vld [vmem:[%s2994_s2 + $0x210] sm:$0xf0]  ;;  %v1956_v39 = vld [vmem:[%s2994_s2 + $0x3ec] sm:$0xf]  ;;  %v1957_v42 = vld [vmem:[%s2994_s2 + $0x3ec] sm:$0xf0] }
  0x41   :  { %536 = vmatpush.bf16.msrb.mxu2 %v1392_v0  ;;  %v1604_v0 = vor.u32 %v1908_v54, %v1601_v55  ;;  %v1955_v43 = vld [vmem:[%s2994_s2 + $0x3e4] sm:$0xf]  ;;  %v1807_v47 = vld [vmem:[%s2994_s2 + $0x3c8] sm:$0xf]  ;;  %v1954_v48 = vld [vmem:[%s2994_s2 + $0x3d4] sm:$0xf0]  ;;  %v1548_v49 = vor.u32 %v1895_v36, %v1545_v37 }
  0x42   :  { %555 = vmatpush.bf16.msrb.mxu3 %v1396_v4  ;;  %498 = vmatpush.bf16.msrb.mxu0 %v1384_v13  ;;  %v1596_v4 = vor.u32 %v1907_v60, %v1593_v61  ;;  %v1576_v13 = vor.u32 %v1905_v7, %v1575_v6  ;;  %v1809_v54 = vld [vmem:[%s2994_s2 + $0x3d8] sm:$0xf0]  ;;  %v1808_v55 = vor.u32 %v1954_v48, %v1807_v47  ;;  %v1951_v59 = vld [vmem:[%s2994_s2 + $0x3c4] sm:$0xf]  ;;  %v1801_v60 = vld [vmem:[%s2994_s2 + $0x3d0] sm:$0xf0] }
  0x43   :  { %517 = vmatpush.bf16.msrb.mxu1 %v1388_v14  ;;  %v1900_v14 = vld [vmem:[%s2994_s2 + $0x22c] sm:$0xf]  ;;  %v1791_v61 = vld [vmem:[%s2994_s2 + $0x3a8] sm:$0xf]  ;;  %v1804_v2 = vor.u32 %v1951_v59, %v1801_v60  ;;  %v1783_v3 = vld [vmem:[%s2994_s2 + $0x3a0] sm:$0xf] }
  0x44   :  { %537 = vmatmul.bf16.vlgmr.msrb.gmra.mxu2 %v2190_v35  ;;  %v1947_v7 = vld [vmem:[%s2994_s2 + $0x3a4] sm:$0xf]  ;;  %v1946_v10 = vld [vmem:[%s2994_s2 + $0x394] sm:$0xf0]  ;;  %v1944_v11 = vld [vmem:[%s2994_s2 + $0x38c] sm:$0xf] }
  0x45   :  { %798 = vmatpush.bf16.msra.mxu2 %v1664_v5  ;;  %499 = vmatmul.bf16.vlgmr.msrb.gmra.mxu0 %v2190_v35  ;;  %v1584_v5 = vor.u32 %v1906_v63, %v1583_v62  ;;  %v1950_v62 = vld [vmem:[%s2994_s2 + $0x3b4] sm:$0xf0]  ;;  %v1948_v63 = vld [vmem:[%s2994_s2 + $0x3ac] sm:$0xf]  ;;  %v1759_v23 = vld [vmem:[%s2994_s2 + $0x368] sm:$0xf] }
  0x46   :  { %817 = vmatpush.bf16.msra.mxu3 %v1668_v9  ;;  %760 = vmatpush.bf16.msra.mxu0 %v1656_v15  ;;  %v1577_v9 = vld [vmem:[%s2994_s2 + $0x250] sm:$0xf0]  ;;  %v1569_v15 = vld [vmem:[%s2994_s2 + $0x238] sm:$0xf0]  ;;  %v1942_v24 = vld [vmem:[%s2994_s2 + $0x374] sm:$0xf0] }
  0x47   :  { %779 = vmatpush.bf16.msra.mxu1 %v1660_v18  ;;  %556 = vmatmul.bf16.vlgmr.msrb.gmra.mxu3 %v2190_v35  ;;  %v1580_v16 = vor.u32 %v1903_v8, %v1577_v9  ;;  %v1559_v18 = vld [vmem:[%s2994_s2 + $0x220] sm:$0xf]  ;;  %v1785_v8 = vld [vmem:[%s2994_s2 + $0x3b0] sm:$0xf0]  ;;  %v1775_v9 = vld [vmem:[%s2994_s2 + $0x388] sm:$0xf] }
  0x48   :  { %518 = vmatmul.bf16.vlgmr.msrb.gmra.mxu1 %v2190_v35  ;;  %v1940_v25 = vld [vmem:[%s2994_s2 + $0x36c] sm:$0xf]  ;;  %v1761_v26 = vld [vmem:[%s2994_s2 + $0x378] sm:$0xf0]  ;;  %v1753_v36 = vld [vmem:[%s2994_s2 + $0x370] sm:$0xf0] }
  0x49   :  { %799 = vmatpush.bf16.msra.mxu2 %v1648_v19  ;;  %v1901_v19 = vld [vmem:[%s2994_s2 + $0x22c] sm:$0xf0]  ;;  %v1743_v37 = vld [vmem:[%s2994_s2 + $0x348] sm:$0xf]  ;;  %v1935_v47 = vld [vmem:[%s2994_s2 + $0x344] sm:$0xf] }
  0x4a   :  { %818 = vmatpush.bf16.msra.mxu3 %v1652_v27  ;;  %761 = vmatpush.bf16.msra.mxu0 %v1640_v28  ;;  %v1572_v27 = vor.u32 %v1900_v14, %v1569_v15  ;;  %v1560_v28 = vor.u32 %v1901_v19, %v1559_v18  ;;  %v1788_v14 = vor.u32 %v1947_v7, %v1785_v8  ;;  %v1767_v15 = vld [vmem:[%s2994_s2 + $0x380] sm:$0xf]  ;;  %v1737_v48 = vld [vmem:[%s2994_s2 + $0x350] sm:$0xf0]  ;;  %v1931_v59 = vld [vmem:[%s2994_s2 + $0x324] sm:$0xf] }
  0x4b   :  { %780 = vmatpush.bf16.msra.mxu1 %v1644_v31  ;;  %v1543_v31 = vld [vmem:[%s2994_s2 + $0x200] sm:$0xf]  ;;  %v1776_v18 = vor.u32 %v1946_v10, %v1775_v9  ;;  %v1721_v60 = vld [vmem:[%s2994_s2 + $0x330] sm:$0xf0]  ;;  %v1929_v8 = vld [vmem:[%s2994_s2 + $0x30c] sm:$0xf0] }
  0x4c   :  { %v1544_v46 = vor.u32 %v1897_v34, %v1543_v31  ;;  %v1941_v31 = vld [vmem:[%s2994_s2 + $0x36c] sm:$0xf0]  ;;  %v1939_v34 = vld [vmem:[%s2994_s2 + $0x364] sm:$0xf]  ;;  %v1705_v10 = vld [vmem:[%s2994_s2 + $0x310] sm:$0xf0] }
  0x4d   :  { %800 = vmatpush.bf16.msra.mxu2 %v1632_v32  ;;  %v1564_v32 = vor.u32 %v1899_v21, %v1561_v22  ;;  %v1943_v21 = vld [vmem:[%s2994_s2 + $0x384] sm:$0xf]  ;;  %v1769_v22 = vld [vmem:[%s2994_s2 + $0x390] sm:$0xf0] }
  0x4e   :  { %819 = vmatpush.bf16.msra.mxu3 %v1636_v40  ;;  %762 = vmatpush.bf16.msra.mxu0 %v1624_v41  ;;  %v1825_v40 = vld [vmem:[%s2994_s2 + $0x3f8] sm:$0xf0]  ;;  %v1815_v41 = vld [vmem:[%s2994_s2 + $0x3e0] sm:$0xf]  ;;  %v1927_v9 = vld [vmem:[%s2994_s2 + $0x304] sm:$0xf] }
  0x4f   :  { %781 = vmatpush.bf16.msra.mxu1 %v1628_v44  ;;  %v1817_v44 = vld [vmem:[%s2994_s2 + $0x3f0] sm:$0xf0]  ;;  %v1828_v50 = vor.u32 %v1956_v39, %v1825_v40  ;;  %v1816_v51 = vor.u32 %v1957_v42, %v1815_v41  ;;  %v1936_v39 = vld [vmem:[%s2994_s2 + $0x34c] sm:$0xf]  ;;  %v1745_v40 = vld [vmem:[%s2994_s2 + $0x358] sm:$0xf0]  ;;  %v1756_v42 = vor.u32 %v1939_v34, %v1753_v36 }
  0x51   :  { %801 = vmatpush.bf16.msra.mxu2 %v1616_v45  ;;  %v1556_v45 = vor.u32 %v1896_v29, %v1553_v30  ;;  %v1772_v29 = vor.u32 %v1943_v21, %v1769_v22  ;;  %v1751_v30 = vld [vmem:[%s2994_s2 + $0x360] sm:$0xf] }
  0x52   :  { %820 = vmatpush.bf16.msra.mxu3 %v1620_v52  ;;  %763 = vmatpush.bf16.msra.mxu0 %v1608_v53  ;;  %v1820_v52 = vor.u32 %v1955_v43, %v1817_v44  ;;  %v1952_v53 = vld [vmem:[%s2994_s2 + $0x3cc] sm:$0xf]  ;;  %v1752_v41 = vor.u32 %v1941_v31, %v1751_v30  ;;  %v1735_v43 = vld [vmem:[%s2994_s2 + $0x340] sm:$0xf]  ;;  %v1937_v44 = vld [vmem:[%s2994_s2 + $0x34c] sm:$0xf0] }
  0x53   :  { %782 = vmatpush.bf16.msra.mxu1 %v1612_v56  ;;  %v1799_v56 = vld [vmem:[%s2994_s2 + $0x3c0] sm:$0xf]  ;;  %v1812_v58 = vor.u32 %v1952_v53, %v1809_v54  ;;  %v1736_v53 = vor.u32 %v1937_v44, %v1735_v43  ;;  %v1740_v54 = vor.u32 %v1935_v47, %v1737_v48 }
  0x54   :  { %542 = vmatmul.bf16.gmra.mxu2 %v2295_v20 }
  0x55   :  { %802 = vmatpush.bf16.msra.mxu2 %v1600_v57  ;;  %504 = vmatmul.bf16.gmra.mxu0 %v2295_v20  ;;  %v1953_v57 = vld [vmem:[%s2994_s2 + $0x3cc] sm:$0xf0] }
  0x56   :  { %821 = vmatpush.bf16.msra.mxu3 %v1604_v0  ;;  %764 = vmatpush.bf16.msra.mxu0 %v1592_v1  ;;  %v1793_v0 = vld [vmem:[%s2994_s2 + $0x3b8] sm:$0xf0]  ;;  %v1800_v1 = vor.u32 %v1953_v57, %v1799_v56  ;;  %v1933_v56 = vld [vmem:[%s2994_s2 + $0x32c] sm:$0xf0] }
  0x57   :  { %783 = vmatpush.bf16.msra.mxu1 %v1596_v4  ;;  %561 = vmatmul.bf16.gmra.mxu3 %v2295_v20  ;;  %v1949_v4 = vld [vmem:[%s2994_s2 + $0x3ac] sm:$0xf0]  ;;  %v1796_v6 = vor.u32 %v1948_v63, %v1793_v0  ;;  %v1928_v63 = vld [vmem:[%s2994_s2 + $0x30c] sm:$0xf]  ;;  %v1713_v0 = vld [vmem:[%s2994_s2 + $0x318] sm:$0xf0] }
  0x58   :  { %523 = vmatmul.bf16.gmra.mxu1 %v2295_v20  ;;  %v1716_v7 = vor.u32 %v1928_v63, %v1713_v0 }
  0x59   :  { %803 = vmatpush.bf16.msra.mxu2 %v1584_v5  ;;  %v1792_v5 = vor.u32 %v1950_v62, %v1791_v61  ;;  %v1711_v61 = vld [vmem:[%s2994_s2 + $0x308] sm:$0xf]  ;;  %v1930_v62 = vld [vmem:[%s2994_s2 + $0x314] sm:$0xf0] }
  0x5a   :  { %822 = vmatpush.bf16.msra.mxu3 %v1588_v12  ;;  %765 = vmatpush.bf16.msra.mxu0 %v1576_v13  ;;  %v1777_v12 = vld [vmem:[%s2994_s2 + $0x398] sm:$0xf0]  ;;  %v1784_v13 = vor.u32 %v1949_v4, %v1783_v3  ;;  %v1724_v4 = vor.u32 %v1931_v59, %v1721_v60 }
  0x5b   :  { %784 = vmatpush.bf16.msra.mxu1 %v1580_v16  ;;  %v1945_v16 = vld [vmem:[%s2994_s2 + $0x38c] sm:$0xf0]  ;;  %v1780_v19 = vor.u32 %v1944_v11, %v1777_v12  ;;  %v1708_v12 = vor.u32 %v1927_v9, %v1705_v10 }
  0x5d   :  { %804 = vmatpush.bf16.msra.mxu2 %v1568_v17  ;;  %v1153_v17 = vld [vmem:[%s2996_s1] sm:$0xff] }
  0x5e   :  { %823 = vmatpush.bf16.msra.mxu3 %v1572_v27  ;;  %766 = vmatpush.bf16.msra.mxu0 %v1560_v28  ;;  %v1962_v27 = vmov 0   ;;  %v1768_v28 = vor.u32 %v1945_v16, %v1767_v15 }
  0x5f   :  { %785 = vmatpush.bf16.msra.mxu1 %v1564_v32  ;;  %1960 = vset.pattern.permute.xlu0 %v1962_v27  ;;  %v1760_v32 = vor.u32 %v1942_v24, %v1759_v23 }
  0x60   :  { %1961 = vset.pattern.permute.xlu1 %v1962_v27  ;;  %1159 = vperm.xlu0 %1960, %v1153_v17  }
  0x61   :  { %805 = vmatpush.bf16.msra.mxu2 %v1552_v33  ;;  %v1764_v33 = vor.u32 %v1940_v25, %v1761_v26 }
  0x62   :  { %824 = vmatpush.bf16.msra.mxu3 %v1556_v45  ;;  %767 = vmatpush.bf16.msra.mxu0 %v1544_v46  ;;  %v1748_v46 = vor.u32 %v1936_v39, %v1745_v40 }
  0x63   :  { %786 = vmatpush.bf16.msra.mxu1 %v1548_v49  ;;  %v1727_v49 = vld [vmem:[%s2994_s2 + $0x328] sm:$0xf] }
  0x64   :  { %806 = vmatmul.bf16.vlgmr.msra.gmra.mxu2 %v2190_v35 }
  0x65   :  { %1067 = vmatpush.bf16.msrb.mxu2 %v1824_v38  ;;  %768 = vmatmul.bf16.vlgmr.msra.gmra.mxu0 %v2190_v35  ;;  %v1938_v38 = vld [vmem:[%s2994_s2 + $0x354] sm:$0xf0] }
  0x66   :  { %1086 = vmatpush.bf16.msrb.mxu3 %v1828_v50  ;;  %1029 = vmatpush.bf16.msrb.mxu0 %v1816_v51  ;;  %v1744_v45 = vor.u32 %v1938_v38, %v1743_v37  ;;  %v1934_v50 = vld [vmem:[%s2994_s2 + $0x334] sm:$0xf0]  ;;  %v1932_v51 = vld [vmem:[%s2994_s2 + $0x32c] sm:$0xf] }
  0x67   :  { %1048 = vmatpush.bf16.msrb.mxu1 %v1820_v52  ;;  %825 = vmatmul.bf16.vlgmr.msra.gmra.mxu3 %v2190_v35  ;;  %v1729_v52 = vld [vmem:[%s2994_s2 + $0x338] sm:$0xf0]  ;;  %v1728_v57 = vor.u32 %v1934_v50, %v1727_v49 }
  0x68   :  { %787 = vmatmul.bf16.vlgmr.msra.gmra.mxu1 %v2190_v35 }
  0x69   :  { %1068 = vmatpush.bf16.msrb.mxu2 %v1808_v55  ;;  %v1719_v55 = vld [vmem:[%s2994_s2 + $0x320] sm:$0xf] }
  0x6a   :  { %1087 = vmatpush.bf16.msrb.mxu3 %v1812_v58  ;;  %1030 = vmatpush.bf16.msrb.mxu0 %v1800_v1  ;;  %v1732_v58 = vor.u32 %v1932_v51, %v1729_v52  ;;  %v1154_v1 = vld [vmem:[%s2996_s1 + $0x8] sm:$0xff]  ;;  %v1720_v3 = vor.u32 %v1933_v56, %v1719_v55 }
  0x6b   :  { %1049 = vmatpush.bf16.msrb.mxu1 %v1804_v2  ;;  %v1155_v2 = vld [vmem:[%s2996_s1 + $0x10] sm:$0xff]  ;;  %1164 = vperm.xlu0 %1960, %v1154_v1  }
  0x6c   :  { %1169 = vperm.xlu1 %1961, %v1155_v2  }
  0x6d   :  { %1069 = vmatpush.bf16.msrb.mxu2 %v1792_v5  ;;  %v1703_v5 = vld [vmem:[%s2994_s2 + $0x300] sm:$0xf] }
  0x6e   :  { %1088 = vmatpush.bf16.msrb.mxu3 %v1796_v6  ;;  %1031 = vmatpush.bf16.msrb.mxu0 %v1784_v13  ;;  %v1712_v6 = vor.u32 %v1930_v62, %v1711_v61  ;;  %v1704_v11 = vor.u32 %v1929_v8, %v1703_v5  ;;  %v1156_v13 = vld [vmem:[%s2996_s1 + $0x18] sm:$0xff] }
  0x6f   :  { %1050 = vmatpush.bf16.msrb.mxu1 %v1788_v14 }
  0x71   :  { %1070 = vmatpush.bf16.msrb.mxu2 %v1776_v18 }
  0x72   :  { %1089 = vmatpush.bf16.msrb.mxu3 %v1780_v19  ;;  %1032 = vmatpush.bf16.msrb.mxu0 %v1768_v28 }
  0x73   :  { %1051 = vmatpush.bf16.msrb.mxu1 %v1772_v29 }
  0x74   :  { %811 = vmatmul.bf16.gmra.mxu2 %v2295_v20  ;;  %1174 = vperm.xlu1 %1961, %v1156_v13  }
  0x75   :  { %1071 = vmatpush.bf16.msrb.mxu2 %v1760_v32  ;;  %773 = vmatmul.bf16.gmra.mxu0 %v2295_v20 }
  0x76   :  { %1090 = vmatpush.bf16.msrb.mxu3 %v1764_v33  ;;  %1033 = vmatpush.bf16.msrb.mxu0 %v1752_v41 }
  0x77   :  { %1052 = vmatpush.bf16.msrb.mxu1 %v1756_v42  ;;  %830 = vmatmul.bf16.gmra.mxu3 %v2295_v20 }
  0x78   :  { %792 = vmatmul.bf16.gmra.mxu1 %v2295_v20 }
  0x79   :  { %1072 = vmatpush.bf16.msrb.mxu2 %v1744_v45 }
  0x7a   :  { %1091 = vmatpush.bf16.msrb.mxu3 %v1748_v46  ;;  %1034 = vmatpush.bf16.msrb.mxu0 %v1736_v53 }
  0x7b   :  { %1053 = vmatpush.bf16.msrb.mxu1 %v1740_v54 }
  0x7d   :  { %1073 = vmatpush.bf16.msrb.mxu2 %v1728_v57 }
  0x7e   :  { %1092 = vmatpush.bf16.msrb.mxu3 %v1732_v58  ;;  %1035 = vmatpush.bf16.msrb.mxu0 %v1720_v3 }
  0x7f   :  { %1054 = vmatpush.bf16.msrb.mxu1 %v1724_v4 }
  0x81   :  { %1074 = vmatpush.bf16.msrb.mxu2 %v1712_v6 }
  0x82   :  { %1093 = vmatpush.bf16.msrb.mxu3 %v1716_v7  ;;  %1036 = vmatpush.bf16.msrb.mxu0 %v1704_v11 }
  0x83   :  { %1055 = vmatpush.bf16.msrb.mxu1 %v1708_v12 }
  0x84   :  { %1075 = vmatmul.bf16.vlgmr.msrb.gmra.mxu2 %v2190_v35 }
  0x85   :  { %1037 = vmatmul.bf16.vlgmr.msrb.gmra.mxu0 %v2190_v35 }
  0x87   :  { %1094 = vmatmul.bf16.vlgmr.msrb.gmra.mxu3 %v2190_v35 }
  0x88   :  { %1056 = vmatmul.bf16.vlgmr.msrb.gmra.mxu1 %v2190_v35 }
  0x94   :  { %1080 = vmatmul.bf16.gmra.mxu2 %v2295_v20 }
  0x95   :  { %1042 = vmatmul.bf16.gmra.mxu0 %v2295_v20 }
  0x97   :  { %1099 = vmatmul.bf16.gmra.mxu3 %v2295_v20 }
  0x98   :  { %1061 = vmatmul.bf16.gmra.mxu1 %v2295_v20 }
  0xa0   :  { %v2805_v14 = vpop.f32.mrf.mxu0 }
  0xa1   :  { %v2807_v15 = vpop.f32.mrf.mxu1 }
  0xa7   :  { %v2809_v16 = vpop.f32.mrf.mxu2 }
  0xa8   :  { %v2811_v35 = vpop.f32.mrf.mxu3  ;;  %v2813_v17 = vpop.f32.mrf.mxu0 }
  0xa9   :  { %v2815_v18 = vpop.f32.mrf.mxu1 }
  0xaf   :  { %v2817_v19 = vpop.f32.mrf.mxu2 }
  0xb0   :  { %v2819_v21 = vpop.f32.mrf.mxu3  ;;  %v2821_v22 = vpop.f32.mrf.mxu0 }
  0xb1   :  { %v2823_v23 = vpop.f32.mrf.mxu1 }
  0xb7   :  { %v2825_v20 = vpop.f32.mrf.mxu2 }
  0xb8   :  { %v2827_v24 = vpop.f32.mrf.mxu3  ;;  %v2829_v25 = vpop.f32.mrf.mxu0 }
  0xb9   :  { %v2831_v26 = vpop.f32.mrf.mxu1 }
  0xbf   :  { %v2833_v27 = vpop.f32.mrf.mxu2 }
  0xc0   :  { %v2835_v28 = vpop.f32.mrf.mxu3 }
  0xc2   :  { %v500_v29 = vpop.f32.mrf.mxu0 }
  0xc3   :  { %v1105_v30 = vmax.f32 %v2805_v14, %v500_v29 }
  0xc5   :  { %v519_v31 = vpop.f32.mrf.mxu1 }
  0xc6   :  { %v1106_v32 = vmax.f32 %v2807_v15, %v519_v31 }
  0xc7   :  { %v538_v33 = vpop.f32.mrf.mxu2 }
  0xc8   :  { %v1107_v34 = vmax.f32 %v2809_v16, %v538_v33 }
  0xca   :  { %v2840_v36 = vpop.f32.mrf.mxu3  ;;  %v2844_v38 = vpop.f32.mrf.mxu0 }
  0xcb   :  { %v1108_v37 = vmax.f32 %v2811_v35, %v2840_v36  ;;  %v1109_v39 = vmax.f32 %v2813_v17, %v2844_v38 }
  0xcd   :  { %v2848_v40 = vpop.f32.mrf.mxu1 }
  0xce   :  { %v1110_v41 = vmax.f32 %v2815_v18, %v2848_v40 }
  0xcf   :  { %v2852_v42 = vpop.f32.mrf.mxu2 }
  0xd0   :  { %v1111_v43 = vmax.f32 %v2817_v19, %v2852_v42 }
  0xd2   :  { %v2856_v44 = vpop.f32.mrf.mxu3  ;;  %v2860_v46 = vpop.f32.mrf.mxu0 }
  0xd3   :  { %v1112_v45 = vmax.f32 %v2819_v21, %v2856_v44  ;;  %v1113_v47 = vmax.f32 %v2821_v22, %v2860_v46  ;;  %v1160_v15 = vpop.permute.xlu0 %1159 }
  0xd5   :  { %v2864_v48 = vpop.f32.mrf.mxu1 }
  0xd6   :  { %v1114_v49 = vmax.f32 %v2823_v23, %v2864_v48 }
  0xd7   :  { %v2868_v50 = vpop.f32.mrf.mxu2 }
  0xda   :  { %v2872_v52 = vpop.f32.mrf.mxu3  ;;  %v2876_v54 = vpop.f32.mrf.mxu0 }
  0xdd   :  { %v2880_v56 = vpop.f32.mrf.mxu1 }
  0xdf   :  { %v2884_v58 = vpop.f32.mrf.mxu2 }
  0xe2   :  { %v2888_v60 = vpop.f32.mrf.mxu3  ;;  %v769_v62 = vpop.f32.mrf.mxu0 }
  0xe5   :  { %v788_v63 = vpop.f32.mrf.mxu1 }
  0xe7   :  { %v807_v0 = vpop.f32.mrf.mxu2 }
  0xea   :  { %v826_v1 = vpop.f32.mrf.mxu3  ;;  %v771_v2 = vpop.f32.mrf.mxu0 }
  0xed   :  { %v790_v3 = vpop.f32.mrf.mxu1 }
  0xef   :  { %v809_v4 = vpop.f32.mrf.mxu2 }
  0xf2   :  { %v828_v5 = vpop.f32.mrf.mxu3  ;;  %v774_v6 = vpop.f32.mrf.mxu0 }
  0xf5   :  { %v793_v7 = vpop.f32.mrf.mxu1 }
  0xf7   :  { %v2892_v8 = vpop.f32.mrf.mxu2 }
  0xfa   :  { %v2894_v9 = vpop.f32.mrf.mxu3  ;;  %v2896_v10 = vpop.f32.mrf.mxu0 }
  0xfd   :  { %v2898_v11 = vpop.f32.mrf.mxu1 }
  0xff   :  { %v2900_v12 = vpop.f32.mrf.mxu2 }
 0x102   :  { %v2902_v13 = vpop.f32.mrf.mxu3  ;;  %v1038_v14 = vpop.f32.mrf.mxu0 }
 0x103   :  { %v1121_v16 = vmax.f32 %v769_v62, %v1038_v14 }
 0x105   :  { %v1057_v35 = vpop.f32.mrf.mxu1  ;;  %v1137_v31 = vmax.f32 %v1105_v30, %v1121_v16  ;;  %v1165_v16 = vpop.permute.xlu0 %1164 }
 0x106   :  { %v1122_v29 = vmax.f32 %v788_v63, %v1057_v35 }
 0x107   :  { %v1177_v36 = vadd.f32 %v1160_v15, %v1137_v31  ;;  %v1076_v59 = vpop.f32.mrf.mxu2 }
 0x108   :  { %v1138_v33 = vmax.f32 %v1106_v32, %v1122_v29  ;;  %v1123_v57 = vmax.f32 %v807_v0, %v1076_v59 }
 0x109   :  { %1193 = vst [vmem:[%s2997_s3] sm:$0xff] %v1177_v36 }
 0x10a   :  { %v1178_v61 = vadd.f32 %v1160_v15, %v1138_v33  ;;  %v1095_v55 = vpop.f32.mrf.mxu3  ;;  %v1040_v51 = vpop.f32.mrf.mxu0  ;;  %v1139_v62 = vmax.f32 %v1107_v34, %v1123_v57  ;;  %v3003_v33 = vmax.f32 %v2835_v28, %v2888_v60 }
 0x10b   :  { %v1124_v53 = vmax.f32 %v826_v1, %v1095_v55  ;;  %v1125_v14 = vmax.f32 %v771_v2, %v1040_v51 }
 0x10c   :  { %1194 = vst [vmem:[%s2997_s3 + $0x8] sm:$0xff] %v1178_v61  ;;  %v1179_v35 = vadd.f32 %v1160_v15, %v1139_v62  ;;  %v1170_v61 = vpop.permute.xlu1 %1169 }
 0x10d   :  { %v1059_v63 = vpop.f32.mrf.mxu1  ;;  %v1140_v30 = vmax.f32 %v1108_v37, %v1124_v53  ;;  %v1141_v29 = vmax.f32 %v1109_v39, %v1125_v14 }
 0x10e   :  { %v1126_v32 = vmax.f32 %v790_v3, %v1059_v63  ;;  %1195 = vst [vmem:[%s2997_s3 + $0x10] sm:$0xff] %v1179_v35 }
 0x10f   :  { %v1180_v31 = vadd.f32 %v1160_v15, %v1140_v30  ;;  %v1181_v34 = vadd.f32 %v1165_v16, %v1141_v29  ;;  %v1078_v51 = vpop.f32.mrf.mxu2  ;;  %v3001_v15 = vmax.f32 %v2831_v26, %v2880_v56  ;;  %v3002_v56 = vmax.f32 %v2833_v27, %v2884_v58 }
 0x110   :  { %v1142_v59 = vmax.f32 %v1110_v41, %v1126_v32  ;;  %v1127_v17 = vmax.f32 %v809_v4, %v1078_v51 }
 0x111   :  { %1196 = vst [vmem:[%s2997_s3 + $0x18] sm:$0xff] %v1180_v31 }
 0x112   :  { %v1182_v37 = vadd.f32 %v1165_v16, %v1142_v59  ;;  %1197 = vst [vmem:[%s2997_s3 + $0x20] sm:$0xff] %v1181_v34  ;;  %v1097_v38 = vpop.f32.mrf.mxu3  ;;  %v1043_v39 = vpop.f32.mrf.mxu0  ;;  %v1143_v40 = vmax.f32 %v1111_v43, %v1127_v17 }
 0x113   :  { %v1128_v18 = vmax.f32 %v828_v5, %v1097_v38  ;;  %v1129_v41 = vmax.f32 %v774_v6, %v1043_v39 }
 0x114   :  { %1198 = vst [vmem:[%s2997_s3 + $0x28] sm:$0xff] %v1182_v37  ;;  %v1183_v0 = vadd.f32 %v1165_v16, %v1143_v40 }
 0x115   :  { %v1062_v53 = vpop.f32.mrf.mxu1  ;;  %v1144_v55 = vmax.f32 %v1112_v45, %v1128_v18  ;;  %v1145_v1 = vmax.f32 %v1113_v47, %v1129_v41  ;;  %v2998_v45 = vmax.f32 %v2825_v20, %v2868_v50  ;;  %v1175_v50 = vpop.permute.xlu1 %1174 }
 0x116   :  { %v1130_v57 = vmax.f32 %v793_v7, %v1062_v53  ;;  %1199 = vst [vmem:[%s2997_s3 + $0x30] sm:$0xff] %v1183_v0  ;;  %v3000_v7 = vmax.f32 %v2829_v25, %v2876_v54 }
 0x117   :  { %v1184_v2 = vadd.f32 %v1165_v16, %v1144_v55  ;;  %v1185_v19 = vadd.f32 %v1170_v61, %v1145_v1  ;;  %v1081_v42 = vpop.f32.mrf.mxu2 }
 0x118   :  { %v1146_v3 = vmax.f32 %v1114_v49, %v1130_v57  ;;  %v1131_v22 = vmax.f32 %v2892_v8, %v1081_v42  ;;  %v2999_v49 = vmax.f32 %v2827_v24, %v2872_v52 }
 0x119   :  { %1200 = vst [vmem:[%s2997_s3 + $0x38] sm:$0xff] %v1184_v2 }
 0x11a   :  { %v1186_v21 = vadd.f32 %v1170_v61, %v1146_v3  ;;  %1201 = vst [vmem:[%s2997_s3 + $0x40] sm:$0xff] %v1185_v19  ;;  %v1100_v43 = vpop.f32.mrf.mxu3  ;;  %v1045_v44 = vpop.f32.mrf.mxu0  ;;  %v1147_v46 = vmax.f32 %v2998_v45, %v1131_v22 }
 0x11b   :  { %v1132_v23 = vmax.f32 %v2894_v9, %v1100_v43  ;;  %v1133_v47 = vmax.f32 %v2896_v10, %v1045_v44 }
 0x11c   :  { %1202 = vst [vmem:[%s2997_s3 + $0x48] sm:$0xff] %v1186_v21  ;;  %v1187_v6 = vadd.f32 %v1170_v61, %v1147_v46 }
 0x11d   :  { %v1064_v48 = vpop.f32.mrf.mxu1  ;;  %v1148_v4 = vmax.f32 %v2999_v49, %v1132_v23  ;;  %v1149_v8 = vmax.f32 %v3000_v7, %v1133_v47 }
 0x11e   :  { %v1134_v5 = vmax.f32 %v2898_v11, %v1064_v48  ;;  %1203 = vst [vmem:[%s2997_s3 + $0x50] sm:$0xff] %v1187_v6 }
 0x11f   :  { %v1188_v9 = vadd.f32 %v1170_v61, %v1148_v4  ;;  %v1189_v10 = vadd.f32 %v1175_v50, %v1149_v8  ;;  %v1083_v52 = vpop.f32.mrf.mxu2 }
 0x120   :  { %v1150_v20 = vmax.f32 %v3001_v15, %v1134_v5  ;;  %v1135_v25 = vmax.f32 %v2900_v12, %v1083_v52 }
 0x121   :  { %1204 = vst [vmem:[%s2997_s3 + $0x58] sm:$0xff] %v1188_v9 }
 0x122   :  { %v1190_v24 = vadd.f32 %v1175_v50, %v1150_v20  ;;  %1205 = vst [vmem:[%s2997_s3 + $0x60] sm:$0xff] %v1189_v10  ;;  %v1102_v26 = vpop.f32.mrf.mxu3  ;;  %v1151_v11 = vmax.f32 %v3002_v56, %v1135_v25 }
 0x123   :  { %v1136_v54 = vmax.f32 %v2902_v13, %v1102_v26 }
 0x124   :  { %1206 = vst [vmem:[%s2997_s3 + $0x68] sm:$0xff] %v1190_v24  ;;  %v1191_v62 = vadd.f32 %v1175_v50, %v1151_v11 }
 0x125   :  { %v1152_v36 = vmax.f32 %v3003_v33, %v1136_v54 }
 0x126   :  { %1207 = vst [vmem:[%s2997_s3 + $0x70] sm:$0xff] %v1191_v62 }
 0x127   :  { %v1192_v14 = vadd.f32 %v1175_v50, %v1152_v36 }
 0x129   :  { %1208 = vst [vmem:[%s2997_s3 + $0x78] sm:$0xff] %v1192_v14 }

// kernel: model_forward.5
= control target key start
LH: loop header
LB: loop body
LE: loop exit
PB: predicated region body
PF: predicated region fallthrough
CT: control target
= control target key end

     0   :  { %s4972_s2 = inlined_call_operand.vmem [shape: bf16[4,896,128], index: 2, kind: input, shape index: {}]   ;;  %s4973_s0 = inlined_call_operand.vmem [shape: bf16[32,896], index: 0, kind: input, shape index: {}]   ;;  %s4974_s1 = inlined_call_operand.vmem [shape: f32[32,1], index: 1, kind: input, shape index: {}]   ;;  %s4975_s3 = inlined_call_operand.vmem [shape: f32[32,128], index: 3, kind: output, shape index: {}]  }
   0x1   :  { %v3786_v0 = vld [vmem:[%s4972_s2 + $0x38] sm:$0xff]  ;;  %v3785_v4 = vld [vmem:[%s4972_s2 + $0x30] sm:$0xff]  ;;  %v3784_v8 = vld [vmem:[%s4972_s2 + $0x28] sm:$0xff] }
   0x2   :  { %v3794_v1 = vld [vmem:[%s4972_s2 + $0x78] sm:$0xff]  ;;  %550 = vmatpush.bf16.msra.mxu0 %v3786_v0  ;;  %v3793_v5 = vld [vmem:[%s4972_s2 + $0x70] sm:$0xff]  ;;  %v3792_v9 = vld [vmem:[%s4972_s2 + $0x68] sm:$0xff] }
   0x3   :  { %v3802_v2 = vld [vmem:[%s4972_s2 + $0xb8] sm:$0xff]  ;;  %569 = vmatpush.bf16.msra.mxu1 %v3794_v1  ;;  %v3801_v6 = vld [vmem:[%s4972_s2 + $0xb0] sm:$0xff]  ;;  %v3800_v10 = vld [vmem:[%s4972_s2 + $0xa8] sm:$0xff] }
   0x4   :  { %v3810_v3 = vld [vmem:[%s4972_s2 + $0xf8] sm:$0xff]  ;;  %588 = vmatpush.bf16.msra.mxu2 %v3802_v2  ;;  %v3809_v7 = vld [vmem:[%s4972_s2 + $0xf0] sm:$0xff]  ;;  %v3808_v11 = vld [vmem:[%s4972_s2 + $0xe8] sm:$0xff] }
   0x5   :  { %607 = vmatpush.bf16.msra.mxu3 %v3810_v3  ;;  %v3783_v12 = vld [vmem:[%s4972_s2 + $0x20] sm:$0xff]  ;;  %v3782_v16 = vld [vmem:[%s4972_s2 + $0x18] sm:$0xff]  ;;  %v3781_v20 = vld [vmem:[%s4972_s2 + $0x10] sm:$0xff] }
   0x6   :  { %551 = vmatpush.bf16.msra.mxu0 %v3785_v4  ;;  %v3791_v13 = vld [vmem:[%s4972_s2 + $0x60] sm:$0xff]  ;;  %v3790_v17 = vld [vmem:[%s4972_s2 + $0x58] sm:$0xff]  ;;  %v3789_v21 = vld [vmem:[%s4972_s2 + $0x50] sm:$0xff] }
   0x7   :  { %570 = vmatpush.bf16.msra.mxu1 %v3793_v5  ;;  %v3799_v14 = vld [vmem:[%s4972_s2 + $0xa0] sm:$0xff]  ;;  %v3798_v18 = vld [vmem:[%s4972_s2 + $0x98] sm:$0xff]  ;;  %v3797_v22 = vld [vmem:[%s4972_s2 + $0x90] sm:$0xff] }
   0x8   :  { %589 = vmatpush.bf16.msra.mxu2 %v3801_v6  ;;  %v3807_v15 = vld [vmem:[%s4972_s2 + $0xe0] sm:$0xff]  ;;  %v3806_v19 = vld [vmem:[%s4972_s2 + $0xd8] sm:$0xff]  ;;  %v3805_v23 = vld [vmem:[%s4972_s2 + $0xd0] sm:$0xff] }
   0x9   :  { %608 = vmatpush.bf16.msra.mxu3 %v3809_v7  ;;  %v3780_v24 = vld [vmem:[%s4972_s2 + $0x8] sm:$0xff]  ;;  %v3779_v28 = vld [vmem:[%s4972_s2] sm:$0xff]  ;;  %v3768_v33 = vld [vmem:[%s4973_s0 + $0x18] sm:$0xf0] }
   0xa   :  { %552 = vmatpush.bf16.msra.mxu0 %v3784_v8  ;;  %v3788_v25 = vld [vmem:[%s4972_s2 + $0x48] sm:$0xff]  ;;  %v3787_v29 = vld [vmem:[%s4972_s2 + $0x40] sm:$0xff]  ;;  %v3834_v40 = vld [vmem:[%s4972_s2 + $0x1b8] sm:$0xff] }
   0xb   :  { %571 = vmatpush.bf16.msra.mxu1 %v3792_v9  ;;  %v3796_v26 = vld [vmem:[%s4972_s2 + $0x88] sm:$0xff]  ;;  %v3795_v30 = vld [vmem:[%s4972_s2 + $0x80] sm:$0xff]  ;;  %v3818_v41 = vld [vmem:[%s4972_s2 + $0x138] sm:$0xff] }
   0xc   :  { %590 = vmatpush.bf16.msra.mxu2 %v3800_v10  ;;  %v3804_v27 = vld [vmem:[%s4972_s2 + $0xc8] sm:$0xff]  ;;  %v3803_v31 = vld [vmem:[%s4972_s2 + $0xc0] sm:$0xff]  ;;  %v3826_v46 = vld [vmem:[%s4972_s2 + $0x178] sm:$0xff] }
   0xd   :  { %609 = vmatpush.bf16.msra.mxu3 %v3808_v11  ;;  %v2479_v32 = vld [vmem:[%s4973_s0] sm:$0xf]  ;;  %v3765_v34 = vld [vmem:[%s4973_s0 + $0x4] sm:$0xf]  ;;  %v2487_v36 = vld [vmem:[%s4973_s0 + $0x8] sm:$0xf] }
   0xe   :  { %553 = vmatpush.bf16.msra.mxu0 %v3783_v12  ;;  %v2481_v35 = vld [vmem:[%s4973_s0 + $0x1c] sm:$0xf0]  ;;  %v3769_v37 = vld [vmem:[%s4973_s0 + $0x20] sm:$0xf0]  ;;  %v3766_v38 = vld [vmem:[%s4973_s0 + $0xc] sm:$0xf]  ;;  %v4153_v42 = vor.u32 %v3768_v33, %v2479_v32 }
   0xf   :  { %572 = vmatpush.bf16.msra.mxu1 %v3791_v13  ;;  %v2489_v39 = vld [vmem:[%s4973_s0 + $0x24] sm:$0xf0]  ;;  %v4155_v43 = vor.u32 %v3765_v34, %v2481_v35  ;;  %v4157_v44 = vor.u32 %v3769_v37, %v2487_v36  ;;  %v3842_v47 = vld [vmem:[%s4972_s2 + $0x1f8] sm:$0xff]  ;;  %v3833_v48 = vld [vmem:[%s4972_s2 + $0x1b0] sm:$0xff] }
  0x10   :  { %591 = vmatpush.bf16.msra.mxu2 %v3799_v14  ;;  %v4159_v45 = vor.u32 %v3766_v38, %v2489_v39  ;;  %v3817_v49 = vld [vmem:[%s4972_s2 + $0x130] sm:$0xff]  ;;  %v3832_v52 = vld [vmem:[%s4972_s2 + $0x1a8] sm:$0xff]  ;;  %v3831_v56 = vld [vmem:[%s4972_s2 + $0x1a0] sm:$0xff] }
  0x11   :  { %610 = vmatpush.bf16.msra.mxu3 %v3807_v15  ;;  %v3825_v50 = vld [vmem:[%s4972_s2 + $0x170] sm:$0xff]  ;;  %v3816_v53 = vld [vmem:[%s4972_s2 + $0x128] sm:$0xff]  ;;  %v3815_v57 = vld [vmem:[%s4972_s2 + $0x120] sm:$0xff] }
  0x12   :  { %554 = vmatpush.bf16.msra.mxu0 %v3782_v16  ;;  %v3841_v51 = vld [vmem:[%s4972_s2 + $0x1f0] sm:$0xff]  ;;  %v3824_v54 = vld [vmem:[%s4972_s2 + $0x168] sm:$0xff]  ;;  %v3823_v58 = vld [vmem:[%s4972_s2 + $0x160] sm:$0xff] }
  0x13   :  { %573 = vmatpush.bf16.msra.mxu1 %v3790_v17  ;;  %v3840_v55 = vld [vmem:[%s4972_s2 + $0x1e8] sm:$0xff]  ;;  %v3839_v59 = vld [vmem:[%s4972_s2 + $0x1e0] sm:$0xff]  ;;  %v2507_v60 = vld [vmem:[%s4973_s0 + $0x38] sm:$0xf] }
  0x14   :  { %592 = vmatpush.bf16.msra.mxu2 %v3798_v18  ;;  %v3775_v61 = vld [vmem:[%s4973_s0 + $0x50] sm:$0xf0]  ;;  %v3772_v62 = vld [vmem:[%s4973_s0 + $0x3c] sm:$0xf]  ;;  %v2509_v63 = vld [vmem:[%s4973_s0 + $0x54] sm:$0xf0] }
  0x15   :  { %611 = vmatpush.bf16.msra.mxu3 %v3806_v19  ;;  %v2515_v0 = vld [vmem:[%s4973_s0 + $0x40] sm:$0xf]  ;;  %v3776_v1 = vld [vmem:[%s4973_s0 + $0x58] sm:$0xf0]  ;;  %v3773_v2 = vld [vmem:[%s4973_s0 + $0x44] sm:$0xf]  ;;  %v4237_v6 = vor.u32 %v3775_v61, %v2507_v60  ;;  %v4239_v7 = vor.u32 %v3772_v62, %v2509_v63 }
  0x16   :  { %555 = vmatpush.bf16.msra.mxu0 %v3781_v20  ;;  %v2517_v3 = vld [vmem:[%s4973_s0 + $0x5c] sm:$0xf0]  ;;  %v3830_v4 = vld [vmem:[%s4972_s2 + $0x198] sm:$0xff]  ;;  %v4241_v8 = vor.u32 %v3776_v1, %v2515_v0  ;;  %v3829_v12 = vld [vmem:[%s4972_s2 + $0x190] sm:$0xff] }
  0x17   :  { %574 = vmatpush.bf16.msra.mxu1 %v3789_v21  ;;  %v3814_v5 = vld [vmem:[%s4972_s2 + $0x118] sm:$0xff]  ;;  %v4243_v9 = vor.u32 %v3773_v2, %v2517_v3  ;;  %v3813_v13 = vld [vmem:[%s4972_s2 + $0x110] sm:$0xff]  ;;  %v3828_v16 = vld [vmem:[%s4972_s2 + $0x188] sm:$0xff] }
  0x18   :  { %593 = vmatpush.bf16.msra.mxu2 %v3797_v22  ;;  %v3822_v10 = vld [vmem:[%s4972_s2 + $0x158] sm:$0xff]  ;;  %v3821_v14 = vld [vmem:[%s4972_s2 + $0x150] sm:$0xff]  ;;  %v3812_v17 = vld [vmem:[%s4972_s2 + $0x108] sm:$0xff] }
  0x19   :  { %612 = vmatpush.bf16.msra.mxu3 %v3805_v23  ;;  %v3838_v11 = vld [vmem:[%s4972_s2 + $0x1d8] sm:$0xff]  ;;  %v3837_v15 = vld [vmem:[%s4972_s2 + $0x1d0] sm:$0xff]  ;;  %v3820_v18 = vld [vmem:[%s4972_s2 + $0x148] sm:$0xff] }
  0x1a   :  { %556 = vmatpush.bf16.msra.mxu0 %v3780_v24  ;;  %v3836_v19 = vld [vmem:[%s4972_s2 + $0x1c8] sm:$0xff]  ;;  %v3827_v20 = vld [vmem:[%s4972_s2 + $0x180] sm:$0xff]  ;;  %v3866_v24 = vld [vmem:[%s4972_s2 + $0x2b8] sm:$0xff] }
  0x1b   :  { %575 = vmatpush.bf16.msra.mxu1 %v3788_v25  ;;  %v3811_v21 = vld [vmem:[%s4972_s2 + $0x100] sm:$0xff]  ;;  %v3850_v25 = vld [vmem:[%s4972_s2 + $0x238] sm:$0xff]  ;;  %v3865_v35 = vld [vmem:[%s4972_s2 + $0x2b0] sm:$0xff] }
  0x1c   :  { %594 = vmatpush.bf16.msra.mxu2 %v3796_v26  ;;  %v3819_v22 = vld [vmem:[%s4972_s2 + $0x140] sm:$0xff]  ;;  %v2495_v26 = vld [vmem:[%s4973_s0 + $0x10] sm:$0xf]  ;;  %v3858_v32 = vld [vmem:[%s4972_s2 + $0x278] sm:$0xff] }
  0x1d   :  { %613 = vmatpush.bf16.msra.mxu3 %v3804_v27  ;;  %v3835_v23 = vld [vmem:[%s4972_s2 + $0x1c0] sm:$0xff]  ;;  %v3770_v27 = vld [vmem:[%s4973_s0 + $0x28] sm:$0xf0]  ;;  %v3874_v33 = vld [vmem:[%s4972_s2 + $0x2f8] sm:$0xff] }
  0x1e   :  { %557 = vmatpush.bf16.msra.mxu0 %v3779_v28  ;;  %v3767_v28 = vld [vmem:[%s4973_s0 + $0x14] sm:$0xf]  ;;  %v4321_v34 = vor.u32 %v3770_v27, %v2495_v26  ;;  %v3846_v60 = vld [vmem:[%s4972_s2 + $0x218] sm:$0xff]  ;;  %v3896_v26 = vld [vmem:[%s4972_s2 + $0x3a8] sm:$0xff] }
  0x1f   :  { %576 = vmatpush.bf16.msra.mxu1 %v3787_v29  ;;  %v2497_v29 = vld [vmem:[%s4973_s0 + $0x2c] sm:$0xf0]  ;;  %v3854_v61 = vld [vmem:[%s4972_s2 + $0x258] sm:$0xff]  ;;  %v3888_v27 = vld [vmem:[%s4972_s2 + $0x368] sm:$0xff] }
  0x20   :  { %595 = vmatpush.bf16.msra.mxu2 %v3795_v30  ;;  %v2503_v30 = vld [vmem:[%s4973_s0 + $0x18] sm:$0xf]  ;;  %v4326_v36 = vor.u32 %v3767_v28, %v2497_v29  ;;  %v3849_v38 = vld [vmem:[%s4972_s2 + $0x230] sm:$0xff]  ;;  %v3880_v28 = vld [vmem:[%s4972_s2 + $0x328] sm:$0xff] }
  0x21   :  { %614 = vmatpush.bf16.msra.mxu3 %v3803_v31  ;;  %558 = vmatmul.bf16.vlgmr.msra.gmra.mxu0 %v4153_v42  ;;  %v3771_v31 = vld [vmem:[%s4973_s0 + $0x30] sm:$0xf0]  ;;  %v3870_v62 = vld [vmem:[%s4972_s2 + $0x2d8] sm:$0xff]  ;;  %v3904_v29 = vld [vmem:[%s4972_s2 + $0x3e8] sm:$0xff] }
  0x22   :  { %626 = vmatpush.bf16.msrb.mxu0 %v3818_v41  ;;  %577 = vmatmul.bf16.vlgmr.msra.gmra.mxu1 %v4155_v43  ;;  %v4328_v37 = vor.u32 %v3771_v31, %v2503_v30  ;;  %v3857_v39 = vld [vmem:[%s4972_s2 + $0x270] sm:$0xff]  ;;  %v3864_v41 = vld [vmem:[%s4972_s2 + $0x2a8] sm:$0xff]  ;;  %v3895_v30 = vld [vmem:[%s4972_s2 + $0x3a0] sm:$0xff] }
  0x23   :  { %596 = vmatmul.bf16.vlgmr.msra.gmra.mxu2 %v4157_v44  ;;  %645 = vmatpush.bf16.msrb.mxu1 %v3826_v46  ;;  %v3848_v46 = vld [vmem:[%s4972_s2 + $0x228] sm:$0xff]  ;;  %v3861_v0 = vld [vmem:[%s4972_s2 + $0x290] sm:$0xff]  ;;  %v3887_v31 = vld [vmem:[%s4972_s2 + $0x360] sm:$0xff] }
  0x24   :  { %664 = vmatpush.bf16.msrb.mxu2 %v3834_v40  ;;  %615 = vmatmul.bf16.vlgmr.msra.gmra.mxu3 %v4159_v45  ;;  %v3873_v40 = vld [vmem:[%s4972_s2 + $0x2f0] sm:$0xff] }
  0x25   :  { %1132 = vmatpush.bf16.msrb.mxu3 %v3842_v47  ;;  %v3856_v47 = vld [vmem:[%s4972_s2 + $0x268] sm:$0xff]  ;;  %v3845_v3 = vld [vmem:[%s4972_s2 + $0x210] sm:$0xff] }
  0x26   :  { %627 = vmatpush.bf16.msrb.mxu0 %v3817_v49  ;;  %v3863_v49 = vld [vmem:[%s4972_s2 + $0x2a0] sm:$0xff] }
  0x27   :  { %646 = vmatpush.bf16.msrb.mxu1 %v3825_v50  ;;  %v3847_v50 = vld [vmem:[%s4972_s2 + $0x220] sm:$0xff] }
  0x28   :  { %665 = vmatpush.bf16.msrb.mxu2 %v3833_v48  ;;  %v3872_v48 = vld [vmem:[%s4972_s2 + $0x2e8] sm:$0xff] }
  0x29   :  { %1133 = vmatpush.bf16.msrb.mxu3 %v3841_v51  ;;  %v3855_v51 = vld [vmem:[%s4972_s2 + $0x260] sm:$0xff] }
  0x2a   :  { %628 = vmatpush.bf16.msrb.mxu0 %v3816_v53  ;;  %v2523_v53 = vld [vmem:[%s4973_s0 + $0x48] sm:$0xf] }
  0x2b   :  { %647 = vmatpush.bf16.msrb.mxu1 %v3824_v54  ;;  %v3862_v54 = vld [vmem:[%s4972_s2 + $0x298] sm:$0xff] }
  0x2c   :  { %666 = vmatpush.bf16.msrb.mxu2 %v3832_v52  ;;  %v3871_v52 = vld [vmem:[%s4972_s2 + $0x2e0] sm:$0xff] }
  0x2d   :  { %1134 = vmatpush.bf16.msrb.mxu3 %v3840_v55  ;;  %v3777_v55 = vld [vmem:[%s4973_s0 + $0x60] sm:$0xf0] }
  0x2e   :  { %629 = vmatpush.bf16.msrb.mxu0 %v3815_v57  ;;  %v2525_v57 = vld [vmem:[%s4973_s0 + $0x64] sm:$0xf0]  ;;  %v4397_v63 = vor.u32 %v3777_v55, %v2523_v53  ;;  %v3891_v53 = vld [vmem:[%s4972_s2 + $0x380] sm:$0xff]  ;;  %v3930_v55 = vld [vmem:[%s4972_s2 + $0x4b8] sm:$0xff] }
  0x2f   :  { %648 = vmatpush.bf16.msrb.mxu1 %v3823_v58  ;;  %v2531_v58 = vld [vmem:[%s4973_s0 + $0x50] sm:$0xf] }
  0x30   :  { %667 = vmatpush.bf16.msrb.mxu2 %v3831_v56  ;;  %v3774_v56 = vld [vmem:[%s4973_s0 + $0x4c] sm:$0xf] }
  0x31   :  { %1135 = vmatpush.bf16.msrb.mxu3 %v3839_v59  ;;  %563 = vmatmul.bf16.gmra.mxu0 %v4237_v6  ;;  %v3778_v59 = vld [vmem:[%s4973_s0 + $0x68] sm:$0xf0]  ;;  %v4402_v1 = vor.u32 %v3774_v56, %v2525_v57  ;;  %v3922_v56 = vld [vmem:[%s4972_s2 + $0x478] sm:$0xff]  ;;  %v3875_v57 = vld [vmem:[%s4972_s2 + $0x300] sm:$0xff] }
  0x32   :  { %630 = vmatpush.bf16.msrb.mxu0 %v3814_v5  ;;  %582 = vmatmul.bf16.gmra.mxu1 %v4239_v7  ;;  %v4404_v2 = vor.u32 %v3778_v59, %v2531_v58  ;;  %v3869_v5 = vld [vmem:[%s4972_s2 + $0x2d0] sm:$0xff]  ;;  %v3899_v58 = vld [vmem:[%s4972_s2 + $0x3c0] sm:$0xff]  ;;  %v3914_v59 = vld [vmem:[%s4972_s2 + $0x438] sm:$0xff] }
  0x33   :  { %601 = vmatmul.bf16.gmra.mxu2 %v4241_v8  ;;  %649 = vmatpush.bf16.msrb.mxu1 %v3822_v10  ;;  %v3860_v10 = vld [vmem:[%s4972_s2 + $0x288] sm:$0xff] }
  0x34   :  { %668 = vmatpush.bf16.msrb.mxu2 %v3830_v4  ;;  %620 = vmatmul.bf16.gmra.mxu3 %v4243_v9  ;;  %v3853_v4 = vld [vmem:[%s4972_s2 + $0x250] sm:$0xff] }
  0x35   :  { %1136 = vmatpush.bf16.msrb.mxu3 %v3838_v11  ;;  %v3844_v11 = vld [vmem:[%s4972_s2 + $0x208] sm:$0xff] }
  0x36   :  { %631 = vmatpush.bf16.msrb.mxu0 %v3813_v13  ;;  %v3868_v13 = vld [vmem:[%s4972_s2 + $0x2c8] sm:$0xff] }
  0x37   :  { %650 = vmatpush.bf16.msrb.mxu1 %v3821_v14  ;;  %v3859_v14 = vld [vmem:[%s4972_s2 + $0x280] sm:$0xff] }
  0x38   :  { %669 = vmatpush.bf16.msrb.mxu2 %v3829_v12  ;;  %v3852_v12 = vld [vmem:[%s4972_s2 + $0x248] sm:$0xff] }
  0x39   :  { %1137 = vmatpush.bf16.msrb.mxu3 %v3837_v15  ;;  %v3898_v15 = vld [vmem:[%s4972_s2 + $0x3b8] sm:$0xff] }
  0x3a   :  { %632 = vmatpush.bf16.msrb.mxu0 %v3812_v17  ;;  %v3851_v17 = vld [vmem:[%s4972_s2 + $0x240] sm:$0xff] }
  0x3b   :  { %651 = vmatpush.bf16.msrb.mxu1 %v3820_v18  ;;  %v3867_v18 = vld [vmem:[%s4972_s2 + $0x2c0] sm:$0xff] }
  0x3c   :  { %670 = vmatpush.bf16.msrb.mxu2 %v3828_v16  ;;  %v3843_v16 = vld [vmem:[%s4972_s2 + $0x200] sm:$0xff] }
  0x3d   :  { %1138 = vmatpush.bf16.msrb.mxu3 %v3836_v19  ;;  %v3882_v19 = vld [vmem:[%s4972_s2 + $0x338] sm:$0xff] }
  0x3e   :  { %633 = vmatpush.bf16.msrb.mxu0 %v3811_v21  ;;  %v3906_v21 = vld [vmem:[%s4972_s2 + $0x3f8] sm:$0xff] }
  0x3f   :  { %652 = vmatpush.bf16.msrb.mxu1 %v3819_v22  ;;  %v3897_v22 = vld [vmem:[%s4972_s2 + $0x3b0] sm:$0xff] }
  0x40   :  { %671 = vmatpush.bf16.msrb.mxu2 %v3827_v20  ;;  %v3890_v20 = vld [vmem:[%s4972_s2 + $0x378] sm:$0xff] }
  0x41   :  { %1139 = vmatpush.bf16.msrb.mxu3 %v3835_v23  ;;  %634 = vmatmul.bf16.vlgmr.msrb.gmra.mxu0 %v4321_v34  ;;  %v3889_v23 = vld [vmem:[%s4972_s2 + $0x370] sm:$0xff] }
  0x42   :  { %1151 = vmatpush.bf16.msra.mxu0 %v3850_v25  ;;  %653 = vmatmul.bf16.vlgmr.msrb.gmra.mxu1 %v4326_v36  ;;  %v3905_v25 = vld [vmem:[%s4972_s2 + $0x3f0] sm:$0xff] }
  0x43   :  { %1170 = vmatpush.bf16.msra.mxu1 %v3858_v32  ;;  %672 = vmatmul.bf16.vlgmr.msrb.gmra.mxu2 %v4328_v37  ;;  %v3879_v32 = vld [vmem:[%s4972_s2 + $0x320] sm:$0xff] }
  0x44   :  { %1189 = vmatpush.bf16.msra.mxu2 %v3866_v24  ;;  %1140 = vmatmul.bf16.vlgmr.msrb.gmra.mxu3 %v4153_v42  ;;  %v3881_v24 = vld [vmem:[%s4972_s2 + $0x330] sm:$0xff] }
  0x45   :  { %1208 = vmatpush.bf16.msra.mxu3 %v3874_v33  ;;  %v3903_v33 = vld [vmem:[%s4972_s2 + $0x3e0] sm:$0xff] }
  0x46   :  { %1152 = vmatpush.bf16.msra.mxu0 %v3849_v38  ;;  %v3886_v38 = vld [vmem:[%s4972_s2 + $0x358] sm:$0xff] }
  0x47   :  { %1171 = vmatpush.bf16.msra.mxu1 %v3857_v39  ;;  %v3878_v39 = vld [vmem:[%s4972_s2 + $0x318] sm:$0xff] }
  0x48   :  { %1190 = vmatpush.bf16.msra.mxu2 %v3865_v35  ;;  %v3894_v35 = vld [vmem:[%s4972_s2 + $0x398] sm:$0xff] }
  0x49   :  { %1209 = vmatpush.bf16.msra.mxu3 %v3873_v40  ;;  %v3902_v40 = vld [vmem:[%s4972_s2 + $0x3d8] sm:$0xff] }
  0x4a   :  { %1153 = vmatpush.bf16.msra.mxu0 %v3848_v46  ;;  %v3885_v46 = vld [vmem:[%s4972_s2 + $0x350] sm:$0xff] }
  0x4b   :  { %1172 = vmatpush.bf16.msra.mxu1 %v3856_v47  ;;  %v3877_v47 = vld [vmem:[%s4972_s2 + $0x310] sm:$0xff] }
  0x4c   :  { %1191 = vmatpush.bf16.msra.mxu2 %v3864_v41  ;;  %v3893_v41 = vld [vmem:[%s4972_s2 + $0x390] sm:$0xff] }
  0x4d   :  { %1210 = vmatpush.bf16.msra.mxu3 %v3872_v48  ;;  %v3901_v48 = vld [vmem:[%s4972_s2 + $0x3d0] sm:$0xff] }
  0x4e   :  { %1154 = vmatpush.bf16.msra.mxu0 %v3847_v50  ;;  %v3884_v50 = vld [vmem:[%s4972_s2 + $0x348] sm:$0xff] }
  0x4f   :  { %1173 = vmatpush.bf16.msra.mxu1 %v3855_v51  ;;  %v3876_v51 = vld [vmem:[%s4972_s2 + $0x308] sm:$0xff] }
  0x50   :  { %1192 = vmatpush.bf16.msra.mxu2 %v3863_v49  ;;  %v3892_v49 = vld [vmem:[%s4972_s2 + $0x388] sm:$0xff] }
  0x51   :  { %1211 = vmatpush.bf16.msra.mxu3 %v3871_v52  ;;  %639 = vmatmul.bf16.gmra.mxu0 %v4397_v63  ;;  %v3900_v52 = vld [vmem:[%s4972_s2 + $0x3c8] sm:$0xff] }
  0x52   :  { %1155 = vmatpush.bf16.msra.mxu0 %v3846_v60  ;;  %658 = vmatmul.bf16.gmra.mxu1 %v4402_v1  ;;  %v3938_v60 = vld [vmem:[%s4972_s2 + $0x4f8] sm:$0xff] }
  0x53   :  { %1174 = vmatpush.bf16.msra.mxu1 %v3854_v61  ;;  %677 = vmatmul.bf16.gmra.mxu2 %v4404_v2  ;;  %v3929_v61 = vld [vmem:[%s4972_s2 + $0x4b0] sm:$0xff] }
  0x54   :  { %1193 = vmatpush.bf16.msra.mxu2 %v3862_v54  ;;  %1145 = vmatmul.bf16.gmra.mxu3 %v4237_v6  ;;  %v3883_v54 = vld [vmem:[%s4972_s2 + $0x340] sm:$0xff] }
  0x55   :  { %1212 = vmatpush.bf16.msra.mxu3 %v3870_v62  ;;  %v3921_v62 = vld [vmem:[%s4972_s2 + $0x470] sm:$0xff] }
  0x56   :  { %1156 = vmatpush.bf16.msra.mxu0 %v3845_v3  ;;  %v3937_v3 = vld [vmem:[%s4972_s2 + $0x4f0] sm:$0xff] }
  0x57   :  { %1175 = vmatpush.bf16.msra.mxu1 %v3853_v4  ;;  %v3928_v4 = vld [vmem:[%s4972_s2 + $0x4a8] sm:$0xff] }
  0x58   :  { %1194 = vmatpush.bf16.msra.mxu2 %v3861_v0  ;;  %v3913_v0 = vld [vmem:[%s4972_s2 + $0x430] sm:$0xff] }
  0x59   :  { %1213 = vmatpush.bf16.msra.mxu3 %v3869_v5  ;;  %v3912_v5 = vld [vmem:[%s4972_s2 + $0x428] sm:$0xff] }
  0x5a   :  { %1157 = vmatpush.bf16.msra.mxu0 %v3844_v11  ;;  %v3936_v11 = vld [vmem:[%s4972_s2 + $0x4e8] sm:$0xff] }
  0x5b   :  { %1176 = vmatpush.bf16.msra.mxu1 %v3852_v12  ;;  %v3927_v12 = vld [vmem:[%s4972_s2 + $0x4a0] sm:$0xff] }
  0x5c   :  { %1195 = vmatpush.bf16.msra.mxu2 %v3860_v10  ;;  %v3920_v10 = vld [vmem:[%s4972_s2 + $0x468] sm:$0xff] }
  0x5d   :  { %1214 = vmatpush.bf16.msra.mxu3 %v3868_v13  ;;  %v3911_v13 = vld [vmem:[%s4972_s2 + $0x420] sm:$0xff] }
  0x5e   :  { %1158 = vmatpush.bf16.msra.mxu0 %v3843_v16  ;;  %v3926_v16 = vld [vmem:[%s4972_s2 + $0x498] sm:$0xff] }
  0x5f   :  { %1177 = vmatpush.bf16.msra.mxu1 %v3851_v17  ;;  %v3910_v17 = vld [vmem:[%s4972_s2 + $0x418] sm:$0xff] }
  0x60   :  { %1196 = vmatpush.bf16.msra.mxu2 %v3859_v14  ;;  %v3919_v14 = vld [vmem:[%s4972_s2 + $0x460] sm:$0xff] }
  0x61   :  { %1215 = vmatpush.bf16.msra.mxu3 %v3867_v18  ;;  %1159 = vmatmul.bf16.vlgmr.msra.gmra.mxu0 %v4155_v43  ;;  %v3918_v18 = vld [vmem:[%s4972_s2 + $0x458] sm:$0xff] }
  0x62   :  { %1227 = vmatpush.bf16.msrb.mxu0 %v3882_v19  ;;  %1178 = vmatmul.bf16.vlgmr.msra.gmra.mxu1 %v4157_v44  ;;  %v3934_v19 = vld [vmem:[%s4972_s2 + $0x4d8] sm:$0xff] }
  0x63   :  { %1246 = vmatpush.bf16.msrb.mxu1 %v3890_v20  ;;  %1197 = vmatmul.bf16.vlgmr.msra.gmra.mxu2 %v4159_v45  ;;  %v3925_v20 = vld [vmem:[%s4972_s2 + $0x490] sm:$0xff] }
  0x64   :  { %1714 = vmatpush.bf16.msrb.mxu2 %v3898_v15  ;;  %1216 = vmatmul.bf16.vlgmr.msra.gmra.mxu3 %v4321_v34  ;;  %v3935_v15 = vld [vmem:[%s4972_s2 + $0x4e0] sm:$0xff] }
  0x65   :  { %1733 = vmatpush.bf16.msrb.mxu3 %v3906_v21  ;;  %v3909_v21 = vld [vmem:[%s4972_s2 + $0x410] sm:$0xff] }
  0x66   :  { %1228 = vmatpush.bf16.msrb.mxu0 %v3881_v24  ;;  %v3924_v24 = vld [vmem:[%s4972_s2 + $0x488] sm:$0xff] }
  0x67   :  { %1247 = vmatpush.bf16.msrb.mxu1 %v3889_v23  ;;  %v3933_v23 = vld [vmem:[%s4972_s2 + $0x4d0] sm:$0xff] }
  0x68   :  { %1715 = vmatpush.bf16.msrb.mxu2 %v3897_v22  ;;  %v3917_v22 = vld [vmem:[%s4972_s2 + $0x450] sm:$0xff] }
  0x69   :  { %1734 = vmatpush.bf16.msrb.mxu3 %v3905_v25  ;;  %v3908_v25 = vld [vmem:[%s4972_s2 + $0x408] sm:$0xff] }
  0x6a   :  { %1229 = vmatpush.bf16.msrb.mxu0 %v3880_v28  ;;  %v3923_v28 = vld [vmem:[%s4972_s2 + $0x480] sm:$0xff] }
  0x6b   :  { %1248 = vmatpush.bf16.msrb.mxu1 %v3888_v27  ;;  %v3932_v27 = vld [vmem:[%s4972_s2 + $0x4c8] sm:$0xff] }
  0x6c   :  { %1716 = vmatpush.bf16.msrb.mxu2 %v3896_v26  ;;  %v3916_v26 = vld [vmem:[%s4972_s2 + $0x448] sm:$0xff] }
  0x6d   :  { %1735 = vmatpush.bf16.msrb.mxu3 %v3904_v29  ;;  %v3907_v29 = vld [vmem:[%s4972_s2 + $0x400] sm:$0xff] }
  0x6e   :  { %1230 = vmatpush.bf16.msrb.mxu0 %v3879_v32  ;;  %v3962_v32 = vld [vmem:[%s4972_s2 + $0x5b8] sm:$0xff] }
  0x6f   :  { %1249 = vmatpush.bf16.msrb.mxu1 %v3887_v31  ;;  %v3931_v31 = vld [vmem:[%s4972_s2 + $0x4c0] sm:$0xff] }
  0x70   :  { %1717 = vmatpush.bf16.msrb.mxu2 %v3895_v30  ;;  %v3915_v30 = vld [vmem:[%s4972_s2 + $0x440] sm:$0xff] }
  0x71   :  { %1736 = vmatpush.bf16.msrb.mxu3 %v3903_v33  ;;  %1164 = vmatmul.bf16.gmra.mxu0 %v4239_v7  ;;  %v3946_v33 = vld [vmem:[%s4972_s2 + $0x538] sm:$0xff] }
  0x72   :  { %1231 = vmatpush.bf16.msrb.mxu0 %v3878_v39  ;;  %1183 = vmatmul.bf16.gmra.mxu1 %v4241_v8  ;;  %v3961_v39 = vld [vmem:[%s4972_s2 + $0x5b0] sm:$0xff] }
  0x73   :  { %1250 = vmatpush.bf16.msrb.mxu1 %v3886_v38  ;;  %1202 = vmatmul.bf16.gmra.mxu2 %v4243_v9  ;;  %v3970_v38 = vld [vmem:[%s4972_s2 + $0x5f8] sm:$0xff] }
  0x74   :  { %1718 = vmatpush.bf16.msrb.mxu2 %v3894_v35  ;;  %1221 = vmatmul.bf16.gmra.mxu3 %v4397_v63  ;;  %v3954_v35 = vld [vmem:[%s4972_s2 + $0x578] sm:$0xff] }
  0x75   :  { %1737 = vmatpush.bf16.msrb.mxu3 %v3902_v40  ;;  %v3945_v40 = vld [vmem:[%s4972_s2 + $0x530] sm:$0xff] }
  0x76   :  { %1232 = vmatpush.bf16.msrb.mxu0 %v3877_v47  ;;  %v3960_v47 = vld [vmem:[%s4972_s2 + $0x5a8] sm:$0xff] }
  0x77   :  { %1251 = vmatpush.bf16.msrb.mxu1 %v3885_v46  ;;  %v3969_v46 = vld [vmem:[%s4972_s2 + $0x5f0] sm:$0xff] }
  0x78   :  { %1719 = vmatpush.bf16.msrb.mxu2 %v3893_v41  ;;  %v3953_v41 = vld [vmem:[%s4972_s2 + $0x570] sm:$0xff] }
  0x79   :  { %1738 = vmatpush.bf16.msrb.mxu3 %v3901_v48 }
  0x7a   :  { %1233 = vmatpush.bf16.msrb.mxu0 %v3876_v51  ;;  %v3944_v51 = vld [vmem:[%s4972_s2 + $0x528] sm:$0xff] }
  0x7b   :  { %1252 = vmatpush.bf16.msrb.mxu1 %v3884_v50 }
  0x7c   :  { %1720 = vmatpush.bf16.msrb.mxu2 %v3892_v49 }
  0x7d   :  { %1739 = vmatpush.bf16.msrb.mxu3 %v3900_v52  ;;  %v3952_v52 = vld [vmem:[%s4972_s2 + $0x568] sm:$0xff] }
  0x7e   :  { %1234 = vmatpush.bf16.msrb.mxu0 %v3875_v57  ;;  %v3967_v57 = vld [vmem:[%s4972_s2 + $0x5e0] sm:$0xff] }
  0x7f   :  { %1253 = vmatpush.bf16.msrb.mxu1 %v3883_v54  ;;  %v3959_v54 = vld [vmem:[%s4972_s2 + $0x5a0] sm:$0xff] }
  0x80   :  { %1721 = vmatpush.bf16.msrb.mxu2 %v3891_v53  ;;  %v3968_v53 = vld [vmem:[%s4972_s2 + $0x5e8] sm:$0xff] }
  0x81   :  { %1740 = vmatpush.bf16.msrb.mxu3 %v3899_v58  ;;  %1235 = vmatmul.bf16.vlgmr.msrb.gmra.mxu0 %v4326_v36 }
  0x82   :  { %1752 = vmatpush.bf16.msra.mxu0 %v3914_v59  ;;  %1254 = vmatmul.bf16.vlgmr.msrb.gmra.mxu1 %v4328_v37 }
  0x83   :  { %1771 = vmatpush.bf16.msra.mxu1 %v3922_v56  ;;  %1722 = vmatmul.bf16.vlgmr.msrb.gmra.mxu2 %v4153_v42  ;;  %v3951_v56 = vld [vmem:[%s4972_s2 + $0x560] sm:$0xff] }
  0x84   :  { %1790 = vmatpush.bf16.msra.mxu2 %v3930_v55  ;;  %1741 = vmatmul.bf16.vlgmr.msrb.gmra.mxu3 %v4155_v43  ;;  %v3943_v55 = vld [vmem:[%s4972_s2 + $0x520] sm:$0xff] }
  0x85   :  { %1809 = vmatpush.bf16.msra.mxu3 %v3938_v60  ;;  %v3958_v60 = vld [vmem:[%s4972_s2 + $0x598] sm:$0xff] }
  0x86   :  { %1753 = vmatpush.bf16.msra.mxu0 %v3913_v0 }
  0x87   :  { %1772 = vmatpush.bf16.msra.mxu1 %v3921_v62 }
  0x88   :  { %1791 = vmatpush.bf16.msra.mxu2 %v3929_v61 }
  0x89   :  { %1810 = vmatpush.bf16.msra.mxu3 %v3937_v3 }
  0x8a   :  { %1754 = vmatpush.bf16.msra.mxu0 %v3912_v5 }
  0x8b   :  { %1773 = vmatpush.bf16.msra.mxu1 %v3920_v10  ;;  %v3950_v10 = vld [vmem:[%s4972_s2 + $0x558] sm:$0xff] }
  0x8c   :  { %1792 = vmatpush.bf16.msra.mxu2 %v3928_v4  ;;  %v3942_v4 = vld [vmem:[%s4972_s2 + $0x518] sm:$0xff] }
  0x8d   :  { %1811 = vmatpush.bf16.msra.mxu3 %v3936_v11  ;;  %v3966_v11 = vld [vmem:[%s4972_s2 + $0x5d8] sm:$0xff] }
  0x8e   :  { %1755 = vmatpush.bf16.msra.mxu0 %v3911_v13  ;;  %v3941_v13 = vld [vmem:[%s4972_s2 + $0x510] sm:$0xff] }
  0x8f   :  { %1774 = vmatpush.bf16.msra.mxu1 %v3919_v14  ;;  %v3949_v14 = vld [vmem:[%s4972_s2 + $0x550] sm:$0xff] }
  0x90   :  { %1793 = vmatpush.bf16.msra.mxu2 %v3927_v12  ;;  %v3957_v12 = vld [vmem:[%s4972_s2 + $0x590] sm:$0xff] }
  0x91   :  { %1812 = vmatpush.bf16.msra.mxu3 %v3935_v15  ;;  %1240 = vmatmul.bf16.gmra.mxu0 %v4402_v1  ;;  %v3965_v15 = vld [vmem:[%s4972_s2 + $0x5d0] sm:$0xff] }
  0x92   :  { %1756 = vmatpush.bf16.msra.mxu0 %v3910_v17  ;;  %1259 = vmatmul.bf16.gmra.mxu1 %v4404_v2 }
  0x93   :  { %1775 = vmatpush.bf16.msra.mxu1 %v3918_v18  ;;  %1727 = vmatmul.bf16.gmra.mxu2 %v4237_v6  ;;  %v3956_v18 = vld [vmem:[%s4972_s2 + $0x588] sm:$0xff] }
  0x94   :  { %1794 = vmatpush.bf16.msra.mxu2 %v3926_v16  ;;  %1746 = vmatmul.bf16.gmra.mxu3 %v4239_v7 }
  0x95   :  { %1813 = vmatpush.bf16.msra.mxu3 %v3934_v19 }
  0x96   :  { %1757 = vmatpush.bf16.msra.mxu0 %v3909_v21 }
  0x97   :  { %1776 = vmatpush.bf16.msra.mxu1 %v3917_v22 }
  0x98   :  { %1795 = vmatpush.bf16.msra.mxu2 %v3925_v20 }
  0x99   :  { %1814 = vmatpush.bf16.msra.mxu3 %v3933_v23  ;;  %v3940_v23 = vld [vmem:[%s4972_s2 + $0x508] sm:$0xff] }
  0x9a   :  { %1758 = vmatpush.bf16.msra.mxu0 %v3908_v25  ;;  %v3948_v25 = vld [vmem:[%s4972_s2 + $0x548] sm:$0xff] }
  0x9b   :  { %1777 = vmatpush.bf16.msra.mxu1 %v3916_v26  ;;  %v3964_v26 = vld [vmem:[%s4972_s2 + $0x5c8] sm:$0xff] }
  0x9c   :  { %1796 = vmatpush.bf16.msra.mxu2 %v3924_v24 }
  0x9d   :  { %1815 = vmatpush.bf16.msra.mxu3 %v3932_v27  ;;  %v3955_v27 = vld [vmem:[%s4972_s2 + $0x580] sm:$0xff] }
  0x9e   :  { %1759 = vmatpush.bf16.msra.mxu0 %v3907_v29  ;;  %v559_v48 = vpop.f32.mrf.mxu0  ;;  %v3939_v29 = vld [vmem:[%s4972_s2 + $0x500] sm:$0xff] }
  0x9f   :  { %1778 = vmatpush.bf16.msra.mxu1 %v3915_v30  ;;  %v578_v49 = vpop.f32.mrf.mxu1  ;;  %v3947_v30 = vld [vmem:[%s4972_s2 + $0x540] sm:$0xff] }
  0xa0   :  { %1797 = vmatpush.bf16.msra.mxu2 %v3923_v28  ;;  %v579_v50 = vadd.f32 %v578_v49, %v559_v48  ;;  %v3994_v28 = vld [vmem:[%s4972_s2 + $0x6b8] sm:$0xff] }
  0xa1   :  { %1816 = vmatpush.bf16.msra.mxu3 %v3931_v31  ;;  %1760 = vmatmul.bf16.vlgmr.msra.gmra.mxu0 %v4157_v44  ;;  %v3963_v31 = vld [vmem:[%s4972_s2 + $0x5c0] sm:$0xff] }
  0xa2   :  { %1828 = vmatpush.bf16.msrb.mxu0 %v3946_v33  ;;  %1779 = vmatmul.bf16.vlgmr.msra.gmra.mxu1 %v4159_v45 }
  0xa3   :  { %2296 = vmatpush.bf16.msrb.mxu1 %v3954_v35  ;;  %1798 = vmatmul.bf16.vlgmr.msra.gmra.mxu2 %v4321_v34  ;;  %v3978_v35 = vld [vmem:[%s4972_s2 + $0x638] sm:$0xff] }
  0xa4   :  { %2315 = vmatpush.bf16.msrb.mxu2 %v3962_v32  ;;  %1817 = vmatmul.bf16.vlgmr.msra.gmra.mxu3 %v4326_v36 }
  0xa5   :  { %2334 = vmatpush.bf16.msrb.mxu3 %v3970_v38  ;;  %v3986_v38 = vld [vmem:[%s4972_s2 + $0x678] sm:$0xff] }
  0xa6   :  { %1829 = vmatpush.bf16.msrb.mxu0 %v3945_v40  ;;  %v597_v58 = vpop.f32.mrf.mxu2  ;;  %v561_v62 = vpop.f32.mrf.mxu0 }
  0xa7   :  { %2297 = vmatpush.bf16.msrb.mxu1 %v3953_v41  ;;  %v616_v59 = vpop.f32.mrf.mxu3  ;;  %v598_v61 = vadd.f32 %v597_v58, %v579_v50  ;;  %v580_v0 = vpop.f32.mrf.mxu1  ;;  %v3977_v50 = vld [vmem:[%s4972_s2 + $0x630] sm:$0xff] }
  0xa8   :  { %2316 = vmatpush.bf16.msrb.mxu2 %v3961_v39  ;;  %v581_v3 = vadd.f32 %v580_v0, %v561_v62  ;;  %v4000_v0 = vld [vmem:[%s4972_s2 + $0x6e8] sm:$0xff] }
  0xa9   :  { %2335 = vmatpush.bf16.msrb.mxu3 %v3969_v46  ;;  %v4709_v5 = vadd.f32 %v616_v59, %v598_v61  ;;  %v4002_v46 = vld [vmem:[%s4972_s2 + $0x6f8] sm:$0xff]  ;;  %v3976_v61 = vld [vmem:[%s4972_s2 + $0x628] sm:$0xff] }
  0xaa   :  { %1830 = vmatpush.bf16.msrb.mxu0 %v3944_v51  ;;  %v3985_v51 = vld [vmem:[%s4972_s2 + $0x670] sm:$0xff] }
  0xab   :  { %2298 = vmatpush.bf16.msrb.mxu1 %v3952_v52  ;;  %v4001_v52 = vld [vmem:[%s4972_s2 + $0x6f0] sm:$0xff] }
  0xac   :  { %2317 = vmatpush.bf16.msrb.mxu2 %v3960_v47  ;;  %v3993_v47 = vld [vmem:[%s4972_s2 + $0x6b0] sm:$0xff] }
  0xad   :  { %2336 = vmatpush.bf16.msrb.mxu3 %v3968_v53  ;;  %v3992_v53 = vld [vmem:[%s4972_s2 + $0x6a8] sm:$0xff] }
  0xae   :  { %1831 = vmatpush.bf16.msrb.mxu0 %v3943_v55  ;;  %v599_v16 = vpop.f32.mrf.mxu2  ;;  %v564_v20 = vpop.f32.mrf.mxu0 }
  0xaf   :  { %2299 = vmatpush.bf16.msrb.mxu1 %v3951_v56  ;;  %v618_v17 = vpop.f32.mrf.mxu3  ;;  %v600_v19 = vadd.f32 %v599_v16, %v581_v3  ;;  %v583_v21 = vpop.f32.mrf.mxu1  ;;  %v3984_v56 = vld [vmem:[%s4972_s2 + $0x668] sm:$0xff]  ;;  %v3991_v3 = vld [vmem:[%s4972_s2 + $0x6a0] sm:$0xff] }
  0xb0   :  { %2318 = vmatpush.bf16.msrb.mxu2 %v3959_v54  ;;  %v584_v22 = vadd.f32 %v583_v21, %v564_v20  ;;  %v3981_v21 = vld [vmem:[%s4972_s2 + $0x650] sm:$0xff] }
  0xb1   :  { %2337 = vmatpush.bf16.msrb.mxu3 %v3967_v57  ;;  %v4735_v24 = vadd.f32 %v618_v17, %v600_v19  ;;  %1765 = vmatmul.bf16.gmra.mxu0 %v4241_v8  ;;  %v3974_v17 = vld [vmem:[%s4972_s2 + $0x618] sm:$0xff]  ;;  %v3989_v19 = vld [vmem:[%s4972_s2 + $0x690] sm:$0xff] }
  0xb2   :  { %1832 = vmatpush.bf16.msrb.mxu0 %v3942_v4  ;;  %1784 = vmatmul.bf16.gmra.mxu1 %v4243_v9 }
  0xb3   :  { %2300 = vmatpush.bf16.msrb.mxu1 %v3950_v10  ;;  %1803 = vmatmul.bf16.gmra.mxu2 %v4397_v63  ;;  %v3975_v10 = vld [vmem:[%s4972_s2 + $0x620] sm:$0xff] }
  0xb4   :  { %2319 = vmatpush.bf16.msrb.mxu2 %v3958_v60  ;;  %1822 = vmatmul.bf16.gmra.mxu3 %v4402_v1 }
  0xb5   :  { %2338 = vmatpush.bf16.msrb.mxu3 %v3966_v11  ;;  %v3999_v11 = vld [vmem:[%s4972_s2 + $0x6e0] sm:$0xff] }
  0xb6   :  { %1833 = vmatpush.bf16.msrb.mxu0 %v3941_v13  ;;  %v602_v32 = vpop.f32.mrf.mxu2  ;;  %v566_v40 = vpop.f32.mrf.mxu0 }
  0xb7   :  { %2301 = vmatpush.bf16.msrb.mxu1 %v3949_v14  ;;  %v621_v33 = vpop.f32.mrf.mxu3  ;;  %v603_v39 = vadd.f32 %v602_v32, %v584_v22  ;;  %v585_v41 = vpop.f32.mrf.mxu1  ;;  %v3973_v22 = vld [vmem:[%s4972_s2 + $0x610] sm:$0xff]  ;;  %v3972_v32 = vld [vmem:[%s4972_s2 + $0x608] sm:$0xff] }
  0xb8   :  { %2320 = vmatpush.bf16.msrb.mxu2 %v3957_v12  ;;  %v586_v48 = vadd.f32 %v585_v41, %v566_v40  ;;  %v3990_v12 = vld [vmem:[%s4972_s2 + $0x698] sm:$0xff]  ;;  %v3971_v40 = vld [vmem:[%s4972_s2 + $0x600] sm:$0xff] }
  0xb9   :  { %2339 = vmatpush.bf16.msrb.mxu3 %v3965_v15  ;;  %v4774_v49 = vadd.f32 %v621_v33, %v603_v39  ;;  %v3996_v33 = vld [vmem:[%s4972_s2 + $0x6c8] sm:$0xff]  ;;  %v3979_v39 = vld [vmem:[%s4972_s2 + $0x640] sm:$0xff] }
  0xba   :  { %1834 = vmatpush.bf16.msrb.mxu0 %v3940_v23  ;;  %v3997_v23 = vld [vmem:[%s4972_s2 + $0x6d0] sm:$0xff]  ;;  %v3995_v41 = vld [vmem:[%s4972_s2 + $0x6c0] sm:$0xff] }
  0xbb   :  { %2302 = vmatpush.bf16.msrb.mxu1 %v3948_v25 }
  0xbc   :  { %2321 = vmatpush.bf16.msrb.mxu2 %v3956_v18  ;;  %v3998_v18 = vld [vmem:[%s4972_s2 + $0x6d8] sm:$0xff] }
  0xbd   :  { %2340 = vmatpush.bf16.msrb.mxu3 %v3964_v26  ;;  %v3980_v26 = vld [vmem:[%s4972_s2 + $0x648] sm:$0xff] }
  0xbe   :  { %1835 = vmatpush.bf16.msrb.mxu0 %v3939_v29  ;;  %v604_v54 = vpop.f32.mrf.mxu2  ;;  %v635_v58 = vpop.f32.mrf.mxu0 }
  0xbf   :  { %2303 = vmatpush.bf16.msrb.mxu1 %v3947_v30  ;;  %v623_v55 = vpop.f32.mrf.mxu3  ;;  %v605_v57 = vadd.f32 %v604_v54, %v586_v48  ;;  %v636_v59 = vadd.f32 %v635_v58, %v4709_v5  ;;  %v654_v60 = vpop.f32.mrf.mxu1  ;;  %v3983_v5 = vld [vmem:[%s4972_s2 + $0x660] sm:$0xff] }
  0xc0   :  { %2322 = vmatpush.bf16.msrb.mxu2 %v3955_v27 }
  0xc1   :  { %2341 = vmatpush.bf16.msrb.mxu3 %v3963_v31  ;;  %v4795_v62 = vadd.f32 %v623_v55, %v605_v57  ;;  %v655_v4 = vadd.f32 %v654_v60, %v636_v59  ;;  %1836 = vmatmul.bf16.vlgmr.msrb.gmra.mxu0 %v4328_v37  ;;  %v2443_v59 = vld [vmem:[%s4974_s1 + $0x10] sm:$0xff]  ;;  %v2442_v60 = vld [vmem:[%s4974_s1 + $0x8] sm:$0xff] }
  0xc2   :  { %2353 = vmatpush.bf16.msra.mxu0 %v3978_v35  ;;  %2304 = vmatmul.bf16.vlgmr.msrb.gmra.mxu1 %v4153_v42  ;;  %v3987_v35 = vld [vmem:[%s4972_s2 + $0x680] sm:$0xff] }
  0xc3   :  { %2372 = vmatpush.bf16.msra.mxu1 %v3986_v38  ;;  %2323 = vmatmul.bf16.vlgmr.msrb.gmra.mxu2 %v4155_v43  ;;  %v3982_v43 = vld [vmem:[%s4972_s2 + $0x658] sm:$0xff] }
  0xc4   :  { %2391 = vmatpush.bf16.msra.mxu2 %v3994_v28  ;;  %2342 = vmatmul.bf16.vlgmr.msrb.gmra.mxu3 %v4157_v44 }
  0xc5   :  { %2410 = vmatpush.bf16.msra.mxu3 %v4002_v46 }
  0xc6   :  { %2354 = vmatpush.bf16.msra.mxu0 %v3977_v50  ;;  %v673_v42 = vpop.f32.mrf.mxu2  ;;  %v637_v14 = vpop.f32.mrf.mxu0  ;;  %v2441_v50 = vld [vmem:[%s4974_s1] sm:$0xff] }
  0xc7   :  { %2373 = vmatpush.bf16.msra.mxu1 %v3985_v51  ;;  %v4822_v44 = vadd.f32 %v673_v42, %v655_v4  ;;  %v4824_v13 = vpop.f32.mrf.mxu3  ;;  %v638_v15 = vadd.f32 %v637_v14, %v4735_v24  ;;  %v656_v16 = vpop.f32.mrf.mxu1  ;;  %v3988_v24 = vld [vmem:[%s4972_s2 + $0x688] sm:$0xff]  ;;  %v4006_v51 = vmov 0  }
  0xc8   :  { %2392 = vmatpush.bf16.msra.mxu2 %v3993_v47  ;;  %4004 = vset.pattern.permute.xlu0 %v4006_v51 }
  0xc9   :  { %2411 = vmatpush.bf16.msra.mxu3 %v4001_v52  ;;  %v657_v20 = vadd.f32 %v656_v16, %v638_v15  ;;  %4005 = vset.pattern.permute.xlu1 %v4006_v51 }
  0xca   :  { %2355 = vmatpush.bf16.msra.mxu0 %v3976_v61  ;;  %2447 = vperm.xlu0 %4004, %v2441_v50  }
  0xcb   :  { %2374 = vmatpush.bf16.msra.mxu1 %v3984_v56  ;;  %2457 = vperm.xlu1 %4005, %v2443_v59  }
  0xcc   :  { %2393 = vmatpush.bf16.msra.mxu2 %v3992_v53 }
  0xcd   :  { %2412 = vmatpush.bf16.msra.mxu3 %v4000_v0 }
  0xce   :  { %2356 = vmatpush.bf16.msra.mxu0 %v3975_v10  ;;  %v675_v25 = vpop.f32.mrf.mxu2  ;;  %v640_v29 = vpop.f32.mrf.mxu0 }
  0xcf   :  { %2375 = vmatpush.bf16.msra.mxu1 %v3983_v5  ;;  %v4851_v27 = vadd.f32 %v675_v25, %v657_v20  ;;  %v1143_v28 = vpop.f32.mrf.mxu3  ;;  %v641_v30 = vadd.f32 %v640_v29, %v4774_v49  ;;  %v659_v31 = vpop.f32.mrf.mxu1 }
  0xd0   :  { %2394 = vmatpush.bf16.msra.mxu2 %v3991_v3 }
  0xd1   :  { %2413 = vmatpush.bf16.msra.mxu3 %v3999_v11  ;;  %v660_v38 = vadd.f32 %v659_v31, %v641_v30  ;;  %1841 = vmatmul.bf16.gmra.mxu0 %v4404_v2 }
  0xd2   :  { %2357 = vmatpush.bf16.msra.mxu0 %v3974_v17  ;;  %2309 = vmatmul.bf16.gmra.mxu1 %v4237_v6 }
  0xd3   :  { %2376 = vmatpush.bf16.msra.mxu1 %v3982_v43  ;;  %2328 = vmatmul.bf16.gmra.mxu2 %v4239_v7 }
  0xd4   :  { %2395 = vmatpush.bf16.msra.mxu2 %v3990_v12  ;;  %2347 = vmatmul.bf16.gmra.mxu3 %v4241_v8 }
  0xd5   :  { %2414 = vmatpush.bf16.msra.mxu3 %v3998_v18  ;;  %2452 = vperm.xlu0 %4004, %v2442_v60  }
  0xd6   :  { %2358 = vmatpush.bf16.msra.mxu0 %v3973_v22  ;;  %v678_v46 = vpop.f32.mrf.mxu2  ;;  %v642_v48 = vpop.f32.mrf.mxu0 }
  0xd7   :  { %2377 = vmatpush.bf16.msra.mxu1 %v3981_v21  ;;  %v4876_v47 = vadd.f32 %v678_v46, %v660_v38  ;;  %v1146_v6 = vpop.f32.mrf.mxu3  ;;  %v643_v7 = vadd.f32 %v642_v48, %v4795_v62  ;;  %v661_v8 = vpop.f32.mrf.mxu1 }
  0xd8   :  { %2396 = vmatpush.bf16.msra.mxu2 %v3989_v19 }
  0xd9   :  { %2415 = vmatpush.bf16.msra.mxu3 %v3997_v23  ;;  %v662_v49 = vadd.f32 %v661_v8, %v643_v7 }
  0xda   :  { %2359 = vmatpush.bf16.msra.mxu0 %v3972_v32 }
  0xdb   :  { %2378 = vmatpush.bf16.msra.mxu1 %v3980_v26 }
  0xdc   :  { %2397 = vmatpush.bf16.msra.mxu2 %v3988_v24 }
  0xdd   :  { %2416 = vmatpush.bf16.msra.mxu3 %v3996_v33 }
  0xde   :  { %2360 = vmatpush.bf16.msra.mxu0 %v3971_v40  ;;  %v680_v52 = vpop.f32.mrf.mxu2  ;;  %v1160_v55 = vpop.f32.mrf.mxu0 }
  0xdf   :  { %2379 = vmatpush.bf16.msra.mxu1 %v3979_v39  ;;  %v4882_v53 = vadd.f32 %v680_v52, %v662_v49  ;;  %v1148_v54 = vpop.f32.mrf.mxu3  ;;  %v1161_v56 = vadd.f32 %v1160_v55, %v4824_v13  ;;  %v1179_v57 = vpop.f32.mrf.mxu1 }
  0xe0   :  { %2398 = vmatpush.bf16.msra.mxu2 %v3987_v35 }
  0xe1   :  { %2417 = vmatpush.bf16.msra.mxu3 %v3995_v41  ;;  %v1180_v58 = vadd.f32 %v1179_v57, %v1161_v56  ;;  %2361 = vmatmul.bf16.vlgmr.msra.gmra.mxu0 %v4159_v45 }
  0xe2   :  { %2380 = vmatmul.bf16.vlgmr.msra.gmra.mxu1 %v4321_v34 }
  0xe3   :  { %2399 = vmatmul.bf16.vlgmr.msra.gmra.mxu2 %v4326_v36 }
  0xe4   :  { %2418 = vmatmul.bf16.vlgmr.msra.gmra.mxu3 %v4328_v37  ;;  %v2444_v37 = vld [vmem:[%s4974_s1 + $0x18] sm:$0xff] }
  0xe5   :  { %2462 = vperm.xlu1 %4005, %v2444_v37  }
  0xe6   :  { %v1198_v61 = vpop.f32.mrf.mxu2  ;;  %v1162_v45 = vpop.f32.mrf.mxu0 }
  0xe7   :  { %v1199_v62 = vadd.f32 %v1198_v61, %v1180_v58  ;;  %v1217_v0 = vpop.f32.mrf.mxu3  ;;  %v1163_v3 = vadd.f32 %v1162_v45, %v1143_v28  ;;  %v1181_v34 = vpop.f32.mrf.mxu1 }
  0xe9   :  { %v1218_v4 = vadd.f32 %v1217_v0, %v1199_v62  ;;  %v1182_v36 = vadd.f32 %v1181_v34, %v1163_v3 }
  0xee   :  { %v1200_v5 = vpop.f32.mrf.mxu2  ;;  %v1165_v12 = vpop.f32.mrf.mxu0 }
  0xef   :  { %v1201_v10 = vadd.f32 %v1200_v5, %v1182_v36  ;;  %v1219_v11 = vpop.f32.mrf.mxu3  ;;  %v1166_v42 = vadd.f32 %v1165_v12, %v1146_v6  ;;  %v1184_v43 = vpop.f32.mrf.mxu1 }
  0xf1   :  { %v1220_v13 = vadd.f32 %v1219_v11, %v1201_v10  ;;  %v1185_v14 = vadd.f32 %v1184_v43, %v1166_v42  ;;  %2366 = vmatmul.bf16.gmra.mxu0 %v4243_v9 }
  0xf2   :  { %2385 = vmatmul.bf16.gmra.mxu1 %v4397_v63 }
  0xf3   :  { %2404 = vmatmul.bf16.gmra.mxu2 %v4402_v1 }
  0xf4   :  { %2423 = vmatmul.bf16.gmra.mxu3 %v4404_v2 }
  0xf6   :  { %v1203_v15 = vpop.f32.mrf.mxu2  ;;  %v1167_v18 = vpop.f32.mrf.mxu0 }
  0xf7   :  { %v1204_v16 = vadd.f32 %v1203_v15, %v1185_v14  ;;  %v1222_v17 = vpop.f32.mrf.mxu3  ;;  %v1168_v19 = vadd.f32 %v1167_v18, %v1148_v54  ;;  %v1186_v20 = vpop.f32.mrf.mxu1 }
  0xf9   :  { %v1223_v21 = vadd.f32 %v1222_v17, %v1204_v16  ;;  %v1187_v22 = vadd.f32 %v1186_v20, %v1168_v19 }
  0xfe   :  { %v1205_v23 = vpop.f32.mrf.mxu2  ;;  %v1236_v26 = vpop.f32.mrf.mxu0 }
  0xff   :  { %v1206_v24 = vadd.f32 %v1205_v23, %v1187_v22  ;;  %v1224_v25 = vpop.f32.mrf.mxu3  ;;  %v1237_v28 = vadd.f32 %v1236_v26, %v1218_v4  ;;  %v1255_v9 = vpop.f32.mrf.mxu1 }
 0x101   :  { %v1225_v29 = vadd.f32 %v1224_v25, %v1206_v24  ;;  %v4902_v63 = vadd.f32 %v1255_v9, %v1237_v28 }
 0x103   :  { %v2429_v1 = vmax.f32 %v4822_v44, %v4902_v63 }
 0x106   :  { %v1723_v2 = vpop.f32.mrf.mxu2  ;;  %v1238_v31 = vpop.f32.mrf.mxu0 }
 0x107   :  { %v1742_v30 = vpop.f32.mrf.mxu3  ;;  %v1239_v33 = vadd.f32 %v1238_v31, %v1220_v13  ;;  %v1257_v35 = vpop.f32.mrf.mxu1 }
 0x108   :  { %v1743_v32 = vadd.f32 %v1742_v30, %v1723_v2 }
 0x109   :  { %v4906_v38 = vadd.f32 %v1257_v35, %v1239_v33 }
 0x10e   :  { %v1725_v40 = vpop.f32.mrf.mxu2  ;;  %v1241_v46 = vpop.f32.mrf.mxu0 }
 0x10f   :  { %v1744_v41 = vpop.f32.mrf.mxu3  ;;  %v1242_v48 = vadd.f32 %v1241_v46, %v1223_v21  ;;  %v1260_v7 = vpop.f32.mrf.mxu1 }
 0x110   :  { %v1745_v6 = vadd.f32 %v1744_v41, %v1725_v40 }
 0x111   :  { %v4910_v8 = vadd.f32 %v1260_v7, %v1242_v48 }
 0x116   :  { %v1728_v50 = vpop.f32.mrf.mxu2  ;;  %v1243_v52 = vpop.f32.mrf.mxu0 }
 0x117   :  { %v1747_v51 = vpop.f32.mrf.mxu3  ;;  %v1244_v55 = vadd.f32 %v1243_v52, %v1225_v29  ;;  %v1262_v56 = vpop.f32.mrf.mxu1 }
 0x118   :  { %v4914_v54 = vadd.f32 %v1747_v51, %v1728_v50 }
 0x119   :  { %v4916_v57 = vadd.f32 %v1262_v56, %v1244_v55 }
 0x11e   :  { %v1730_v59 = vpop.f32.mrf.mxu2  ;;  %v1761_v61 = vpop.f32.mrf.mxu0 }
 0x11f   :  { %v1749_v60 = vpop.f32.mrf.mxu3  ;;  %v1780_v0 = vpop.f32.mrf.mxu1  ;;  %v1762_v2 = vadd.f32 %v1761_v61, %v1743_v32 }
 0x120   :  { %v4920_v62 = vadd.f32 %v1749_v60, %v1730_v59 }
 0x121   :  { %v1781_v41 = vadd.f32 %v1780_v0, %v1762_v2 }
 0x126   :  { %v1799_v45 = vpop.f32.mrf.mxu2  ;;  %v1763_v34 = vpop.f32.mrf.mxu0 }
 0x127   :  { %v1818_v3 = vpop.f32.mrf.mxu3  ;;  %v1782_v4 = vpop.f32.mrf.mxu1  ;;  %v1800_v48 = vadd.f32 %v1799_v45, %v1781_v41  ;;  %v1764_v50 = vadd.f32 %v1763_v34, %v1745_v6 }
 0x129   :  { %v1819_v55 = vadd.f32 %v1818_v3, %v1800_v48 }
 0x12e   :  { %v1801_v36 = vpop.f32.mrf.mxu2  ;;  %v1766_v5 = vpop.f32.mrf.mxu0 }
 0x12f   :  { %v1820_v37 = vpop.f32.mrf.mxu3  ;;  %v1785_v10 = vpop.f32.mrf.mxu1  ;;  %v1767_v45 = vadd.f32 %v1766_v5, %v4914_v54 }
 0x136   :  { %v4922_v11 = vpop.f32.mrf.mxu2  ;;  %v4926_v42 = vpop.f32.mrf.mxu0 }
 0x137   :  { %v4924_v12 = vpop.f32.mrf.mxu3  ;;  %v4928_v43 = vpop.f32.mrf.mxu1 }
 0x13e   :  { %v4930_v13 = vpop.f32.mrf.mxu2  ;;  %v1837_v15 = vpop.f32.mrf.mxu0 }
 0x13f   :  { %v4932_v14 = vpop.f32.mrf.mxu3  ;;  %v2305_v16 = vpop.f32.mrf.mxu1  ;;  %v1838_v32 = vadd.f32 %v1837_v15, %v1819_v55 }
 0x146   :  { %v2324_v17 = vpop.f32.mrf.mxu2  ;;  %v1839_v19 = vpop.f32.mrf.mxu0 }
 0x147   :  { %v2343_v18 = vpop.f32.mrf.mxu3  ;;  %v2307_v20 = vpop.f32.mrf.mxu1  ;;  %v2325_v29 = vadd.f32 %v2324_v17, %v2305_v16  ;;  %v1783_v16 = vadd.f32 %v1782_v4, %v1764_v50 }
 0x149   :  { %v2344_v31 = vadd.f32 %v2343_v18, %v2325_v29  ;;  %v2448_v18 = vpop.permute.xlu0 %2447  ;;  %v1802_v29 = vadd.f32 %v1801_v36, %v1783_v16 }
 0x14b   :  { %v1821_v34 = vadd.f32 %v1820_v37, %v1802_v29 }
 0x14e   :  { %v2326_v21 = vpop.f32.mrf.mxu2  ;;  %v4934_v23 = vpop.f32.mrf.mxu0 }
 0x14f   :  { %v2345_v22 = vpop.f32.mrf.mxu3  ;;  %v2310_v24 = vpop.f32.mrf.mxu1  ;;  %v2327_v7 = vadd.f32 %v2326_v21, %v2307_v20 }
 0x151   :  { %v2346_v56 = vadd.f32 %v2345_v22, %v2327_v7 }
 0x156   :  { %v2329_v25 = vpop.f32.mrf.mxu2  ;;  %v4936_v28 = vpop.f32.mrf.mxu0 }
 0x157   :  { %v2348_v26 = vpop.f32.mrf.mxu3  ;;  %v2312_v9 = vpop.f32.mrf.mxu1  ;;  %v2330_v39 = vadd.f32 %v2329_v25, %v2310_v24 }
 0x159   :  { %v2349_v21 = vadd.f32 %v2348_v26, %v2330_v39  ;;  %v1769_v39 = vadd.f32 %v4926_v42, %v4920_v62 }
 0x15e   :  { %v2331_v30 = vpop.f32.mrf.mxu2  ;;  %v2362_v35 = vpop.f32.mrf.mxu0 }
 0x15f   :  { %v2350_v33 = vpop.f32.mrf.mxu3  ;;  %v2381_v40 = vpop.f32.mrf.mxu1  ;;  %v2363_v46 = vadd.f32 %v2362_v35, %v2344_v31  ;;  %v1786_v31 = vadd.f32 %v1785_v10, %v1767_v45  ;;  %v2332_v44 = vadd.f32 %v2331_v30, %v2312_v9  ;;  %v4976_v10 = vmax.f32 %v4851_v27, %v4906_v38 }
 0x160   :  { %v2458_v30 = vpop.permute.xlu1 %2457 }
 0x161   :  { %v2382_v51 = vadd.f32 %v2381_v40, %v2363_v46  ;;  %v1805_v5 = vadd.f32 %v4922_v11, %v1786_v31  ;;  %v2351_v26 = vadd.f32 %v2350_v33, %v2332_v44  ;;  %v1788_v11 = vadd.f32 %v4928_v43, %v1769_v39 }
 0x162   :  { %v4977_v33 = vmax.f32 %v4876_v47, %v4910_v8 }
 0x163   :  { %v1824_v25 = vadd.f32 %v4924_v12, %v1805_v5  ;;  %v1807_v27 = vadd.f32 %v4930_v13, %v1788_v11 }
 0x165   :  { %v1843_v9 = vadd.f32 %v4934_v23, %v1824_v25  ;;  %v1826_v43 = vadd.f32 %v4932_v14, %v1807_v27 }
 0x166   :  { %v2400_v52 = vpop.f32.mrf.mxu2  ;;  %v2364_v58 = vpop.f32.mrf.mxu0 }
 0x167   :  { %v2401_v59 = vadd.f32 %v2400_v52, %v2382_v51  ;;  %v2419_v60 = vpop.f32.mrf.mxu3  ;;  %v2383_v49 = vpop.f32.mrf.mxu1  ;;  %v2365_v17 = vadd.f32 %v2364_v58, %v2346_v56  ;;  %v1840_v58 = vadd.f32 %v1839_v19, %v1821_v34  ;;  %v1845_v55 = vadd.f32 %v4936_v28, %v1826_v43 }
 0x168   :  { %v2463_v8 = vpop.permute.xlu1 %2462 }
 0x169   :  { %v2420_v61 = vadd.f32 %v2419_v60, %v2401_v59  ;;  %v2384_v20 = vadd.f32 %v2383_v49, %v2365_v17  ;;  %v4978_v59 = vmax.f32 %v4882_v53, %v4916_v57 }
 0x16b   :  { %v2433_v0 = vmax.f32 %v1838_v32, %v2420_v61 }
 0x16d   :  { %v2437_v6 = vmax.f32 %v2429_v1, %v2433_v0  ;;  %v2453_v1 = vpop.permute.xlu0 %2452 }
 0x16e   :  { %v2402_v3 = vpop.f32.mrf.mxu2  ;;  %v2367_v15 = vpop.f32.mrf.mxu0 }
 0x16f   :  { %v2465_v22 = vadd.f32 %v2448_v18, %v2437_v6  ;;  %v2403_v2 = vadd.f32 %v2402_v3, %v2384_v20  ;;  %v2421_v4 = vpop.f32.mrf.mxu3  ;;  %v2368_v54 = vadd.f32 %v2367_v15, %v2349_v21  ;;  %v2386_v49 = vpop.f32.mrf.mxu1 }
 0x171   :  { %2469 = vst [vmem:[%s4975_s3] sm:$0xff] %v2465_v22  ;;  %v2422_v36 = vadd.f32 %v2421_v4, %v2403_v2  ;;  %v2387_v37 = vadd.f32 %v2386_v49, %v2368_v54 }
 0x173   :  { %v2434_v63 = vmax.f32 %v1840_v58, %v2422_v36 }
 0x175   :  { %v2438_v19 = vmax.f32 %v4976_v10, %v2434_v63 }
 0x176   :  { %v2405_v24 = vpop.f32.mrf.mxu2  ;;  %v2369_v46 = vpop.f32.mrf.mxu0 }
 0x177   :  { %v2466_v35 = vadd.f32 %v2453_v1, %v2438_v19  ;;  %v2406_v40 = vadd.f32 %v2405_v24, %v2387_v37  ;;  %v2424_v41 = vpop.f32.mrf.mxu3  ;;  %v2370_v42 = vadd.f32 %v2369_v46, %v2351_v26  ;;  %v2388_v12 = vpop.f32.mrf.mxu1 }
 0x179   :  { %2470 = vst [vmem:[%s4975_s3 + $0x8] sm:$0xff] %v2466_v35  ;;  %v2425_v62 = vadd.f32 %v2424_v41, %v2406_v40  ;;  %v2389_v7 = vadd.f32 %v2388_v12, %v2370_v42 }
 0x17b   :  { %v2435_v38 = vmax.f32 %v1843_v9, %v2425_v62 }
 0x17d   :  { %v2439_v48 = vmax.f32 %v4977_v33, %v2435_v38 }
 0x17e   :  { %v2407_v50 = vpop.f32.mrf.mxu2 }
 0x17f   :  { %v2467_v23 = vadd.f32 %v2458_v30, %v2439_v48  ;;  %v2408_v51 = vadd.f32 %v2407_v50, %v2389_v7  ;;  %v2426_v52 = vpop.f32.mrf.mxu3 }
 0x181   :  { %2471 = vst [vmem:[%s4975_s3 + $0x10] sm:$0xff] %v2467_v23  ;;  %v2427_v13 = vadd.f32 %v2426_v52, %v2408_v51 }
 0x183   :  { %v2436_v56 = vmax.f32 %v1845_v55, %v2427_v13 }
 0x185   :  { %v2440_v47 = vmax.f32 %v4978_v59, %v2436_v56 }
 0x187   :  { %v2468_v60 = vadd.f32 %v2463_v8, %v2440_v47 }
 0x189   :  { %2472 = vst [vmem:[%s4975_s3 + $0x18] sm:$0xff] %v2468_v60 }

// kernel: model_forward.6
= control target key start
LH: loop header
LB: loop body
LE: loop exit
PB: predicated region body
PF: predicated region fallthrough
CT: control target
= control target key end

     0   :  { %vm2877_vm0 = vcmask 261120   ;;  %s5812_s2 = inlined_call_operand.vmem [shape: bf16[4,896,32], index: 2, kind: input, shape index: {}]   ;;  %s5813_s0 = inlined_call_operand.vmem [shape: bf16[64,896], index: 0, kind: input, shape index: {}]   ;;  %s5814_s1 = inlined_call_operand.vmem [shape: f32[64,1], index: 1, kind: input, shape index: {}]   ;;  %s5815_s3 = inlined_call_operand.vmem [shape: f32[64,32], index: 3, kind: output, shape index: {}]  }
   0x1   :  { %v4269_v0 = vld [vmem:[%s5812_s2 + $0x38] sm:$0xff]  ;;  %v4268_v4 = vld [vmem:[%s5812_s2 + $0x30] sm:$0xff]  ;;  %v4267_v8 = vld [vmem:[%s5812_s2 + $0x28] sm:$0xff] }
   0x2   :  { %v4277_v1 = vld [vmem:[%s5812_s2 + $0x78] sm:$0xff]  ;;  %638 = vmatpush.bf16.msra.mxu0 %v4269_v0  ;;  %v4276_v5 = vld [vmem:[%s5812_s2 + $0x70] sm:$0xff]  ;;  %v4275_v9 = vld [vmem:[%s5812_s2 + $0x68] sm:$0xff] }
   0x3   :  { %v4285_v2 = vld [vmem:[%s5812_s2 + $0xb8] sm:$0xff]  ;;  %667 = vmatpush.bf16.msra.mxu1 %v4277_v1  ;;  %v4284_v6 = vld [vmem:[%s5812_s2 + $0xb0] sm:$0xff]  ;;  %v4283_v10 = vld [vmem:[%s5812_s2 + $0xa8] sm:$0xff] }
   0x4   :  { %v4293_v3 = vld [vmem:[%s5812_s2 + $0xf8] sm:$0xff]  ;;  %696 = vmatpush.bf16.msra.mxu2 %v4285_v2  ;;  %v4292_v7 = vld [vmem:[%s5812_s2 + $0xf0] sm:$0xff]  ;;  %v4291_v11 = vld [vmem:[%s5812_s2 + $0xe8] sm:$0xff] }
   0x5   :  { %725 = vmatpush.bf16.msra.mxu3 %v4293_v3  ;;  %v4266_v12 = vld [vmem:[%s5812_s2 + $0x20] sm:$0xff]  ;;  %v4265_v16 = vld [vmem:[%s5812_s2 + $0x18] sm:$0xff]  ;;  %v4264_v20 = vld [vmem:[%s5812_s2 + $0x10] sm:$0xff] }
   0x6   :  { %639 = vmatpush.bf16.msra.mxu0 %v4268_v4  ;;  %v4274_v13 = vld [vmem:[%s5812_s2 + $0x60] sm:$0xff]  ;;  %v4273_v17 = vld [vmem:[%s5812_s2 + $0x58] sm:$0xff]  ;;  %v4272_v21 = vld [vmem:[%s5812_s2 + $0x50] sm:$0xff] }
   0x7   :  { %668 = vmatpush.bf16.msra.mxu1 %v4276_v5  ;;  %v4282_v14 = vld [vmem:[%s5812_s2 + $0xa0] sm:$0xff]  ;;  %v4281_v18 = vld [vmem:[%s5812_s2 + $0x98] sm:$0xff]  ;;  %v4280_v22 = vld [vmem:[%s5812_s2 + $0x90] sm:$0xff] }
   0x8   :  { %697 = vmatpush.bf16.msra.mxu2 %v4284_v6  ;;  %v4290_v15 = vld [vmem:[%s5812_s2 + $0xe0] sm:$0xff]  ;;  %v4289_v19 = vld [vmem:[%s5812_s2 + $0xd8] sm:$0xff]  ;;  %v4288_v23 = vld [vmem:[%s5812_s2 + $0xd0] sm:$0xff] }
   0x9   :  { %726 = vmatpush.bf16.msra.mxu3 %v4292_v7  ;;  %v4263_v24 = vld [vmem:[%s5812_s2 + $0x8] sm:$0xff]  ;;  %v4262_v28 = vld [vmem:[%s5812_s2] sm:$0xff]  ;;  %v4237_v33 = vld [vmem:[%s5813_s0 + $0x18] sm:$0xf0] }
   0xa   :  { %640 = vmatpush.bf16.msra.mxu0 %v4267_v8  ;;  %v4271_v25 = vld [vmem:[%s5812_s2 + $0x48] sm:$0xff]  ;;  %v4270_v29 = vld [vmem:[%s5812_s2 + $0x40] sm:$0xff]  ;;  %v4317_v40 = vld [vmem:[%s5812_s2 + $0x1b8] sm:$0xff] }
   0xb   :  { %669 = vmatpush.bf16.msra.mxu1 %v4275_v9  ;;  %v4279_v26 = vld [vmem:[%s5812_s2 + $0x88] sm:$0xff]  ;;  %v4278_v30 = vld [vmem:[%s5812_s2 + $0x80] sm:$0xff]  ;;  %v4301_v41 = vld [vmem:[%s5812_s2 + $0x138] sm:$0xff] }
   0xc   :  { %698 = vmatpush.bf16.msra.mxu2 %v4283_v10  ;;  %v4287_v27 = vld [vmem:[%s5812_s2 + $0xc8] sm:$0xff]  ;;  %v4286_v31 = vld [vmem:[%s5812_s2 + $0xc0] sm:$0xff]  ;;  %v4325_v46 = vld [vmem:[%s5812_s2 + $0x1f8] sm:$0xff] }
   0xd   :  { %727 = vmatpush.bf16.msra.mxu3 %v4291_v11  ;;  %v2892_v32 = vld [vmem:[%s5813_s0] sm:$0xf]  ;;  %v4234_v34 = vld [vmem:[%s5813_s0 + $0x4] sm:$0xf]  ;;  %v2900_v36 = vld [vmem:[%s5813_s0 + $0x8] sm:$0xf] }
   0xe   :  { %641 = vmatpush.bf16.msra.mxu0 %v4266_v12  ;;  %v2894_v35 = vld [vmem:[%s5813_s0 + $0x1c] sm:$0xf0]  ;;  %v4238_v37 = vld [vmem:[%s5813_s0 + $0x20] sm:$0xf0]  ;;  %v4235_v38 = vld [vmem:[%s5813_s0 + $0xc] sm:$0xf]  ;;  %v4637_v42 = vor.u32 %v4237_v33, %v2892_v32 }
   0xf   :  { %670 = vmatpush.bf16.msra.mxu1 %v4274_v13  ;;  %v2902_v39 = vld [vmem:[%s5813_s0 + $0x24] sm:$0xf0]  ;;  %v4639_v43 = vor.u32 %v4234_v34, %v2894_v35  ;;  %v4641_v44 = vor.u32 %v4238_v37, %v2900_v36  ;;  %v4309_v47 = vld [vmem:[%s5812_s2 + $0x178] sm:$0xff]  ;;  %v4316_v48 = vld [vmem:[%s5812_s2 + $0x1b0] sm:$0xff] }
  0x10   :  { %699 = vmatpush.bf16.msra.mxu2 %v4282_v14  ;;  %v4643_v45 = vor.u32 %v4235_v38, %v2902_v39  ;;  %v4300_v49 = vld [vmem:[%s5812_s2 + $0x130] sm:$0xff]  ;;  %v4315_v52 = vld [vmem:[%s5812_s2 + $0x1a8] sm:$0xff]  ;;  %v2920_v56 = vld [vmem:[%s5813_s0 + $0x38] sm:$0xf] }
  0x11   :  { %728 = vmatpush.bf16.msra.mxu3 %v4290_v15  ;;  %v4324_v50 = vld [vmem:[%s5812_s2 + $0x1f0] sm:$0xff]  ;;  %v4299_v53 = vld [vmem:[%s5812_s2 + $0x128] sm:$0xff]  ;;  %v4314_v57 = vld [vmem:[%s5812_s2 + $0x1a0] sm:$0xff] }
  0x12   :  { %642 = vmatpush.bf16.msra.mxu0 %v4265_v16  ;;  %v4308_v51 = vld [vmem:[%s5812_s2 + $0x170] sm:$0xff]  ;;  %v4323_v54 = vld [vmem:[%s5812_s2 + $0x1e8] sm:$0xff]  ;;  %v4298_v58 = vld [vmem:[%s5812_s2 + $0x120] sm:$0xff] }
  0x13   :  { %671 = vmatpush.bf16.msra.mxu1 %v4273_v17  ;;  %v4307_v55 = vld [vmem:[%s5812_s2 + $0x168] sm:$0xff]  ;;  %v4244_v59 = vld [vmem:[%s5813_s0 + $0x50] sm:$0xf0]  ;;  %v4241_v60 = vld [vmem:[%s5813_s0 + $0x3c] sm:$0xf] }
  0x14   :  { %700 = vmatpush.bf16.msra.mxu2 %v4281_v18  ;;  %v2922_v61 = vld [vmem:[%s5813_s0 + $0x54] sm:$0xf0]  ;;  %v2928_v62 = vld [vmem:[%s5813_s0 + $0x40] sm:$0xf]  ;;  %v4245_v63 = vld [vmem:[%s5813_s0 + $0x58] sm:$0xf0]  ;;  %v4721_v6 = vor.u32 %v4244_v59, %v2920_v56 }
  0x15   :  { %729 = vmatpush.bf16.msra.mxu3 %v4289_v19  ;;  %v4242_v0 = vld [vmem:[%s5813_s0 + $0x44] sm:$0xf]  ;;  %v2930_v1 = vld [vmem:[%s5813_s0 + $0x5c] sm:$0xf0]  ;;  %v4313_v4 = vld [vmem:[%s5812_s2 + $0x198] sm:$0xff]  ;;  %v4723_v7 = vor.u32 %v4241_v60, %v2922_v61  ;;  %v4725_v8 = vor.u32 %v4245_v63, %v2928_v62 }
  0x16   :  { %643 = vmatpush.bf16.msra.mxu0 %v4264_v20  ;;  %v4322_v2 = vld [vmem:[%s5812_s2 + $0x1e0] sm:$0xff]  ;;  %v4297_v5 = vld [vmem:[%s5812_s2 + $0x118] sm:$0xff]  ;;  %v4727_v9 = vor.u32 %v4242_v0, %v2930_v1  ;;  %v4312_v12 = vld [vmem:[%s5812_s2 + $0x190] sm:$0xff] }
  0x17   :  { %672 = vmatpush.bf16.msra.mxu1 %v4272_v21  ;;  %v4306_v3 = vld [vmem:[%s5812_s2 + $0x160] sm:$0xff]  ;;  %v4321_v10 = vld [vmem:[%s5812_s2 + $0x1d8] sm:$0xff]  ;;  %v4296_v13 = vld [vmem:[%s5812_s2 + $0x110] sm:$0xff] }
  0x18   :  { %701 = vmatpush.bf16.msra.mxu2 %v4280_v22  ;;  %v4305_v11 = vld [vmem:[%s5812_s2 + $0x158] sm:$0xff]  ;;  %v4320_v14 = vld [vmem:[%s5812_s2 + $0x1d0] sm:$0xff]  ;;  %v4311_v16 = vld [vmem:[%s5812_s2 + $0x188] sm:$0xff] }
  0x19   :  { %730 = vmatpush.bf16.msra.mxu3 %v4288_v23  ;;  %v4304_v15 = vld [vmem:[%s5812_s2 + $0x150] sm:$0xff]  ;;  %v4295_v17 = vld [vmem:[%s5812_s2 + $0x108] sm:$0xff]  ;;  %v4310_v21 = vld [vmem:[%s5812_s2 + $0x180] sm:$0xff] }
  0x1a   :  { %644 = vmatpush.bf16.msra.mxu0 %v4263_v24  ;;  %v4319_v18 = vld [vmem:[%s5812_s2 + $0x1c8] sm:$0xff]  ;;  %v2948_v20 = vld [vmem:[%s5813_s0 + $0x70] sm:$0xf]  ;;  %v4294_v22 = vld [vmem:[%s5812_s2 + $0x100] sm:$0xff] }
  0x1b   :  { %673 = vmatpush.bf16.msra.mxu1 %v4271_v25  ;;  %v4303_v19 = vld [vmem:[%s5812_s2 + $0x148] sm:$0xff]  ;;  %v4248_v24 = vld [vmem:[%s5813_s0 + $0x74] sm:$0xf]  ;;  %v2950_v25 = vld [vmem:[%s5813_s0 + $0x8c] sm:$0xf0] }
  0x1c   :  { %702 = vmatpush.bf16.msra.mxu2 %v4279_v26  ;;  %v4251_v23 = vld [vmem:[%s5813_s0 + $0x88] sm:$0xf0]  ;;  %v2956_v26 = vld [vmem:[%s5813_s0 + $0x78] sm:$0xf]  ;;  %v4801_v33 = vor.u32 %v4248_v24, %v2950_v25  ;;  %v4346_v0 = vld [vmem:[%s5812_s2 + $0x2a0] sm:$0xff] }
  0x1d   :  { %731 = vmatpush.bf16.msra.mxu3 %v4287_v27  ;;  %v4252_v27 = vld [vmem:[%s5813_s0 + $0x90] sm:$0xf0]  ;;  %v4799_v32 = vor.u32 %v4251_v23, %v2948_v20  ;;  %v4349_v36 = vld [vmem:[%s5812_s2 + $0x2b8] sm:$0xff]  ;;  %v4347_v60 = vld [vmem:[%s5812_s2 + $0x2a8] sm:$0xff] }
  0x1e   :  { %645 = vmatpush.bf16.msra.mxu0 %v4262_v28  ;;  %v4249_v28 = vld [vmem:[%s5813_s0 + $0x7c] sm:$0xf]  ;;  %v4803_v34 = vor.u32 %v4252_v27, %v2956_v26  ;;  %v4331_v61 = vld [vmem:[%s5812_s2 + $0x228] sm:$0xff]  ;;  %v4330_v1 = vld [vmem:[%s5812_s2 + $0x220] sm:$0xff] }
  0x1f   :  { %674 = vmatpush.bf16.msra.mxu1 %v4270_v29  ;;  %v2958_v29 = vld [vmem:[%s5813_s0 + $0x94] sm:$0xf0]  ;;  %v4355_v62 = vld [vmem:[%s5812_s2 + $0x2e8] sm:$0xff]  ;;  %v4352_v23 = vld [vmem:[%s5812_s2 + $0x2d0] sm:$0xff] }
  0x20   :  { %703 = vmatpush.bf16.msra.mxu2 %v4278_v30  ;;  %v4318_v30 = vld [vmem:[%s5812_s2 + $0x1c0] sm:$0xff]  ;;  %v4805_v35 = vor.u32 %v4249_v28, %v2958_v29  ;;  %v4333_v37 = vld [vmem:[%s5812_s2 + $0x238] sm:$0xff]  ;;  %v4339_v63 = vld [vmem:[%s5812_s2 + $0x268] sm:$0xff] }
  0x21   :  { %732 = vmatpush.bf16.msra.mxu3 %v4286_v31  ;;  %646 = vmatmul.bf16.vlgmr.msra.gmra.mxu0 %v4637_v42  ;;  %v4302_v31 = vld [vmem:[%s5812_s2 + $0x140] sm:$0xff]  ;;  %v4357_v38 = vld [vmem:[%s5812_s2 + $0x2f8] sm:$0xff]  ;;  %v4336_v24 = vld [vmem:[%s5812_s2 + $0x250] sm:$0xff] }
  0x22   :  { %754 = vmatpush.bf16.msrb.mxu0 %v4301_v41  ;;  %675 = vmatmul.bf16.vlgmr.msra.gmra.mxu1 %v4639_v43  ;;  %v4341_v39 = vld [vmem:[%s5812_s2 + $0x278] sm:$0xff]  ;;  %v4332_v41 = vld [vmem:[%s5812_s2 + $0x230] sm:$0xff]  ;;  %v2936_v25 = vld [vmem:[%s5813_s0 + $0x48] sm:$0xf] }
  0x23   :  { %704 = vmatmul.bf16.vlgmr.msra.gmra.mxu2 %v4641_v44  ;;  %783 = vmatpush.bf16.msrb.mxu1 %v4309_v47  ;;  %v4340_v47 = vld [vmem:[%s5812_s2 + $0x270] sm:$0xff]  ;;  %v4337_v20 = vld [vmem:[%s5812_s2 + $0x258] sm:$0xff]  ;;  %v4246_v26 = vld [vmem:[%s5813_s0 + $0x60] sm:$0xf0] }
  0x24   :  { %812 = vmatpush.bf16.msrb.mxu2 %v4317_v40  ;;  %733 = vmatmul.bf16.vlgmr.msra.gmra.mxu3 %v4643_v45  ;;  %v4348_v40 = vld [vmem:[%s5812_s2 + $0x2b0] sm:$0xff]  ;;  %v4243_v27 = vld [vmem:[%s5813_s0 + $0x4c] sm:$0xf]  ;;  %v2938_v28 = vld [vmem:[%s5813_s0 + $0x64] sm:$0xf0] }
  0x25   :  { %1290 = vmatpush.bf16.msrb.mxu3 %v4325_v46  ;;  %v4356_v46 = vld [vmem:[%s5812_s2 + $0x2f0] sm:$0xff] }
  0x26   :  { %755 = vmatpush.bf16.msrb.mxu0 %v4300_v49  ;;  %v4258_v49 = vld [vmem:[%s5813_s0 + $0xc0] sm:$0xf0]  ;;  %v2944_v29 = vld [vmem:[%s5813_s0 + $0x50] sm:$0xf] }
  0x27   :  { %784 = vmatpush.bf16.msrb.mxu1 %v4308_v51  ;;  %v2978_v51 = vld [vmem:[%s5813_s0 + $0xc4] sm:$0xf0] }
  0x28   :  { %813 = vmatpush.bf16.msrb.mxu2 %v4316_v48  ;;  %v2976_v48 = vld [vmem:[%s5813_s0 + $0xa8] sm:$0xf] }
  0x29   :  { %1291 = vmatpush.bf16.msrb.mxu3 %v4324_v50  ;;  %v4255_v50 = vld [vmem:[%s5813_s0 + $0xac] sm:$0xf]  ;;  %v4859_v56 = vor.u32 %v4258_v49, %v2976_v48  ;;  %v4350_v48 = vld [vmem:[%s5812_s2 + $0x2c0] sm:$0xff] }
  0x2a   :  { %756 = vmatpush.bf16.msrb.mxu0 %v4299_v53  ;;  %v4259_v53 = vld [vmem:[%s5813_s0 + $0xc8] sm:$0xf0]  ;;  %v4334_v49 = vld [vmem:[%s5812_s2 + $0x240] sm:$0xff] }
  0x2b   :  { %785 = vmatpush.bf16.msrb.mxu1 %v4307_v55  ;;  %v2986_v55 = vld [vmem:[%s5813_s0 + $0xcc] sm:$0xf0] }
  0x2c   :  { %814 = vmatpush.bf16.msrb.mxu2 %v4315_v52  ;;  %v2984_v52 = vld [vmem:[%s5813_s0 + $0xb0] sm:$0xf] }
  0x2d   :  { %1292 = vmatpush.bf16.msrb.mxu3 %v4323_v54  ;;  %v4256_v54 = vld [vmem:[%s5813_s0 + $0xb4] sm:$0xf] }
  0x2e   :  { %757 = vmatpush.bf16.msrb.mxu0 %v4298_v58  ;;  %v4863_v58 = vor.u32 %v4259_v53, %v2984_v52  ;;  %v4865_v59 = vor.u32 %v4256_v54, %v2986_v55  ;;  %v4250_v52 = vld [vmem:[%s5813_s0 + $0x84] sm:$0xf]  ;;  %v2966_v53 = vld [vmem:[%s5813_s0 + $0x9c] sm:$0xf0]  ;;  %v2972_v54 = vld [vmem:[%s5813_s0 + $0x88] sm:$0xf] }
  0x2f   :  { %786 = vmatpush.bf16.msrb.mxu1 %v4306_v3  ;;  %v4338_v3 = vld [vmem:[%s5812_s2 + $0x260] sm:$0xff] }
  0x30   :  { %815 = vmatpush.bf16.msrb.mxu2 %v4314_v57  ;;  %v4861_v57 = vor.u32 %v4255_v50, %v2978_v51  ;;  %v2964_v50 = vld [vmem:[%s5813_s0 + $0x80] sm:$0xf]  ;;  %v4253_v51 = vld [vmem:[%s5813_s0 + $0x98] sm:$0xf0]  ;;  %v4254_v55 = vld [vmem:[%s5813_s0 + $0xa0] sm:$0xf0] }
  0x31   :  { %1293 = vmatpush.bf16.msrb.mxu3 %v4322_v2  ;;  %651 = vmatmul.bf16.gmra.mxu0 %v4721_v6  ;;  %v4354_v2 = vld [vmem:[%s5812_s2 + $0x2e0] sm:$0xff] }
  0x32   :  { %758 = vmatpush.bf16.msrb.mxu0 %v4297_v5  ;;  %680 = vmatmul.bf16.gmra.mxu1 %v4723_v7  ;;  %v4239_v5 = vld [vmem:[%s5813_s0 + $0x28] sm:$0xf0] }
  0x33   :  { %709 = vmatmul.bf16.gmra.mxu2 %v4725_v8  ;;  %787 = vmatpush.bf16.msrb.mxu1 %v4305_v11  ;;  %v2910_v11 = vld [vmem:[%s5813_s0 + $0x2c] sm:$0xf0] }
  0x34   :  { %816 = vmatpush.bf16.msrb.mxu2 %v4313_v4  ;;  %738 = vmatmul.bf16.gmra.mxu3 %v4727_v9  ;;  %v2908_v4 = vld [vmem:[%s5813_s0 + $0x10] sm:$0xf] }
  0x35   :  { %1294 = vmatpush.bf16.msrb.mxu3 %v4321_v10  ;;  %v4236_v10 = vld [vmem:[%s5813_s0 + $0x14] sm:$0xf] }
  0x36   :  { %759 = vmatpush.bf16.msrb.mxu0 %v4296_v13  ;;  %v4240_v13 = vld [vmem:[%s5813_s0 + $0x30] sm:$0xf0] }
  0x37   :  { %788 = vmatpush.bf16.msrb.mxu1 %v4304_v15  ;;  %v4915_v15 = vor.u32 %v4236_v10, %v2910_v11  ;;  %v4388_v10 = vld [vmem:[%s5812_s2 + $0x3f0] sm:$0xff] }
  0x38   :  { %817 = vmatpush.bf16.msrb.mxu2 %v4312_v12  ;;  %v2916_v12 = vld [vmem:[%s5813_s0 + $0x18] sm:$0xf]  ;;  %v4260_v11 = vld [vmem:[%s5813_s0 + $0xd0] sm:$0xf0] }
  0x39   :  { %1295 = vmatpush.bf16.msrb.mxu3 %v4320_v14  ;;  %v4913_v14 = vor.u32 %v4239_v5, %v2908_v4  ;;  %v4364_v4 = vld [vmem:[%s5812_s2 + $0x330] sm:$0xff]  ;;  %v2992_v5 = vld [vmem:[%s5813_s0 + $0xb8] sm:$0xf] }
  0x3a   :  { %760 = vmatpush.bf16.msrb.mxu0 %v4295_v17  ;;  %v4345_v17 = vld [vmem:[%s5812_s2 + $0x298] sm:$0xff] }
  0x3b   :  { %789 = vmatpush.bf16.msrb.mxu1 %v4303_v19  ;;  %v4353_v19 = vld [vmem:[%s5812_s2 + $0x2d8] sm:$0xff] }
  0x3c   :  { %818 = vmatpush.bf16.msrb.mxu2 %v4311_v16  ;;  %v4917_v16 = vor.u32 %v4240_v13, %v2916_v12  ;;  %v4257_v12 = vld [vmem:[%s5813_s0 + $0xbc] sm:$0xf]  ;;  %v2994_v13 = vld [vmem:[%s5813_s0 + $0xd4] sm:$0xf0] }
  0x3d   :  { %1296 = vmatpush.bf16.msrb.mxu3 %v4319_v18  ;;  %v4329_v18 = vld [vmem:[%s5812_s2 + $0x218] sm:$0xff] }
  0x3e   :  { %761 = vmatpush.bf16.msrb.mxu0 %v4294_v22  ;;  %v4328_v22 = vld [vmem:[%s5812_s2 + $0x210] sm:$0xff] }
  0x3f   :  { %790 = vmatpush.bf16.msrb.mxu1 %v4302_v31  ;;  %v4965_v31 = vor.u32 %v4246_v26, %v2936_v25  ;;  %v4387_v25 = vld [vmem:[%s5812_s2 + $0x3e8] sm:$0xff] }
  0x40   :  { %819 = vmatpush.bf16.msrb.mxu2 %v4310_v21  ;;  %v4344_v21 = vld [vmem:[%s5812_s2 + $0x290] sm:$0xff]  ;;  %v4371_v26 = vld [vmem:[%s5812_s2 + $0x368] sm:$0xff] }
  0x41   :  { %1297 = vmatpush.bf16.msrb.mxu3 %v4318_v30  ;;  %656 = vmatmul.bf16.gmra.mxu0 %v4799_v32  ;;  %v4247_v30 = vld [vmem:[%s5813_s0 + $0x68] sm:$0xf0] }
  0x42   :  { %685 = vmatmul.bf16.gmra.mxu1 %v4801_v33  ;;  %1319 = vmatpush.bf16.msra.mxu0 %v4333_v37  ;;  %v4969_v37 = vor.u32 %v4247_v30, %v2944_v29  ;;  %v4386_v29 = vld [vmem:[%s5812_s2 + $0x3e0] sm:$0xff] }
  0x43   :  { %714 = vmatmul.bf16.gmra.mxu2 %v4803_v34  ;;  %1348 = vmatpush.bf16.msra.mxu1 %v4341_v39  ;;  %v4327_v39 = vld [vmem:[%s5812_s2 + $0x208] sm:$0xff] }
  0x44   :  { %743 = vmatmul.bf16.gmra.mxu3 %v4805_v35  ;;  %1377 = vmatpush.bf16.msra.mxu2 %v4349_v36  ;;  %v4967_v36 = vor.u32 %v4243_v27, %v2938_v28  ;;  %v4378_v27 = vld [vmem:[%s5812_s2 + $0x3a0] sm:$0xff] }
  0x45   :  { %1406 = vmatpush.bf16.msra.mxu3 %v4357_v38  ;;  %v4343_v38 = vld [vmem:[%s5812_s2 + $0x288] sm:$0xff]  ;;  %v4362_v28 = vld [vmem:[%s5812_s2 + $0x320] sm:$0xff] }
  0x46   :  { %1320 = vmatpush.bf16.msra.mxu0 %v4332_v41  ;;  %v4335_v41 = vld [vmem:[%s5812_s2 + $0x248] sm:$0xff] }
  0x47   :  { %1349 = vmatpush.bf16.msra.mxu1 %v4340_v47  ;;  %v4326_v47 = vld [vmem:[%s5812_s2 + $0x200] sm:$0xff] }
  0x48   :  { %1378 = vmatpush.bf16.msra.mxu2 %v4348_v40  ;;  %v4351_v40 = vld [vmem:[%s5812_s2 + $0x2c8] sm:$0xff] }
  0x49   :  { %1407 = vmatpush.bf16.msra.mxu3 %v4356_v46  ;;  %v4342_v46 = vld [vmem:[%s5812_s2 + $0x280] sm:$0xff] }
  0x4a   :  { %1321 = vmatpush.bf16.msra.mxu0 %v4331_v61  ;;  %v5019_v61 = vor.u32 %v4250_v52, %v2966_v53 }
  0x4b   :  { %1350 = vmatpush.bf16.msra.mxu1 %v4339_v63  ;;  %v4381_v63 = vld [vmem:[%s5812_s2 + $0x3b8] sm:$0xff] }
  0x4c   :  { %1379 = vmatpush.bf16.msra.mxu2 %v4347_v60  ;;  %v5017_v60 = vor.u32 %v4253_v51, %v2964_v50 }
  0x4d   :  { %1408 = vmatpush.bf16.msra.mxu3 %v4355_v62  ;;  %v5021_v62 = vor.u32 %v4254_v55, %v2972_v54  ;;  %v4369_v55 = vld [vmem:[%s5812_s2 + $0x358] sm:$0xff] }
  0x4e   :  { %1322 = vmatpush.bf16.msra.mxu0 %v4330_v1  ;;  %v4389_v1 = vld [vmem:[%s5812_s2 + $0x3f8] sm:$0xff] }
  0x4f   :  { %1351 = vmatpush.bf16.msra.mxu1 %v4338_v3  ;;  %v4380_v3 = vld [vmem:[%s5812_s2 + $0x3b0] sm:$0xff] }
  0x50   :  { %1380 = vmatpush.bf16.msra.mxu2 %v4346_v0  ;;  %v4365_v0 = vld [vmem:[%s5812_s2 + $0x338] sm:$0xff] }
  0x51   :  { %661 = vmatmul.bf16.gmra.mxu0 %v4859_v56  ;;  %1409 = vmatpush.bf16.msra.mxu3 %v4354_v2  ;;  %v4373_v2 = vld [vmem:[%s5812_s2 + $0x378] sm:$0xff] }
  0x52   :  { %690 = vmatmul.bf16.gmra.mxu1 %v4861_v57  ;;  %1323 = vmatpush.bf16.msra.mxu0 %v4329_v18  ;;  %v4261_v18 = vld [vmem:[%s5813_s0 + $0xd8] sm:$0xf0] }
  0x53   :  { %719 = vmatmul.bf16.gmra.mxu2 %v4863_v58  ;;  %1352 = vmatpush.bf16.msra.mxu1 %v4337_v20  ;;  %v5068_v20 = vor.u32 %v4257_v12, %v2994_v13  ;;  %v4368_v13 = vld [vmem:[%s5812_s2 + $0x350] sm:$0xff] }
  0x54   :  { %748 = vmatmul.bf16.gmra.mxu3 %v4865_v59  ;;  %1381 = vmatpush.bf16.msra.mxu2 %v4345_v17  ;;  %v3000_v17 = vld [vmem:[%s5813_s0 + $0xc0] sm:$0xf] }
  0x55   :  { %1410 = vmatpush.bf16.msra.mxu3 %v4353_v19  ;;  %v5066_v19 = vor.u32 %v4260_v11, %v2992_v5 }
  0x56   :  { %1324 = vmatpush.bf16.msra.mxu0 %v4328_v22  ;;  %v4372_v22 = vld [vmem:[%s5812_s2 + $0x370] sm:$0xff] }
  0x57   :  { %1353 = vmatpush.bf16.msra.mxu1 %v4336_v24  ;;  %v4363_v24 = vld [vmem:[%s5812_s2 + $0x328] sm:$0xff] }
  0x58   :  { %1382 = vmatpush.bf16.msra.mxu2 %v4344_v21  ;;  %v5070_v21 = vor.u32 %v4261_v18, %v3000_v17  ;;  %v4375_v17 = vld [vmem:[%s5812_s2 + $0x388] sm:$0xff] }
  0x59   :  { %1411 = vmatpush.bf16.msra.mxu3 %v4352_v23  ;;  %v4379_v23 = vld [vmem:[%s5812_s2 + $0x3a8] sm:$0xff] }
  0x5a   :  { %1325 = vmatpush.bf16.msra.mxu0 %v4327_v39  ;;  %v4359_v18 = vld [vmem:[%s5812_s2 + $0x308] sm:$0xff] }
  0x5b   :  { %1354 = vmatpush.bf16.msra.mxu1 %v4335_v41  ;;  %v4377_v41 = vld [vmem:[%s5812_s2 + $0x398] sm:$0xff] }
  0x5c   :  { %1383 = vmatpush.bf16.msra.mxu2 %v4343_v38 }
  0x5d   :  { %1412 = vmatpush.bf16.msra.mxu3 %v4351_v40  ;;  %v4370_v40 = vld [vmem:[%s5812_s2 + $0x360] sm:$0xff] }
  0x5e   :  { %1326 = vmatpush.bf16.msra.mxu0 %v4326_v47  ;;  %v4385_v47 = vld [vmem:[%s5812_s2 + $0x3d8] sm:$0xff] }
  0x5f   :  { %1355 = vmatpush.bf16.msra.mxu1 %v4334_v49 }
  0x60   :  { %1384 = vmatpush.bf16.msra.mxu2 %v4342_v46  ;;  %v4361_v46 = vld [vmem:[%s5812_s2 + $0x318] sm:$0xff] }
  0x61   :  { %762 = vmatmul.bf16.vlgmr.msrb.gmra.mxu0 %v4913_v14  ;;  %1413 = vmatpush.bf16.msra.mxu3 %v4350_v48 }
  0x62   :  { %791 = vmatmul.bf16.vlgmr.msrb.gmra.mxu1 %v4915_v15  ;;  %1435 = vmatpush.bf16.msrb.mxu0 %v4365_v0  ;;  %v4360_v0 = vld [vmem:[%s5812_s2 + $0x310] sm:$0xff] }
  0x63   :  { %820 = vmatmul.bf16.vlgmr.msrb.gmra.mxu2 %v4917_v16  ;;  %1464 = vmatpush.bf16.msrb.mxu1 %v4373_v2 }
  0x64   :  { %1298 = vmatmul.bf16.vlgmr.msrb.gmra.mxu3 %v4637_v42  ;;  %1942 = vmatpush.bf16.msrb.mxu2 %v4381_v63  ;;  %v4376_v63 = vld [vmem:[%s5812_s2 + $0x390] sm:$0xff] }
  0x65   :  { %1971 = vmatpush.bf16.msrb.mxu3 %v4389_v1  ;;  %v4384_v1 = vld [vmem:[%s5812_s2 + $0x3d0] sm:$0xff] }
  0x66   :  { %1436 = vmatpush.bf16.msrb.mxu0 %v4364_v4 }
  0x67   :  { %1465 = vmatpush.bf16.msrb.mxu1 %v4372_v22  ;;  %v4383_v22 = vld [vmem:[%s5812_s2 + $0x3c8] sm:$0xff] }
  0x68   :  { %1943 = vmatpush.bf16.msrb.mxu2 %v4380_v3 }
  0x69   :  { %1972 = vmatpush.bf16.msrb.mxu3 %v4388_v10 }
  0x6a   :  { %1437 = vmatpush.bf16.msrb.mxu0 %v4363_v24 }
  0x6b   :  { %1466 = vmatpush.bf16.msrb.mxu1 %v4371_v26 }
  0x6c   :  { %1944 = vmatpush.bf16.msrb.mxu2 %v4379_v23 }
  0x6d   :  { %1973 = vmatpush.bf16.msrb.mxu3 %v4387_v25 }
  0x6e   :  { %1438 = vmatpush.bf16.msrb.mxu0 %v4362_v28 }
  0x6f   :  { %1467 = vmatpush.bf16.msrb.mxu1 %v4370_v40  ;;  %v4382_v40 = vld [vmem:[%s5812_s2 + $0x3c0] sm:$0xff] }
  0x70   :  { %1945 = vmatpush.bf16.msrb.mxu2 %v4378_v27 }
  0x71   :  { %767 = vmatmul.bf16.gmra.mxu0 %v4965_v31  ;;  %1974 = vmatpush.bf16.msrb.mxu3 %v4386_v29 }
  0x72   :  { %796 = vmatmul.bf16.gmra.mxu1 %v4967_v36  ;;  %1439 = vmatpush.bf16.msrb.mxu0 %v4361_v46 }
  0x73   :  { %825 = vmatmul.bf16.gmra.mxu2 %v4969_v37  ;;  %1468 = vmatpush.bf16.msrb.mxu1 %v4369_v55  ;;  %v4397_v55 = vld [vmem:[%s5812_s2 + $0x438] sm:$0xff] }
  0x74   :  { %1303 = vmatmul.bf16.gmra.mxu3 %v4721_v6  ;;  %1946 = vmatpush.bf16.msrb.mxu2 %v4377_v41 }
  0x75   :  { %1975 = vmatpush.bf16.msrb.mxu3 %v4385_v47  ;;  %v4366_v47 = vld [vmem:[%s5812_s2 + $0x340] sm:$0xff] }
  0x76   :  { %1440 = vmatpush.bf16.msrb.mxu0 %v4360_v0 }
  0x77   :  { %1469 = vmatpush.bf16.msrb.mxu1 %v4368_v13  ;;  %v4412_v13 = vld [vmem:[%s5812_s2 + $0x4b0] sm:$0xff] }
  0x78   :  { %1947 = vmatpush.bf16.msrb.mxu2 %v4376_v63  ;;  %v4421_v63 = vld [vmem:[%s5812_s2 + $0x4f8] sm:$0xff] }
  0x79   :  { %1976 = vmatpush.bf16.msrb.mxu3 %v4384_v1 }
  0x7a   :  { %1441 = vmatpush.bf16.msrb.mxu0 %v4359_v18  ;;  %v4420_v18 = vld [vmem:[%s5812_s2 + $0x4f0] sm:$0xff] }
  0x7c   :  { %1948 = vmatpush.bf16.msrb.mxu2 %v4375_v17  ;;  %v4396_v17 = vld [vmem:[%s5812_s2 + $0x430] sm:$0xff] }
  0x7d   :  { %1977 = vmatpush.bf16.msrb.mxu3 %v4383_v22 }
  0x81   :  { %772 = vmatmul.bf16.gmra.mxu0 %v5017_v60  ;;  %1978 = vmatpush.bf16.msrb.mxu3 %v4382_v40  ;;  %v4419_v40 = vld [vmem:[%s5812_s2 + $0x4e8] sm:$0xff] }
  0x82   :  { %801 = vmatmul.bf16.gmra.mxu1 %v5019_v61 }
  0x83   :  { %830 = vmatmul.bf16.gmra.mxu2 %v5021_v62 }
  0x84   :  { %1308 = vmatmul.bf16.gmra.mxu3 %v4799_v32 }
  0x91   :  { %777 = vmatmul.bf16.gmra.mxu0 %v5066_v19 }
  0x92   :  { %806 = vmatmul.bf16.gmra.mxu1 %v5068_v20 }
  0x93   :  { %835 = vmatmul.bf16.gmra.mxu2 %v5070_v21 }
  0x94   :  { %1313 = vmatmul.bf16.gmra.mxu3 %v4859_v56 }
  0x9e   :  { %v647_v30 = vpop.f32.mrf.mxu0 }
  0x9f   :  { %v676_v38 = vpop.f32.mrf.mxu1 }
  0xa0   :  { %v677_v39 = vadd.f32 %v676_v38, %v647_v30  ;;  %v4367_v30 = vld [vmem:[%s5812_s2 + $0x348] sm:$0xff]  ;;  %v4374_v38 = vld [vmem:[%s5812_s2 + $0x380] sm:$0xff] }
  0xa1   :  { %1327 = vmatmul.bf16.vlgmr.msra.gmra.mxu0 %v4639_v43  ;;  %1470 = vmatpush.bf16.msrb.mxu1 %v4367_v30 }
  0xa2   :  { %1356 = vmatmul.bf16.vlgmr.msra.gmra.mxu1 %v4641_v44  ;;  %1949 = vmatpush.bf16.msrb.mxu2 %v4374_v38  ;;  %v4411_v38 = vld [vmem:[%s5812_s2 + $0x4a8] sm:$0xff] }
  0xa3   :  { %1385 = vmatmul.bf16.vlgmr.msra.gmra.mxu2 %v4643_v45 }
  0xa4   :  { %1414 = vmatmul.bf16.vlgmr.msra.gmra.mxu3 %v4913_v14 }
  0xa5   :  { %1471 = vmatpush.bf16.msrb.mxu1 %v4366_v47  ;;  %2087 = vmatpush.bf16.msra.mxu3 %v4421_v63  ;;  %v4394_v63 = vld [vmem:[%s5812_s2 + $0x420] sm:$0xff] }
  0xa6   :  { %v705_v48 = vpop.f32.mrf.mxu2  ;;  %v649_v51 = vpop.f32.mrf.mxu0 }
  0xa7   :  { %v734_v49 = vpop.f32.mrf.mxu3  ;;  %v706_v50 = vadd.f32 %v705_v48, %v677_v39  ;;  %v678_v52 = vpop.f32.mrf.mxu1  ;;  %v4358_v39 = vld [vmem:[%s5812_s2 + $0x300] sm:$0xff] }
  0xa8   :  { %v679_v53 = vadd.f32 %v678_v52, %v649_v51  ;;  %1442 = vmatpush.bf16.msrb.mxu0 %v4358_v39  ;;  %v4395_v39 = vld [vmem:[%s5812_s2 + $0x428] sm:$0xff] }
  0xa9   :  { %v5116_v54 = vadd.f32 %v734_v49, %v706_v50  ;;  %2088 = vmatpush.bf16.msra.mxu3 %v4420_v18 }
  0xac   :  { %2000 = vmatpush.bf16.msra.mxu0 %v4397_v55  ;;  %v4410_v55 = vld [vmem:[%s5812_s2 + $0x4a0] sm:$0xff] }
  0xad   :  { %2089 = vmatpush.bf16.msra.mxu3 %v4419_v40 }
  0xae   :  { %v707_v2 = vpop.f32.mrf.mxu2  ;;  %v652_v5 = vpop.f32.mrf.mxu0 }
  0xaf   :  { %v736_v3 = vpop.f32.mrf.mxu3  ;;  %v708_v4 = vadd.f32 %v707_v2, %v679_v53  ;;  %v681_v10 = vpop.f32.mrf.mxu1  ;;  %v4413_v53 = vld [vmem:[%s5812_s2 + $0x4b8] sm:$0xff] }
  0xb0   :  { %v682_v11 = vadd.f32 %v681_v10, %v652_v5  ;;  %2058 = vmatpush.bf16.msra.mxu2 %v4413_v53  ;;  %v4405_v5 = vld [vmem:[%s5812_s2 + $0x478] sm:$0xff]  ;;  %2001 = vmatpush.bf16.msra.mxu0 %v4396_v17 }
  0xb1   :  { %v5130_v12 = vadd.f32 %v736_v3, %v708_v4  ;;  %1332 = vmatmul.bf16.gmra.mxu0 %v4723_v7  ;;  %2029 = vmatpush.bf16.msra.mxu1 %v4405_v5 }
  0xb2   :  { %1361 = vmatmul.bf16.gmra.mxu1 %v4725_v8 }
  0xb3   :  { %1390 = vmatmul.bf16.gmra.mxu2 %v4727_v9 }
  0xb4   :  { %1419 = vmatmul.bf16.gmra.mxu3 %v4965_v31  ;;  %2059 = vmatpush.bf16.msra.mxu2 %v4412_v13 }
  0xb5   :  { %2002 = vmatpush.bf16.msra.mxu0 %v4395_v39 }
  0xb6   :  { %v710_v23 = vpop.f32.mrf.mxu2  ;;  %v654_v26 = vpop.f32.mrf.mxu0 }
  0xb7   :  { %v739_v24 = vpop.f32.mrf.mxu3  ;;  %v711_v25 = vadd.f32 %v710_v23, %v682_v11  ;;  %v683_v27 = vpop.f32.mrf.mxu1 }
  0xb8   :  { %v684_v28 = vadd.f32 %v683_v27, %v654_v26  ;;  %v4404_v27 = vld [vmem:[%s5812_s2 + $0x470] sm:$0xff]  ;;  %2060 = vmatpush.bf16.msra.mxu2 %v4411_v38  ;;  %v4401_v38 = vld [vmem:[%s5812_s2 + $0x458] sm:$0xff] }
  0xb9   :  { %v5148_v29 = vadd.f32 %v739_v24, %v711_v25  ;;  %2030 = vmatpush.bf16.msra.mxu1 %v4404_v27  ;;  %2003 = vmatpush.bf16.msra.mxu0 %v4394_v63 }
  0xbc   :  { %2061 = vmatpush.bf16.msra.mxu2 %v4410_v55  ;;  %v4400_v55 = vld [vmem:[%s5812_s2 + $0x450] sm:$0xff] }
  0xbe   :  { %v712_v41 = vpop.f32.mrf.mxu2  ;;  %v657_v49 = vpop.f32.mrf.mxu0 }
  0xbf   :  { %v741_v46 = vpop.f32.mrf.mxu3  ;;  %v713_v48 = vadd.f32 %v712_v41, %v684_v28  ;;  %v686_v50 = vpop.f32.mrf.mxu1 }
  0xc0   :  { %v687_v51 = vadd.f32 %v686_v50, %v657_v49  ;;  %v4403_v50 = vld [vmem:[%s5812_s2 + $0x468] sm:$0xff] }
  0xc1   :  { %v5165_v52 = vadd.f32 %v741_v46, %v713_v48  ;;  %1337 = vmatmul.bf16.gmra.mxu0 %v4801_v33  ;;  %2031 = vmatpush.bf16.msra.mxu1 %v4403_v50 }
  0xc2   :  { %1366 = vmatmul.bf16.gmra.mxu1 %v4803_v34 }
  0xc3   :  { %1395 = vmatmul.bf16.gmra.mxu2 %v4805_v35 }
  0xc4   :  { %1424 = vmatmul.bf16.gmra.mxu3 %v5017_v60 }
  0xc6   :  { %v715_v0 = vpop.f32.mrf.mxu2  ;;  %v659_v3 = vpop.f32.mrf.mxu0 }
  0xc7   :  { %v744_v1 = vpop.f32.mrf.mxu3  ;;  %v716_v2 = vadd.f32 %v715_v0, %v687_v51  ;;  %v688_v4 = vpop.f32.mrf.mxu1  ;;  %v4418_v0 = vld [vmem:[%s5812_s2 + $0x4e0] sm:$0xff] }
  0xc8   :  { %v689_v10 = vadd.f32 %v688_v4, %v659_v3  ;;  %2090 = vmatpush.bf16.msra.mxu3 %v4418_v0 }
  0xc9   :  { %v5183_v11 = vadd.f32 %v744_v1, %v716_v2 }
  0xce   :  { %v717_v22 = vpop.f32.mrf.mxu2  ;;  %v662_v25 = vpop.f32.mrf.mxu0 }
  0xcf   :  { %v746_v23 = vpop.f32.mrf.mxu3  ;;  %v718_v24 = vadd.f32 %v717_v22, %v689_v10  ;;  %v691_v26 = vpop.f32.mrf.mxu1  ;;  %v4402_v10 = vld [vmem:[%s5812_s2 + $0x460] sm:$0xff]  ;;  %v4409_v22 = vld [vmem:[%s5812_s2 + $0x498] sm:$0xff] }
  0xd0   :  { %v692_v28 = vadd.f32 %v691_v26, %v662_v25  ;;  %2032 = vmatpush.bf16.msra.mxu1 %v4402_v10  ;;  %2062 = vmatpush.bf16.msra.mxu2 %v4409_v22 }
  0xd1   :  { %v5197_v30 = vadd.f32 %v746_v23, %v718_v24  ;;  %1342 = vmatmul.bf16.gmra.mxu0 %v4861_v57  ;;  %v4417_v23 = vld [vmem:[%s5812_s2 + $0x4d8] sm:$0xff] }
  0xd2   :  { %1371 = vmatmul.bf16.gmra.mxu1 %v4863_v58  ;;  %2091 = vmatpush.bf16.msra.mxu3 %v4417_v23  ;;  %v4406_v23 = vld [vmem:[%s5812_s2 + $0x480] sm:$0xff] }
  0xd3   :  { %1400 = vmatmul.bf16.gmra.mxu2 %v4865_v59 }
  0xd4   :  { %1429 = vmatmul.bf16.gmra.mxu3 %v5066_v19  ;;  %2033 = vmatpush.bf16.msra.mxu1 %v4401_v38 }
  0xd6   :  { %v720_v41 = vpop.f32.mrf.mxu2  ;;  %v664_v48 = vpop.f32.mrf.mxu0 }
  0xd7   :  { %v749_v46 = vpop.f32.mrf.mxu3  ;;  %v721_v47 = vadd.f32 %v720_v41, %v692_v28  ;;  %v693_v49 = vpop.f32.mrf.mxu1  ;;  %v4408_v41 = vld [vmem:[%s5812_s2 + $0x490] sm:$0xff] }
  0xd8   :  { %v694_v51 = vadd.f32 %v693_v49, %v664_v48  ;;  %2063 = vmatpush.bf16.msra.mxu2 %v4408_v41  ;;  %2034 = vmatpush.bf16.msra.mxu1 %v4400_v55 }
  0xd9   :  { %v5215_v53 = vadd.f32 %v749_v46, %v721_v47  ;;  %v4392_v46 = vld [vmem:[%s5812_s2 + $0x410] sm:$0xff] }
  0xda   :  { %v4416_v47 = vld [vmem:[%s5812_s2 + $0x4d0] sm:$0xff] }
  0xdb   :  { %2092 = vmatpush.bf16.msra.mxu3 %v4416_v47 }
  0xde   :  { %v722_v1 = vpop.f32.mrf.mxu2  ;;  %v763_v4 = vpop.f32.mrf.mxu0 }
  0xdf   :  { %v751_v2 = vpop.f32.mrf.mxu3  ;;  %v723_v3 = vadd.f32 %v722_v1, %v694_v51  ;;  %v792_v5 = vpop.f32.mrf.mxu1  ;;  %v764_v13 = vadd.f32 %v763_v4, %v5116_v54  ;;  %v4393_v54 = vld [vmem:[%s5812_s2 + $0x418] sm:$0xff]  ;;  %v4407_v1 = vld [vmem:[%s5812_s2 + $0x488] sm:$0xff] }
  0xe0   :  { %2004 = vmatpush.bf16.msra.mxu0 %v4393_v54  ;;  %2064 = vmatpush.bf16.msra.mxu2 %v4407_v1 }
  0xe1   :  { %v5230_v17 = vadd.f32 %v751_v2, %v723_v3  ;;  %v793_v18 = vadd.f32 %v792_v5, %v764_v13  ;;  %1443 = vmatmul.bf16.vlgmr.msrb.gmra.mxu0 %v4915_v15  ;;  %v4391_v2 = vld [vmem:[%s5812_s2 + $0x408] sm:$0xff] }
  0xe2   :  { %1472 = vmatmul.bf16.vlgmr.msrb.gmra.mxu1 %v4917_v16 }
  0xe3   :  { %1950 = vmatmul.bf16.vlgmr.msrb.gmra.mxu2 %v4637_v42 }
  0xe4   :  { %1979 = vmatmul.bf16.vlgmr.msrb.gmra.mxu3 %v4639_v43  ;;  %2005 = vmatpush.bf16.msra.mxu0 %v4392_v46 }
  0xe5   :  { %2065 = vmatpush.bf16.msra.mxu2 %v4406_v23 }
  0xe6   :  { %v821_v24 = vpop.f32.mrf.mxu2  ;;  %v765_v27 = vpop.f32.mrf.mxu0 }
  0xe7   :  { %v5245_v25 = vpop.f32.mrf.mxu3  ;;  %v5247_v26 = vadd.f32 %v821_v24, %v793_v18  ;;  %v794_v28 = vpop.f32.mrf.mxu1  ;;  %v766_v39 = vadd.f32 %v765_v27, %v5130_v12  ;;  %v4399_v18 = vld [vmem:[%s5812_s2 + $0x448] sm:$0xff]  ;;  %v4390_v24 = vld [vmem:[%s5812_s2 + $0x400] sm:$0xff] }
  0xe8   :  { %2006 = vmatpush.bf16.msra.mxu0 %v4391_v2  ;;  %2035 = vmatpush.bf16.msra.mxu1 %v4399_v18  ;;  %v4414_v27 = vld [vmem:[%s5812_s2 + $0x4c0] sm:$0xff]  ;;  %v4452_v18 = vld [vmem:[%s5812_s2 + $0x5f0] sm:$0xff] }
  0xe9   :  { %v795_v40 = vadd.f32 %v794_v28, %v766_v39 }
  0xec   :  { %2007 = vmatpush.bf16.msra.mxu0 %v4390_v24 }
  0xee   :  { %v823_v48 = vpop.f32.mrf.mxu2  ;;  %v768_v50 = vpop.f32.mrf.mxu0 }
  0xef   :  { %v5262_v49 = vpop.f32.mrf.mxu3  ;;  %v5264_v12 = vadd.f32 %v823_v48, %v795_v40  ;;  %v797_v51 = vpop.f32.mrf.mxu1  ;;  %v769_v63 = vadd.f32 %v768_v50, %v5148_v29  ;;  %v4415_v29 = vld [vmem:[%s5812_s2 + $0x4c8] sm:$0xff]  ;;  %v4445_v48 = vld [vmem:[%s5812_s2 + $0x5b8] sm:$0xff] }
  0xf0   :  { %2093 = vmatpush.bf16.msra.mxu3 %v4415_v29  ;;  %v4429_v50 = vld [vmem:[%s5812_s2 + $0x538] sm:$0xff]  ;;  %2623 = vmatpush.bf16.msrb.mxu2 %v4445_v48 }
  0xf1   :  { %v798_v0 = vadd.f32 %v797_v51, %v769_v63  ;;  %1448 = vmatmul.bf16.gmra.mxu0 %v4967_v36  ;;  %v4437_v29 = vld [vmem:[%s5812_s2 + $0x578] sm:$0xff] }
  0xf2   :  { %1477 = vmatmul.bf16.gmra.mxu1 %v4969_v37  ;;  %2116 = vmatpush.bf16.msrb.mxu0 %v4429_v50 }
  0xf3   :  { %1955 = vmatmul.bf16.gmra.mxu2 %v4721_v6 }
  0xf4   :  { %1984 = vmatmul.bf16.gmra.mxu3 %v4723_v7 }
  0xf5   :  { %2094 = vmatpush.bf16.msra.mxu3 %v4414_v27 }
  0xf6   :  { %v826_v3 = vpop.f32.mrf.mxu2  ;;  %v770_v10 = vpop.f32.mrf.mxu0 }
  0xf7   :  { %v5283_v4 = vpop.f32.mrf.mxu3  ;;  %v5285_v5 = vadd.f32 %v826_v3, %v798_v0  ;;  %v799_v13 = vpop.f32.mrf.mxu1  ;;  %v771_v22 = vadd.f32 %v770_v10, %v5165_v52  ;;  %v4398_v52 = vld [vmem:[%s5812_s2 + $0x440] sm:$0xff]  ;;  %v4444_v10 = vld [vmem:[%s5812_s2 + $0x5b0] sm:$0xff] }
  0xf8   :  { %2036 = vmatpush.bf16.msra.mxu1 %v4398_v52  ;;  %2624 = vmatpush.bf16.msrb.mxu2 %v4444_v10 }
  0xf9   :  { %v800_v54 = vadd.f32 %v799_v13, %v771_v22  ;;  %v4428_v13 = vld [vmem:[%s5812_s2 + $0x530] sm:$0xff] }
  0xfa   :  { %2117 = vmatpush.bf16.msrb.mxu0 %v4428_v13 }
  0xfc   :  { %2594 = vmatpush.bf16.msrb.mxu1 %v4437_v29  ;;  %v4426_v29 = vld [vmem:[%s5812_s2 + $0x520] sm:$0xff] }
  0xfe   :  { %v828_v28 = vpop.f32.mrf.mxu2  ;;  %v773_v40 = vpop.f32.mrf.mxu0 }
  0xff   :  { %v5300_v38 = vpop.f32.mrf.mxu3  ;;  %v5305_v39 = vadd.f32 %v828_v28, %v800_v54  ;;  %v802_v41 = vpop.f32.mrf.mxu1  ;;  %v774_v46 = vadd.f32 %v773_v40, %v5183_v11  ;;  %v4453_v11 = vld [vmem:[%s5812_s2 + $0x5f8] sm:$0xff]  ;;  %v4436_v28 = vld [vmem:[%s5812_s2 + $0x570] sm:$0xff]  ;;  %v4443_v40 = vld [vmem:[%s5812_s2 + $0x5a8] sm:$0xff] }
 0x100   :  { %2652 = vmatpush.bf16.msrb.mxu3 %v4453_v11  ;;  %2595 = vmatpush.bf16.msrb.mxu1 %v4436_v28  ;;  %v4441_v28 = vld [vmem:[%s5812_s2 + $0x598] sm:$0xff] }
 0x101   :  { %v803_v47 = vadd.f32 %v802_v41, %v774_v46  ;;  %1453 = vmatmul.bf16.gmra.mxu0 %v5019_v61  ;;  %v4451_v41 = vld [vmem:[%s5812_s2 + $0x5e8] sm:$0xff]  ;;  %2625 = vmatpush.bf16.msrb.mxu2 %v4443_v40 }
 0x102   :  { %1482 = vmatmul.bf16.gmra.mxu1 %v5021_v62 }
 0x103   :  { %1960 = vmatmul.bf16.gmra.mxu2 %v4799_v32 }
 0x104   :  { %1989 = vmatmul.bf16.gmra.mxu3 %v4801_v33 }
 0x105   :  { %2653 = vmatpush.bf16.msrb.mxu3 %v4452_v18 }
 0x106   :  { %v831_v51 = vpop.f32.mrf.mxu2  ;;  %v775_v0 = vpop.f32.mrf.mxu0 }
 0x107   :  { %v5321_v55 = vpop.f32.mrf.mxu3  ;;  %v5323_v63 = vadd.f32 %v831_v51, %v803_v47  ;;  %v804_v1 = vpop.f32.mrf.mxu1  ;;  %v776_v2 = vadd.f32 %v775_v0, %v5197_v30  ;;  %v4435_v0 = vld [vmem:[%s5812_s2 + $0x568] sm:$0xff] }
 0x108   :  { %2596 = vmatpush.bf16.msrb.mxu1 %v4435_v0  ;;  %v4433_v0 = vld [vmem:[%s5812_s2 + $0x558] sm:$0xff] }
 0x109   :  { %v805_v3 = vadd.f32 %v804_v1, %v776_v2  ;;  %2654 = vmatpush.bf16.msrb.mxu3 %v4451_v41  ;;  %v4442_v2 = vld [vmem:[%s5812_s2 + $0x5a0] sm:$0xff] }
 0x10a   :  { %2626 = vmatpush.bf16.msrb.mxu2 %v4442_v2  ;;  %v4440_v2 = vld [vmem:[%s5812_s2 + $0x590] sm:$0xff] }
 0x10e   :  { %v833_v30 = vpop.f32.mrf.mxu2  ;;  %v778_v23 = vpop.f32.mrf.mxu0  ;;  %2627 = vmatpush.bf16.msrb.mxu2 %v4441_v28  ;;  %v4432_v28 = vld [vmem:[%s5812_s2 + $0x550] sm:$0xff] }
 0x10f   :  { %v5338_v22 = vpop.f32.mrf.mxu3  ;;  %v5340_v54 = vadd.f32 %v833_v30, %v805_v3  ;;  %v807_v24 = vpop.f32.mrf.mxu1  ;;  %v779_v27 = vadd.f32 %v778_v23, %v5215_v53  ;;  %v4427_v53 = vld [vmem:[%s5812_s2 + $0x528] sm:$0xff]  ;;  %v4450_v3 = vld [vmem:[%s5812_s2 + $0x5e0] sm:$0xff] }
 0x110   :  { %2118 = vmatpush.bf16.msrb.mxu0 %v4427_v53  ;;  %2655 = vmatpush.bf16.msrb.mxu3 %v4450_v3  ;;  %v4448_v3 = vld [vmem:[%s5812_s2 + $0x5d0] sm:$0xff] }
 0x111   :  { %v808_v52 = vadd.f32 %v807_v24, %v779_v27  ;;  %1458 = vmatmul.bf16.gmra.mxu0 %v5068_v20  ;;  %v4434_v24 = vld [vmem:[%s5812_s2 + $0x560] sm:$0xff] }
 0x112   :  { %1487 = vmatmul.bf16.gmra.mxu1 %v5070_v21  ;;  %2628 = vmatpush.bf16.msrb.mxu2 %v4440_v2  ;;  %v4431_v2 = vld [vmem:[%s5812_s2 + $0x548] sm:$0xff] }
 0x113   :  { %1965 = vmatmul.bf16.gmra.mxu2 %v4859_v56  ;;  %2597 = vmatpush.bf16.msrb.mxu1 %v4434_v24 }
 0x114   :  { %1994 = vmatmul.bf16.gmra.mxu3 %v4861_v57  ;;  %2119 = vmatpush.bf16.msrb.mxu0 %v4426_v29  ;;  %v4424_v29 = vld [vmem:[%s5812_s2 + $0x510] sm:$0xff] }
 0x116   :  { %v836_v46 = vpop.f32.mrf.mxu2  ;;  %v780_v50 = vpop.f32.mrf.mxu0 }
 0x117   :  { %v5359_v47 = vpop.f32.mrf.mxu3  ;;  %v5361_v48 = vadd.f32 %v836_v46, %v808_v52  ;;  %v809_v11 = vpop.f32.mrf.mxu1  ;;  %v781_v51 = vadd.f32 %v780_v50, %v5230_v17  ;;  %v4449_v52 = vld [vmem:[%s5812_s2 + $0x5d8] sm:$0xff]  ;;  %2598 = vmatpush.bf16.msrb.mxu1 %v4433_v0 }
 0x118   :  { %2656 = vmatpush.bf16.msrb.mxu3 %v4449_v52  ;;  %v4439_v52 = vld [vmem:[%s5812_s2 + $0x588] sm:$0xff] }
 0x119   :  { %v810_v1 = vadd.f32 %v809_v11, %v781_v51  ;;  %2629 = vmatpush.bf16.msrb.mxu2 %v4439_v52 }
 0x11b   :  { %2599 = vmatpush.bf16.msrb.mxu1 %v4432_v28 }
 0x11c   :  { %2657 = vmatpush.bf16.msrb.mxu3 %v4448_v3  ;;  %v4438_v3 = vld [vmem:[%s5812_s2 + $0x580] sm:$0xff] }
 0x11d   :  { %2630 = vmatpush.bf16.msrb.mxu2 %v4438_v3 }
 0x11e   :  { %v838_v17 = vpop.f32.mrf.mxu2  ;;  %v1328_v18 = vpop.f32.mrf.mxu0 }
 0x11f   :  { %v5376_v10 = vpop.f32.mrf.mxu3  ;;  %v5378_v13 = vadd.f32 %v838_v17, %v810_v1  ;;  %v1357_v30 = vpop.f32.mrf.mxu1  ;;  %v1329_v23 = vadd.f32 %v1328_v18, %v5245_v25  ;;  %v4425_v25 = vld [vmem:[%s5812_s2 + $0x518] sm:$0xff]  ;;  %2600 = vmatpush.bf16.msrb.mxu1 %v4431_v2 }
 0x120   :  { %2120 = vmatpush.bf16.msrb.mxu0 %v4425_v25  ;;  %v4469_v2 = vld [vmem:[%s5812_s2 + $0x678] sm:$0xff] }
 0x121   :  { %v1358_v27 = vadd.f32 %v1357_v30, %v1329_v23  ;;  %2008 = vmatmul.bf16.vlgmr.msra.gmra.mxu0 %v4641_v44 }
 0x122   :  { %2037 = vmatmul.bf16.vlgmr.msra.gmra.mxu1 %v4643_v45 }
 0x123   :  { %2066 = vmatmul.bf16.vlgmr.msra.gmra.mxu2 %v4913_v14 }
 0x124   :  { %2095 = vmatmul.bf16.vlgmr.msra.gmra.mxu3 %v4915_v15  ;;  %2121 = vmatpush.bf16.msrb.mxu0 %v4424_v29 }
 0x126   :  { %v1386_v40 = vpop.f32.mrf.mxu2  ;;  %v1330_v46 = vpop.f32.mrf.mxu0 }
 0x127   :  { %v1415_v53 = vpop.f32.mrf.mxu3  ;;  %v1387_v41 = vadd.f32 %v1386_v40, %v1358_v27  ;;  %v1359_v50 = vpop.f32.mrf.mxu1  ;;  %v1331_v11 = vadd.f32 %v1330_v46, %v5262_v49  ;;  %v4447_v40 = vld [vmem:[%s5812_s2 + $0x5c8] sm:$0xff] }
 0x128   :  { %2658 = vmatpush.bf16.msrb.mxu3 %v4447_v40  ;;  %v4477_v40 = vld [vmem:[%s5812_s2 + $0x6b8] sm:$0xff] }
 0x129   :  { %v5398_v51 = vadd.f32 %v1415_v53, %v1387_v41  ;;  %v1360_v1 = vadd.f32 %v1359_v50, %v1331_v11  ;;  %2739 = vmatpush.bf16.msra.mxu2 %v4477_v40 }
 0x12e   :  { %v1388_v49 = vpop.f32.mrf.mxu2  ;;  %v1333_v30 = vpop.f32.mrf.mxu0 }
 0x12f   :  { %v1417_v17 = vpop.f32.mrf.mxu3  ;;  %v1389_v18 = vadd.f32 %v1388_v49, %v1360_v1  ;;  %v1362_v23 = vpop.f32.mrf.mxu1  ;;  %v1334_v24 = vadd.f32 %v1333_v30, %v5283_v4  ;;  %v4423_v4 = vld [vmem:[%s5812_s2 + $0x508] sm:$0xff]  ;;  %v4422_v49 = vld [vmem:[%s5812_s2 + $0x500] sm:$0xff] }
 0x130   :  { %2122 = vmatpush.bf16.msrb.mxu0 %v4423_v4  ;;  %v4430_v30 = vld [vmem:[%s5812_s2 + $0x540] sm:$0xff] }
 0x131   :  { %v5413_v27 = vadd.f32 %v1417_v17, %v1389_v18  ;;  %v1363_v25 = vadd.f32 %v1362_v23, %v1334_v24  ;;  %2013 = vmatmul.bf16.gmra.mxu0 %v4725_v8  ;;  %v4446_v17 = vld [vmem:[%s5812_s2 + $0x5c0] sm:$0xff]  ;;  %2601 = vmatpush.bf16.msrb.mxu1 %v4430_v30 }
 0x132   :  { %2042 = vmatmul.bf16.gmra.mxu1 %v4727_v9  ;;  %2659 = vmatpush.bf16.msrb.mxu3 %v4446_v17  ;;  %v4476_v17 = vld [vmem:[%s5812_s2 + $0x6b0] sm:$0xff] }
 0x133   :  { %2071 = vmatmul.bf16.gmra.mxu2 %v4965_v31 }
 0x134   :  { %2100 = vmatmul.bf16.gmra.mxu3 %v4967_v36  ;;  %2123 = vmatpush.bf16.msrb.mxu0 %v4422_v49 }
 0x135   :  { %2710 = vmatpush.bf16.msra.mxu1 %v4469_v2  ;;  %2740 = vmatpush.bf16.msra.mxu2 %v4476_v17 }
 0x136   :  { %v1391_v53 = vpop.f32.mrf.mxu2  ;;  %v1335_v50 = vpop.f32.mrf.mxu0 }
 0x137   :  { %v1420_v41 = vpop.f32.mrf.mxu3  ;;  %v1392_v46 = vadd.f32 %v1391_v53, %v1363_v25  ;;  %v1364_v11 = vpop.f32.mrf.mxu1  ;;  %v1336_v0 = vadd.f32 %v1335_v50, %v5300_v38  ;;  %v4485_v53 = vld [vmem:[%s5812_s2 + $0x6f8] sm:$0xff] }
 0x138   :  { %2768 = vmatpush.bf16.msra.mxu3 %v4485_v53  ;;  %v4475_v53 = vld [vmem:[%s5812_s2 + $0x6a8] sm:$0xff] }
 0x139   :  { %v5432_v1 = vadd.f32 %v1420_v41, %v1392_v46  ;;  %v1365_v29 = vadd.f32 %v1364_v11, %v1336_v0  ;;  %2741 = vmatpush.bf16.msra.mxu2 %v4475_v53 }
 0x13e   :  { %v1393_v38 = vpop.f32.mrf.mxu2  ;;  %v1338_v24 = vpop.f32.mrf.mxu0 }
 0x13f   :  { %v1422_v18 = vpop.f32.mrf.mxu3  ;;  %v1394_v23 = vadd.f32 %v1393_v38, %v1365_v29  ;;  %v1367_v28 = vpop.f32.mrf.mxu1  ;;  %v1339_v25 = vadd.f32 %v1338_v24, %v5321_v55  ;;  %v4461_v55 = vld [vmem:[%s5812_s2 + $0x638] sm:$0xff]  ;;  %v4460_v38 = vld [vmem:[%s5812_s2 + $0x630] sm:$0xff] }
 0x140   :  { %2681 = vmatpush.bf16.msra.mxu0 %v4461_v55 }
 0x141   :  { %v5450_v52 = vadd.f32 %v1422_v18, %v1394_v23  ;;  %v1368_v4 = vadd.f32 %v1367_v28, %v1339_v25  ;;  %2018 = vmatmul.bf16.gmra.mxu0 %v4803_v34  ;;  %v4484_v18 = vld [vmem:[%s5812_s2 + $0x6f0] sm:$0xff] }
 0x142   :  { %2047 = vmatmul.bf16.gmra.mxu1 %v4805_v35  ;;  %2769 = vmatpush.bf16.msra.mxu3 %v4484_v18  ;;  %v4468_v25 = vld [vmem:[%s5812_s2 + $0x670] sm:$0xff]  ;;  %v4474_v18 = vld [vmem:[%s5812_s2 + $0x6a0] sm:$0xff] }
 0x143   :  { %2076 = vmatmul.bf16.gmra.mxu2 %v5017_v60  ;;  %2711 = vmatpush.bf16.msra.mxu1 %v4468_v25 }
 0x144   :  { %2105 = vmatmul.bf16.gmra.mxu3 %v5019_v61  ;;  %2682 = vmatpush.bf16.msra.mxu0 %v4460_v38 }
 0x145   :  { %2742 = vmatpush.bf16.msra.mxu2 %v4474_v18  ;;  %v4472_v18 = vld [vmem:[%s5812_s2 + $0x690] sm:$0xff] }
 0x146   :  { %v1396_v41 = vpop.f32.mrf.mxu2  ;;  %v1340_v11 = vpop.f32.mrf.mxu0 }
 0x147   :  { %v1425_v46 = vpop.f32.mrf.mxu3  ;;  %v1397_v50 = vadd.f32 %v1396_v41, %v1368_v4  ;;  %v1369_v0 = vpop.f32.mrf.mxu1  ;;  %v1341_v29 = vadd.f32 %v1340_v11, %v5338_v22  ;;  %v4483_v41 = vld [vmem:[%s5812_s2 + $0x6e8] sm:$0xff] }
 0x148   :  { %2770 = vmatpush.bf16.msra.mxu3 %v4483_v41 }
 0x149   :  { %v5469_v3 = vadd.f32 %v1425_v46, %v1397_v50  ;;  %v1370_v49 = vadd.f32 %v1369_v0, %v1341_v29  ;;  %v4467_v29 = vld [vmem:[%s5812_s2 + $0x668] sm:$0xff] }
 0x14a   :  { %2712 = vmatpush.bf16.msra.mxu1 %v4467_v29 }
 0x14e   :  { %v1398_v30 = vpop.f32.mrf.mxu2  ;;  %v1343_v24 = vpop.f32.mrf.mxu0 }
 0x14f   :  { %v1427_v23 = vpop.f32.mrf.mxu3  ;;  %v1399_v22 = vadd.f32 %v1398_v30, %v1370_v49  ;;  %v1372_v28 = vpop.f32.mrf.mxu1  ;;  %v1344_v4 = vadd.f32 %v1343_v24, %v5359_v47  ;;  %v4459_v47 = vld [vmem:[%s5812_s2 + $0x628] sm:$0xff]  ;;  %v4458_v30 = vld [vmem:[%s5812_s2 + $0x620] sm:$0xff] }
 0x150   :  { %2683 = vmatpush.bf16.msra.mxu0 %v4459_v47 }
 0x151   :  { %v5484_v40 = vadd.f32 %v1427_v23, %v1399_v22  ;;  %v1373_v55 = vadd.f32 %v1372_v28, %v1344_v4  ;;  %2023 = vmatmul.bf16.gmra.mxu0 %v4863_v58  ;;  %v4482_v23 = vld [vmem:[%s5812_s2 + $0x6e0] sm:$0xff] }
 0x152   :  { %2052 = vmatmul.bf16.gmra.mxu1 %v4865_v59  ;;  %2771 = vmatpush.bf16.msra.mxu3 %v4482_v23  ;;  %v4466_v4 = vld [vmem:[%s5812_s2 + $0x660] sm:$0xff]  ;;  %v4480_v23 = vld [vmem:[%s5812_s2 + $0x6d0] sm:$0xff] }
 0x153   :  { %2081 = vmatmul.bf16.gmra.mxu2 %v5066_v19  ;;  %2713 = vmatpush.bf16.msra.mxu1 %v4466_v4 }
 0x154   :  { %2110 = vmatmul.bf16.gmra.mxu3 %v5068_v20  ;;  %2684 = vmatpush.bf16.msra.mxu0 %v4458_v30  ;;  %v4456_v30 = vld [vmem:[%s5812_s2 + $0x610] sm:$0xff] }
 0x156   :  { %v1401_v46 = vpop.f32.mrf.mxu2  ;;  %v1345_v0 = vpop.f32.mrf.mxu0 }
 0x157   :  { %v1430_v50 = vpop.f32.mrf.mxu3  ;;  %v1402_v11 = vadd.f32 %v1401_v46, %v1373_v55  ;;  %v1374_v2 = vpop.f32.mrf.mxu1  ;;  %v1346_v49 = vadd.f32 %v1345_v0, %v5376_v10  ;;  %v4457_v46 = vld [vmem:[%s5812_s2 + $0x618] sm:$0xff] }
 0x158   :  { %2685 = vmatpush.bf16.msra.mxu0 %v4457_v46  ;;  %v4471_v46 = vld [vmem:[%s5812_s2 + $0x688] sm:$0xff] }
 0x159   :  { %v5503_v17 = vadd.f32 %v1430_v50, %v1402_v11  ;;  %v1375_v38 = vadd.f32 %v1374_v2, %v1346_v49  ;;  %v4481_v50 = vld [vmem:[%s5812_s2 + $0x6d8] sm:$0xff] }
 0x15a   :  { %2772 = vmatpush.bf16.msra.mxu3 %v4481_v50  ;;  %v4465_v2 = vld [vmem:[%s5812_s2 + $0x658] sm:$0xff]  ;;  %v4479_v50 = vld [vmem:[%s5812_s2 + $0x6c8] sm:$0xff] }
 0x15b   :  { %2714 = vmatpush.bf16.msra.mxu1 %v4465_v2 }
 0x15c   :  { %2686 = vmatpush.bf16.msra.mxu0 %v4456_v30  ;;  %v4454_v30 = vld [vmem:[%s5812_s2 + $0x600] sm:$0xff] }
 0x15e   :  { %v1403_v22 = vpop.f32.mrf.mxu2  ;;  %v1444_v28 = vpop.f32.mrf.mxu0  ;;  %2773 = vmatpush.bf16.msra.mxu3 %v4480_v23  ;;  %v4478_v23 = vld [vmem:[%s5812_s2 + $0x6c0] sm:$0xff] }
 0x15f   :  { %v1432_v24 = vpop.f32.mrf.mxu3  ;;  %v1404_v10 = vadd.f32 %v1403_v22, %v1375_v38  ;;  %v1473_v25 = vpop.f32.mrf.mxu1  ;;  %v1445_v55 = vadd.f32 %v1444_v28, %v5398_v51  ;;  %v4473_v51 = vld [vmem:[%s5812_s2 + $0x698] sm:$0xff] }
 0x160   :  { %2743 = vmatpush.bf16.msra.mxu2 %v4473_v51 }
 0x161   :  { %v5518_v53 = vadd.f32 %v1432_v24, %v1404_v10  ;;  %v5520_v47 = vadd.f32 %v1473_v25, %v1445_v55  ;;  %2124 = vmatmul.bf16.vlgmr.msrb.gmra.mxu0 %v4917_v16  ;;  %v4464_v25 = vld [vmem:[%s5812_s2 + $0x650] sm:$0xff] }
 0x162   :  { %2602 = vmatmul.bf16.vlgmr.msrb.gmra.mxu1 %v4637_v42  ;;  %2774 = vmatpush.bf16.msra.mxu3 %v4479_v50 }
 0x163   :  { %2631 = vmatmul.bf16.vlgmr.msrb.gmra.mxu2 %v4639_v43  ;;  %2715 = vmatpush.bf16.msra.mxu1 %v4464_v25 }
 0x164   :  { %2660 = vmatmul.bf16.vlgmr.msrb.gmra.mxu3 %v4641_v44  ;;  %2744 = vmatpush.bf16.msra.mxu2 %v4472_v18  ;;  %v4470_v18 = vld [vmem:[%s5812_s2 + $0x680] sm:$0xff] }
 0x166   :  { %v1951_v42 = vpop.f32.mrf.mxu2  ;;  %v1446_v44 = vpop.f32.mrf.mxu0  ;;  %2775 = vmatpush.bf16.msra.mxu3 %v4478_v23 }
 0x167   :  { %v1980_v11 = vpop.f32.mrf.mxu3  ;;  %v1475_v0 = vpop.f32.mrf.mxu1  ;;  %v1447_v29 = vadd.f32 %v1446_v44, %v5413_v27  ;;  %v4463_v44 = vld [vmem:[%s5812_s2 + $0x648] sm:$0xff] }
 0x168   :  { %v5537_v43 = vadd.f32 %v1980_v11, %v1951_v42  ;;  %2745 = vmatpush.bf16.msra.mxu2 %v4471_v46  ;;  %2716 = vmatpush.bf16.msra.mxu1 %v4463_v44 }
 0x169   :  { %v5543_v49 = vadd.f32 %v1475_v0, %v1447_v29 }
 0x16c   :  { %2746 = vmatpush.bf16.msra.mxu2 %v4470_v18 }
 0x16e   :  { %v1953_v22 = vpop.f32.mrf.mxu2  ;;  %v1449_v10 = vpop.f32.mrf.mxu0 }
 0x16f   :  { %v1982_v27 = vpop.f32.mrf.mxu3  ;;  %v1478_v28 = vpop.f32.mrf.mxu1  ;;  %v1450_v4 = vadd.f32 %v1449_v10, %v5432_v1  ;;  %v4455_v1 = vld [vmem:[%s5812_s2 + $0x608] sm:$0xff] }
 0x170   :  { %v5556_v24 = vadd.f32 %v1982_v27, %v1953_v22  ;;  %2687 = vmatpush.bf16.msra.mxu0 %v4455_v1  ;;  %v4462_v27 = vld [vmem:[%s5812_s2 + $0x640] sm:$0xff] }
 0x171   :  { %v5562_v55 = vadd.f32 %v1478_v28, %v1450_v4  ;;  %2129 = vmatmul.bf16.gmra.mxu0 %v4969_v37  ;;  %2717 = vmatpush.bf16.msra.mxu1 %v4462_v27 }
 0x172   :  { %2607 = vmatmul.bf16.gmra.mxu1 %v4721_v6 }
 0x173   :  { %2636 = vmatmul.bf16.gmra.mxu2 %v4723_v7 }
 0x174   :  { %2665 = vmatmul.bf16.gmra.mxu3 %v4725_v8  ;;  %2688 = vmatpush.bf16.msra.mxu0 %v4454_v30 }
 0x176   :  { %v1956_v6 = vpop.f32.mrf.mxu2  ;;  %v1451_v8 = vpop.f32.mrf.mxu0 }
 0x177   :  { %v1985_v42 = vpop.f32.mrf.mxu3  ;;  %v1480_v11 = vpop.f32.mrf.mxu1  ;;  %v1452_v0 = vadd.f32 %v1451_v8, %v5450_v52 }
 0x178   :  { %v5579_v7 = vadd.f32 %v1985_v42, %v1956_v6 }
 0x179   :  { %v5585_v2 = vadd.f32 %v1480_v11, %v1452_v0 }
 0x17e   :  { %v1958_v22 = vpop.f32.mrf.mxu2  ;;  %v1454_v28 = vpop.f32.mrf.mxu0 }
 0x17f   :  { %v1987_v52 = vpop.f32.mrf.mxu3  ;;  %v1483_v25 = vpop.f32.mrf.mxu1  ;;  %v1455_v4 = vadd.f32 %v1454_v28, %v5469_v3 }
 0x180   :  { %v5601_v10 = vadd.f32 %v1987_v52, %v1958_v22 }
 0x181   :  { %v5604_v46 = vadd.f32 %v1483_v25, %v1455_v4  ;;  %2134 = vmatmul.bf16.gmra.mxu0 %v5021_v62 }
 0x182   :  { %2612 = vmatmul.bf16.gmra.mxu1 %v4799_v32 }
 0x183   :  { %2641 = vmatmul.bf16.gmra.mxu2 %v4801_v33 }
 0x184   :  { %2670 = vmatmul.bf16.gmra.mxu3 %v4803_v34 }
 0x186   :  { %v1961_v50 = vpop.f32.mrf.mxu2  ;;  %v1456_v8 = vpop.f32.mrf.mxu0 }
 0x187   :  { %v1990_v6 = vpop.f32.mrf.mxu3  ;;  %v1485_v3 = vpop.f32.mrf.mxu1  ;;  %v1457_v11 = vadd.f32 %v1456_v8, %v5484_v40 }
 0x188   :  { %v5612_v42 = vadd.f32 %v1990_v6, %v1961_v50 }
 0x189   :  { %v5615_v44 = vadd.f32 %v1485_v3, %v1457_v11 }
 0x18e   :  { %v1963_v0 = vpop.f32.mrf.mxu2  ;;  %v1459_v34 = vpop.f32.mrf.mxu0 }
 0x18f   :  { %v1992_v33 = vpop.f32.mrf.mxu3  ;;  %v1488_v30 = vpop.f32.mrf.mxu1  ;;  %v1460_v23 = vadd.f32 %v1459_v34, %v5503_v17  ;;  %v2822_v34 = vld [vmem:[%s5814_s1 + $0x8] sm:$0xff] }
 0x190   :  { %v5619_v18 = vadd.f32 %v1992_v33, %v1963_v0 }
 0x191   :  { %v5622_v22 = vadd.f32 %v1488_v30, %v1460_v23  ;;  %2139 = vmatmul.bf16.gmra.mxu0 %v5070_v21 }
 0x192   :  { %2617 = vmatmul.bf16.gmra.mxu1 %v4859_v56  ;;  %v2821_v56 = vld [vmem:[%s5814_s1] sm:$0xff] }
 0x193   :  { %2646 = vmatmul.bf16.gmra.mxu2 %v4861_v57  ;;  %v4490_v57 = vmov 0  }
 0x194   :  { %2675 = vmatmul.bf16.gmra.mxu3 %v4863_v58  ;;  %4487 = vset.pattern.permute.xlu0 %v4490_v57 }
 0x195   :  { %4488 = vset.pattern.permute.xlu1 %v4490_v57  ;;  %2831 = vperm.xlu0 %4487, %v2821_v56  }
 0x196   :  { %v1966_v52 = vpop.f32.mrf.mxu2  ;;  %v1461_v25 = vpop.f32.mrf.mxu0  ;;  %4489 = vset.pattern.permute.xlu2 %v4490_v57 }
 0x197   :  { %v1995_v27 = vpop.f32.mrf.mxu3  ;;  %v1490_v4 = vpop.f32.mrf.mxu1  ;;  %v1462_v17 = vadd.f32 %v1461_v25, %v5518_v53 }
 0x198   :  { %v5630_v28 = vadd.f32 %v1995_v27, %v1966_v52 }
 0x199   :  { %v5633_v50 = vadd.f32 %v1490_v4, %v1462_v17 }
 0x19b   :  { %5817 = vst [vmem:[#allocation2_spill] sm:$0xff] %v5633_v50 }
 0x19d   :  { %2836 = vperm.xlu0 %4487, %v2822_v34  }
 0x19e   :  { %v1968_v6 = vpop.f32.mrf.mxu2  ;;  %v2009_v11 = vpop.f32.mrf.mxu0 }
 0x19f   :  { %v1997_v8 = vpop.f32.mrf.mxu3  ;;  %v2038_v53 = vpop.f32.mrf.mxu1  ;;  %v2010_v0 = vadd.f32 %v2009_v11, %v5537_v43 }
 0x1a0   :  { %v5640_v3 = vadd.f32 %v1997_v8, %v1968_v6 }
 0x1a1   :  { %v2039_v33 = vadd.f32 %v2038_v53, %v2010_v0  ;;  %2689 = vmatmul.bf16.vlgmr.msra.gmra.mxu0 %v4643_v45 }
 0x1a2   :  { %2718 = vmatmul.bf16.vlgmr.msra.gmra.mxu1 %v4913_v14  ;;  %v2823_v14 = vld [vmem:[%s5814_s1 + $0x10] sm:$0xff] }
 0x1a3   :  { %2747 = vmatmul.bf16.vlgmr.msra.gmra.mxu2 %v4915_v15  ;;  %2841 = vperm.xlu1 %4488, %v2823_v14  }
 0x1a4   :  { %2776 = vmatmul.bf16.vlgmr.msra.gmra.mxu3 %v4917_v16 }
 0x1a6   :  { %v2067_v30 = vpop.f32.mrf.mxu2  ;;  %v2011_v27 = vpop.f32.mrf.mxu0 }
 0x1a7   :  { %v2096_v23 = vpop.f32.mrf.mxu3  ;;  %v2068_v52 = vadd.f32 %v2067_v30, %v2039_v33  ;;  %v2040_v25 = vpop.f32.mrf.mxu1  ;;  %v2012_v43 = vadd.f32 %v2011_v27, %v5556_v24  ;;  %v2824_v24 = vld [vmem:[%s5814_s1 + $0x18] sm:$0xff] }
 0x1a9   :  { %v5651_v4 = vadd.f32 %v2096_v23, %v2068_v52  ;;  %v2041_v45 = vadd.f32 %v2040_v25, %v2012_v43 }
 0x1ab   :  { %2846 = vperm.xlu1 %4488, %v2824_v24  }
 0x1ae   :  { %v2069_v15 = vpop.f32.mrf.mxu2  ;;  %v2014_v56 = vpop.f32.mrf.mxu0 }
 0x1af   :  { %v2098_v16 = vpop.f32.mrf.mxu3  ;;  %v2070_v17 = vadd.f32 %v2069_v15, %v2041_v45  ;;  %v2043_v57 = vpop.f32.mrf.mxu1  ;;  %v2015_v6 = vadd.f32 %v2014_v56, %v5579_v7  ;;  %v2828_v45 = vld [vmem:[%s5814_s1 + $0x38] sm:$0xff] }
 0x1b1   :  { %v5657_v8 = vadd.f32 %v2098_v16, %v2070_v17  ;;  %v2044_v11 = vadd.f32 %v2043_v57, %v2015_v6  ;;  %2694 = vmatmul.bf16.gmra.mxu0 %v4727_v9 }
 0x1b2   :  { %2723 = vmatmul.bf16.gmra.mxu1 %v4965_v31 }
 0x1b3   :  { %2752 = vmatmul.bf16.gmra.mxu2 %v4967_v36  ;;  %2866 = vperm.xlu1 %4488, %v2828_v45  }
 0x1b4   :  { %2781 = vmatmul.bf16.gmra.mxu3 %v4969_v37 }
 0x1b6   :  { %v2072_v53 = vpop.f32.mrf.mxu2  ;;  %v2016_v7 = vpop.f32.mrf.mxu0 }
 0x1b7   :  { %v2101_v0 = vpop.f32.mrf.mxu3  ;;  %v2073_v33 = vadd.f32 %v2072_v53, %v2044_v11  ;;  %v2045_v34 = vpop.f32.mrf.mxu1  ;;  %v2017_v30 = vadd.f32 %v2016_v7, %v5601_v10  ;;  %v2827_v10 = vld [vmem:[%s5814_s1 + $0x30] sm:$0xff] }
 0x1b8   :  { %2861 = vperm.xlu0 %4487, %v2827_v10  }
 0x1b9   :  { %v5667_v23 = vadd.f32 %v2101_v0, %v2073_v33  ;;  %v2046_v9 = vadd.f32 %v2045_v34, %v2017_v30 }
 0x1be   :  { %v2074_v31 = vpop.f32.mrf.mxu2  ;;  %v2019_v27 = vpop.f32.mrf.mxu0 }
 0x1bf   :  { %v2103_v52 = vpop.f32.mrf.mxu3  ;;  %v2075_v36 = vadd.f32 %v2074_v31, %v2046_v9  ;;  %v2048_v37 = vpop.f32.mrf.mxu1  ;;  %v2020_v25 = vadd.f32 %v2019_v27, %v5612_v42 }
 0x1c1   :  { %v5670_v43 = vadd.f32 %v2103_v52, %v2075_v36  ;;  %v2049_v14 = vadd.f32 %v2048_v37, %v2020_v25  ;;  %2699 = vmatmul.bf16.gmra.mxu0 %v4805_v35  ;;  %v2826_v36 = vld [vmem:[%s5814_s1 + $0x28] sm:$0xff] }
 0x1c2   :  { %2728 = vmatmul.bf16.gmra.mxu1 %v5017_v60 }
 0x1c3   :  { %2757 = vmatmul.bf16.gmra.mxu2 %v5019_v61 }
 0x1c4   :  { %2786 = vmatmul.bf16.gmra.mxu3 %v5021_v62  ;;  %v2825_v62 = vld [vmem:[%s5814_s1 + $0x20] sm:$0xff] }
 0x1c5   :  { %2851 = vperm.xlu2 %4489, %v2825_v62  }
 0x1c6   :  { %v2077_v42 = vpop.f32.mrf.mxu2  ;;  %v2021_v17 = vpop.f32.mrf.mxu0 }
 0x1c7   :  { %v2106_v15 = vpop.f32.mrf.mxu3  ;;  %v2078_v16 = vadd.f32 %v2077_v42, %v2049_v14  ;;  %v2050_v56 = vpop.f32.mrf.mxu1  ;;  %v2022_v57 = vadd.f32 %v2021_v17, %v5619_v18 }
 0x1c9   :  { %v2107_v6 = vadd.f32 %v2106_v15, %v2078_v16  ;;  %v2051_v11 = vadd.f32 %v2050_v56, %v2022_v57 }
 0x1cd   :  { %2856 = vperm.xlu2 %4489, %v2826_v36  }
 0x1ce   :  { %v2079_v24 = vpop.f32.mrf.mxu2  ;;  %v2024_v0 = vpop.f32.mrf.mxu0 }
 0x1cf   :  { %v2108_v53 = vpop.f32.mrf.mxu3  ;;  %v2080_v35 = vadd.f32 %v2079_v24, %v2051_v11  ;;  %v2053_v60 = vpop.f32.mrf.mxu1  ;;  %v2025_v61 = vadd.f32 %v2024_v0, %v5630_v28 }
 0x1d1   :  { %v2109_v33 = vadd.f32 %v2108_v53, %v2080_v35  ;;  %v2054_v7 = vadd.f32 %v2053_v60, %v2025_v61  ;;  %2704 = vmatmul.bf16.gmra.mxu0 %v4865_v59 }
 0x1d2   :  { %2733 = vmatmul.bf16.gmra.mxu1 %v5066_v19 }
 0x1d3   :  { %2762 = vmatmul.bf16.gmra.mxu2 %v5068_v20 }
 0x1d4   :  { %2791 = vmatmul.bf16.gmra.mxu3 %v5070_v21 }
 0x1d6   :  { %v2082_v18 = vpop.f32.mrf.mxu2  ;;  %v2026_v9 = vpop.f32.mrf.mxu0 }
 0x1d7   :  { %v2111_v34 = vpop.f32.mrf.mxu3  ;;  %v2083_v30 = vadd.f32 %v2082_v18, %v2054_v7  ;;  %v2055_v28 = vpop.f32.mrf.mxu1  ;;  %v2027_v31 = vadd.f32 %v2026_v9, %v5640_v3 }
 0x1d9   :  { %v2112_v52 = vadd.f32 %v2111_v34, %v2083_v30  ;;  %v2056_v59 = vadd.f32 %v2055_v28, %v2027_v31 }
 0x1de   :  { %v2084_v19 = vpop.f32.mrf.mxu2  ;;  %v2125_v37 = vpop.f32.mrf.mxu0 }
 0x1df   :  { %v2113_v27 = vpop.f32.mrf.mxu3  ;;  %v2085_v20 = vadd.f32 %v2084_v19, %v2056_v59  ;;  %v2603_v21 = vpop.f32.mrf.mxu1  ;;  %v2126_v25 = vadd.f32 %v2125_v37, %v5651_v4 }
 0x1e1   :  { %v2114_v45 = vadd.f32 %v2113_v27, %v2085_v20 }
 0x1e6   :  { %v2632_v10 = vpop.f32.mrf.mxu2  ;;  %v2127_v42 = vpop.f32.mrf.mxu0 }
 0x1e7   :  { %v2661_v14 = vpop.f32.mrf.mxu3  ;;  %v2605_v15 = vpop.f32.mrf.mxu1  ;;  %v5697_v3 = vadd.f32 %v2127_v42, %v5657_v8 }
 0x1ee   :  { %v2634_v16 = vpop.f32.mrf.mxu2  ;;  %v2130_v56 = vpop.f32.mrf.mxu0 }
 0x1ef   :  { %v2663_v17 = vpop.f32.mrf.mxu3  ;;  %v2608_v57 = vpop.f32.mrf.mxu1  ;;  %v5700_v11 = vadd.f32 %v2130_v56, %v5667_v23 }
 0x1f6   :  { %v2637_v24 = vpop.f32.mrf.mxu2  ;;  %v2132_v35 = vpop.f32.mrf.mxu0 }
 0x1f7   :  { %v2666_v53 = vpop.f32.mrf.mxu3  ;;  %v2610_v0 = vpop.f32.mrf.mxu1  ;;  %v5703_v4 = vadd.f32 %v2132_v35, %v5670_v43 }
 0x1fe   :  { %v2639_v60 = vpop.f32.mrf.mxu2  ;;  %v2135_v62 = vpop.f32.mrf.mxu0 }
 0x1ff   :  { %v2668_v61 = vpop.f32.mrf.mxu3  ;;  %v5705_v7 = vpop.f32.mrf.mxu1  ;;  %v5707_v8 = vadd.f32 %v2135_v62, %v2107_v6 }
 0x206   :  { %v5709_v18 = vpop.f32.mrf.mxu2  ;;  %v2137_v23 = vpop.f32.mrf.mxu0 }
 0x207   :  { %v5711_v34 = vpop.f32.mrf.mxu3  ;;  %v5713_v30 = vpop.f32.mrf.mxu1  ;;  %v5715_v9 = vadd.f32 %v2137_v23, %v2109_v33  ;;  %v2633_v33 = vadd.f32 %v2632_v10, %v2603_v21  ;;  %v2638_v21 = vadd.f32 %v2637_v24, %v2608_v57 }
 0x209   :  { %v2662_v35 = vadd.f32 %v2661_v14, %v2633_v33  ;;  %v5818_v14 = vmax.f32 %v5247_v26, %v5520_v47 }
 0x20e   :  { %v5717_v28 = vpop.f32.mrf.mxu2  ;;  %v2140_v31 = vpop.f32.mrf.mxu0 }
 0x20f   :  { %v5719_v43 = vpop.f32.mrf.mxu3  ;;  %v5721_v36 = vpop.f32.mrf.mxu1  ;;  %v5723_v59 = vadd.f32 %v2140_v31, %v2112_v52  ;;  %v2635_v52 = vadd.f32 %v2634_v16, %v2605_v15 }
 0x211   :  { %v2664_v1 = vadd.f32 %v2663_v17, %v2635_v52 }
 0x216   :  { %v5725_v6 = vpop.f32.mrf.mxu2  ;;  %v2142_v27 = vpop.f32.mrf.mxu0 }
 0x217   :  { %v5727_v19 = vpop.f32.mrf.mxu3  ;;  %v5729_v20 = vpop.f32.mrf.mxu1  ;;  %v5731_v37 = vadd.f32 %v2142_v27, %v2114_v45 }
 0x218   :  { %v2832_v27 = vpop.permute.xlu0 %2831 }
 0x21e   :  { %v5733_v42 = vpop.f32.mrf.mxu2  ;;  %v2690_v62 = vpop.f32.mrf.mxu0 }
 0x21f   :  { %v5735_v56 = vpop.f32.mrf.mxu3  ;;  %v2719_v23 = vpop.f32.mrf.mxu1  ;;  %v2691_v58 = vadd.f32 %v2690_v62, %v2662_v35 }
 0x220   :  { %v2837_v26 = vpop.permute.xlu0 %2836 }
 0x221   :  { %v2720_v31 = vadd.f32 %v2719_v23, %v2691_v58  ;;  %v2667_v58 = vadd.f32 %v2666_v53, %v2638_v21 }
 0x226   :  { %v2748_v40 = vpop.f32.mrf.mxu2  ;;  %v2692_v51 = vpop.f32.mrf.mxu0 }
 0x227   :  { %v2777_v32 = vpop.f32.mrf.mxu3  ;;  %v2749_v29 = vadd.f32 %v2748_v40, %v2720_v31  ;;  %v2721_v38 = vpop.f32.mrf.mxu1  ;;  %v2693_v45 = vadd.f32 %v2692_v51, %v2664_v1  ;;  %v5819_v1 = vmax.f32 %v5264_v12, %v5543_v49  ;;  %v2643_v31 = vadd.f32 %v5709_v18, %v5705_v7 }
 0x228   :  { %v2645_v18 = vadd.f32 %v5717_v28, %v5713_v30  ;;  %v2852_v28 = vpop.permute.xlu2 %2851 }
 0x229   :  { %v2778_v41 = vadd.f32 %v2777_v32, %v2749_v29  ;;  %v2722_v50 = vadd.f32 %v2721_v38, %v2693_v45  ;;  %v2640_v38 = vadd.f32 %v2639_v60, %v2610_v0  ;;  %v2842_v60 = vpop.permute.xlu1 %2841 }
 0x22b   :  { %v2805_v10 = vmax.f32 %v2126_v25, %v2778_v41  ;;  %v2669_v57 = vadd.f32 %v2668_v61, %v2640_v38  ;;  %v5820_v61 = vmax.f32 %v5285_v5, %v5562_v55 }
 0x22d   :  { %v2813_v33 = vmax.f32 %v5818_v14, %v2805_v10  ;;  %v2672_v10 = vadd.f32 %v5711_v34, %v2643_v31  ;;  %v5821_v34 = vmax.f32 %v5305_v39, %v5585_v2  ;;  %v2648_v39 = vadd.f32 %v5725_v6, %v5721_v36 }
 0x22e   :  { %v2750_v35 = vpop.f32.mrf.mxu2  ;;  %v2695_v17 = vpop.f32.mrf.mxu0 }
 0x22f   :  { %v2779_v15 = vpop.f32.mrf.mxu3  ;;  %v2869_v16 = vadd.f32 %v2832_v27, %v2813_v33  ;;  %v2751_v62 = vadd.f32 %v2750_v35, %v2722_v50  ;;  %v2724_v40 = vpop.f32.mrf.mxu1  ;;  %v2696_v41 = vadd.f32 %v2695_v17, %v2667_v58 }
 0x231   :  { %2878 = vst.msk [vmem:[%s5815_s3] sm:$0xff] %vm2877_vm0, %v2869_v16  ;;  %v2780_v51 = vadd.f32 %v2779_v15, %v2751_v62  ;;  %v2725_v47 = vadd.f32 %v2724_v40, %v2696_v41  ;;  %v2847_v55 = vpop.permute.xlu1 %2846  ;;  %v2674_v40 = vadd.f32 %v5719_v43, %v2645_v18  ;;  %v5822_v43 = vmax.f32 %v5323_v63, %v5604_v46  ;;  %v2857_v46 = vpop.permute.xlu2 %2856 }
 0x233   :  { %v2806_v29 = vmax.f32 %v5697_v3, %v2780_v51 }
 0x235   :  { %v2814_v32 = vmax.f32 %v5819_v1, %v2806_v29 }
 0x236   :  { %v2753_v25 = vpop.f32.mrf.mxu2  ;;  %v2697_v23 = vpop.f32.mrf.mxu0 }
 0x237   :  { %v2782_v50 = vpop.f32.mrf.mxu3  ;;  %v2870_v24 = vadd.f32 %v2837_v26, %v2814_v32  ;;  %v2754_v53 = vadd.f32 %v2753_v25, %v2725_v47  ;;  %v2726_v52 = vpop.f32.mrf.mxu1  ;;  %v2698_v3 = vadd.f32 %v2697_v23, %v2669_v57  ;;  %v2677_v25 = vadd.f32 %v5727_v19, %v2648_v39 }
 0x238   :  { %v5823_v19 = vmax.f32 %v5340_v54, %v5615_v44  ;;  %v5824_v54 = vmax.f32 %v5361_v48, %v5622_v22 }
 0x239   :  { %2879 = vst.msk [vmem:[%s5815_s3 + $0x8] sm:$0xff] %vm2877_vm0, %v2870_v24  ;;  %v2783_v0 = vadd.f32 %v2782_v50, %v2754_v53  ;;  %v2727_v49 = vadd.f32 %v2726_v52, %v2698_v3  ;;  %v2650_v53 = vadd.f32 %v5733_v42, %v5729_v20  ;;  %v2867_v48 = vpop.permute.xlu1 %2866 }
 0x23b   :  { %v2807_v12 = vmax.f32 %v5700_v11, %v2783_v0 }
 0x23d   :  { %v2815_v45 = vmax.f32 %v5820_v61, %v2807_v12 }
 0x23e   :  { %v2755_v27 = vpop.f32.mrf.mxu2  ;;  %v2700_v35 = vpop.f32.mrf.mxu0 }
 0x23f   :  { %v2784_v21 = vpop.f32.mrf.mxu3  ;;  %v2871_v14 = vadd.f32 %v2842_v60, %v2815_v45  ;;  %v2756_v33 = vadd.f32 %v2755_v27, %v2727_v49  ;;  %v2729_v15 = vpop.f32.mrf.mxu1  ;;  %v2701_v11 = vadd.f32 %v2700_v35, %v2672_v10  ;;  %v2679_v60 = vadd.f32 %v5735_v56, %v2650_v53 }
 0x240   :  { %v2862_v27 = vpop.permute.xlu0 %2861 }
 0x241   :  { %2880 = vst.msk [vmem:[%s5815_s3 + $0x10] sm:$0xff] %vm2877_vm0, %v2871_v14  ;;  %v2785_v7 = vadd.f32 %v2784_v21, %v2756_v33  ;;  %v2730_v58 = vadd.f32 %v2729_v15, %v2701_v11 }
 0x243   :  { %v2808_v5 = vmax.f32 %v5703_v4, %v2785_v7 }
 0x245   :  { %v2816_v16 = vmax.f32 %v5821_v34, %v2808_v5 }
 0x246   :  { %v2758_v62 = vpop.f32.mrf.mxu2  ;;  %v2702_v38 = vpop.f32.mrf.mxu0 }
 0x247   :  { %v2787_v17 = vpop.f32.mrf.mxu3  ;;  %v2872_v51 = vadd.f32 %v2847_v55, %v2816_v16  ;;  %v2759_v41 = vadd.f32 %v2758_v62, %v2730_v58  ;;  %v2731_v29 = vpop.f32.mrf.mxu1  ;;  %v2703_v30 = vadd.f32 %v2702_v38, %v2674_v40 }
 0x249   :  { %2881 = vst.msk [vmem:[%s5815_s3 + $0x18] sm:$0xff] %vm2877_vm0, %v2872_v51  ;;  %v2788_v4 = vadd.f32 %v2787_v17, %v2759_v41  ;;  %v2732_v26 = vadd.f32 %v2731_v29, %v2703_v30 }
 0x24b   :  { %v2809_v2 = vmax.f32 %v5707_v8, %v2788_v4 }
 0x24d   :  { %v2817_v47 = vmax.f32 %v5822_v43, %v2809_v2 }
 0x24e   :  { %v2760_v1 = vpop.f32.mrf.mxu2  ;;  %v2705_v24 = vpop.f32.mrf.mxu0 }
 0x24f   :  { %v2789_v32 = vpop.f32.mrf.mxu3  ;;  %v2873_v50 = vadd.f32 %v2852_v28, %v2817_v47  ;;  %v2761_v57 = vadd.f32 %v2760_v1, %v2732_v26  ;;  %v2706_v6 = vadd.f32 %v2705_v24, %v2677_v25  ;;  %v2734_v8 = vpop.f32.mrf.mxu1 }
 0x251   :  { %2882 = vst.msk [vmem:[%s5815_s3 + $0x20] sm:$0xff] %vm2877_vm0, %v2873_v50  ;;  %v2790_v36 = vadd.f32 %v2789_v32, %v2761_v57  ;;  %v2735_v23 = vadd.f32 %v2734_v8, %v2706_v6 }
 0x253   :  { %v2810_v63 = vmax.f32 %v5715_v9, %v2790_v36 }
 0x255   :  { %v2818_v52 = vmax.f32 %v5823_v19, %v2810_v63 }
 0x256   :  { %v2763_v0 = vpop.f32.mrf.mxu2  ;;  %v2707_v49 = vpop.f32.mrf.mxu0 }
 0x257   :  { %v2792_v3 = vpop.f32.mrf.mxu3  ;;  %v2874_v31 = vadd.f32 %v2857_v46, %v2818_v52  ;;  %v2764_v12 = vadd.f32 %v2763_v0, %v2735_v23  ;;  %v2708_v9 = vadd.f32 %v2707_v49, %v2679_v60  ;;  %v2736_v61 = vpop.f32.mrf.mxu1 }
 0x259   :  { %2883 = vst.msk [vmem:[%s5815_s3 + $0x28] sm:$0xff] %vm2877_vm0, %v2874_v31  ;;  %v2793_v20 = vadd.f32 %v2792_v3, %v2764_v12  ;;  %v2737_v45 = vadd.f32 %v2736_v61, %v2708_v9 }
 0x25b   :  { %v2811_v42 = vmax.f32 %v5723_v59, %v2793_v20  ;;  %v5825_v59 = vld [vmem:[#allocation2_spill] sm:$0xff] }
 0x25c   :  { %v5826_v15 = vmax.f32 %v5378_v13, %v5825_v59 }
 0x25d   :  { %v2819_v44 = vmax.f32 %v5824_v54, %v2811_v42 }
 0x25e   :  { %v2765_v56 = vpop.f32.mrf.mxu2 }
 0x25f   :  { %v2875_v21 = vadd.f32 %v2862_v27, %v2819_v44  ;;  %v2766_v10 = vadd.f32 %v2765_v56, %v2737_v45  ;;  %v2794_v14 = vpop.f32.mrf.mxu3 }
 0x261   :  { %2884 = vst.msk [vmem:[%s5815_s3 + $0x30] sm:$0xff] %vm2877_vm0, %v2875_v21  ;;  %v2795_v33 = vadd.f32 %v2794_v14, %v2766_v10 }
 0x263   :  { %v2812_v35 = vmax.f32 %v5731_v37, %v2795_v33 }
 0x265   :  { %v2820_v7 = vmax.f32 %v5826_v15, %v2812_v35 }
 0x267   :  { %v2876_v22 = vadd.f32 %v2867_v48, %v2820_v7 }
 0x269   :  { %2885 = vst.msk [vmem:[%s5815_s3 + $0x38] sm:$0xff] %vm2877_vm0, %v2876_v22 }

// kernel: model_forward.7
= control target key start
LH: loop header
LB: loop body
LE: loop exit
PB: predicated region body
PF: predicated region fallthrough
CT: control target
= control target key end

     0   :  { %s1350_s0 = inlined_call_operand.vmem [shape: bf16[2,1024], index: 0, kind: input, shape index: {}]   ;;  %s1351_s1 = inlined_call_operand.vmem [shape: bf16[1024,64], index: 1, kind: input, shape index: {}]   ;;  %s1352_s2 = inlined_call_operand.vmem [shape: f32[1,64], index: 2, kind: input, shape index: {}]   ;;  %s1353_s3 = inlined_call_operand.vmem [shape: bf16[64,10], index: 3, kind: input, shape index: {}]   ;;  %s1354_s4 = inlined_call_operand.vmem [shape: f32[1,10], index: 4, kind: input, shape index: {}]   ;;  %s1355_s5 = inlined_call_operand.hbm [shape: f32[2,10], index: 5, kind: output, shape index: {}]  }
   0x1   :  { %v1013_v0 = vld [vmem:[%s1351_s1 + $0x38] sm:$0xff]  ;;  %v1012_v4 = vld [vmem:[%s1351_s1 + $0x30] sm:$0xff]  ;;  %v1011_v8 = vld [vmem:[%s1351_s1 + $0x28] sm:$0xff] }
   0x2   :  { %v1021_v1 = vld [vmem:[%s1351_s1 + $0x78] sm:$0xff]  ;;  %557 = vmatpush.bf16.msra.mxu0 %v1013_v0  ;;  %v1020_v5 = vld [vmem:[%s1351_s1 + $0x70] sm:$0xff]  ;;  %v1019_v9 = vld [vmem:[%s1351_s1 + $0x68] sm:$0xff] }
   0x3   :  { %v1029_v2 = vld [vmem:[%s1351_s1 + $0xb8] sm:$0xff]  ;;  %570 = vmatpush.bf16.msra.mxu1 %v1021_v1  ;;  %v1028_v6 = vld [vmem:[%s1351_s1 + $0xb0] sm:$0xff]  ;;  %v1027_v10 = vld [vmem:[%s1351_s1 + $0xa8] sm:$0xff] }
   0x4   :  { %v1037_v3 = vld [vmem:[%s1351_s1 + $0xf8] sm:$0xff]  ;;  %583 = vmatpush.bf16.msra.mxu2 %v1029_v2  ;;  %v1036_v7 = vld [vmem:[%s1351_s1 + $0xf0] sm:$0xff]  ;;  %v1035_v11 = vld [vmem:[%s1351_s1 + $0xe8] sm:$0xff] }
   0x5   :  { %596 = vmatpush.bf16.msra.mxu3 %v1037_v3  ;;  %v1010_v12 = vld [vmem:[%s1351_s1 + $0x20] sm:$0xff]  ;;  %v1009_v17 = vld [vmem:[%s1351_s1 + $0x18] sm:$0xff]  ;;  %v1008_v21 = vld [vmem:[%s1351_s1 + $0x10] sm:$0xff] }
   0x6   :  { %558 = vmatpush.bf16.msra.mxu0 %v1012_v4  ;;  %v1018_v13 = vld [vmem:[%s1351_s1 + $0x60] sm:$0xff]  ;;  %v1017_v18 = vld [vmem:[%s1351_s1 + $0x58] sm:$0xff]  ;;  %v1016_v22 = vld [vmem:[%s1351_s1 + $0x50] sm:$0xff] }
   0x7   :  { %571 = vmatpush.bf16.msra.mxu1 %v1020_v5  ;;  %v1026_v14 = vld [vmem:[%s1351_s1 + $0xa0] sm:$0xff]  ;;  %v1025_v19 = vld [vmem:[%s1351_s1 + $0x98] sm:$0xff] }
   0x8   :  { %584 = vmatpush.bf16.msra.mxu2 %v1028_v6  ;;  %v1034_v15 = vld [vmem:[%s1351_s1 + $0xe0] sm:$0xff]  ;;  %v1033_v20 = vld [vmem:[%s1351_s1 + $0xd8] sm:$0xff] }
   0x9   :  { %597 = vmatpush.bf16.msra.mxu3 %v1036_v7  ;;  %v22_v16 = vld [vmem:[%s1350_s0] sm:$0xff] }
   0xa   :  { %559 = vmatpush.bf16.msra.mxu0 %v1011_v8  ;;  %156 = vst [vmem:[#allocation1] ss:$9 sm:$0xff] %v22_v16 }
   0xb   :  { %572 = vmatpush.bf16.msra.mxu1 %v1019_v9 }
   0xc   :  { %585 = vmatpush.bf16.msra.mxu2 %v1027_v10 }
   0xd   :  { %598 = vmatpush.bf16.msra.mxu3 %v1035_v11 }
   0xe   :  { %560 = vmatpush.bf16.msra.mxu0 %v1010_v12 }
   0xf   :  { %573 = vmatpush.bf16.msra.mxu1 %v1018_v13 }
  0x10   :  { %586 = vmatpush.bf16.msra.mxu2 %v1026_v14 }
  0x11   :  { %599 = vmatpush.bf16.msra.mxu3 %v1034_v15 }
  0x12   :  { %561 = vmatpush.bf16.msra.mxu0 %v1009_v17 }
  0x13   :  { %574 = vmatpush.bf16.msra.mxu1 %v1017_v18 }
  0x14   :  { %10 = vsyncpa [#allocation3], 0  ;;  %587 = vmatpush.bf16.msra.mxu2 %v1025_v19  ;;  %v1024_v23 = vld [vmem:[%s1351_s1 + $0x90] sm:$0xff]  ;;  %v1007_v25 = vld [vmem:[%s1351_s1 + $0x8] sm:$0xff]  ;;  %vm698_vm0 = vcmask 523264   ;;  %s1103_s28 = smov [#allocation2]  }
  0x15   :  { %600 = vmatpush.bf16.msra.mxu3 %v1033_v20  ;;  %v1032_v24 = vld [vmem:[%s1351_s1 + $0xd0] sm:$0xff]  ;;  %v1015_v26 = vld [vmem:[%s1351_s1 + $0x48] sm:$0xff]  ;;  %v1006_v29 = vld [vmem:[%s1351_s1] sm:$0xff]  ;;  %s722_s29 = sshll.u32 %s1103_s28, 4  ;;  %s724_s7 = sshll.u32 %s1355_s5, 4  ;;  %vm715_vm1 = vcmask 74752   ;;  %s723_s29 = int_to_ptr.vmem [resolvable:$true] %s722_s29  ;;  %s725_s7 = int_to_ptr.hbm [resolvable:$true] %s724_s7 }
  0x16   :  { %562 = vmatpush.bf16.msra.mxu0 %v1008_v21  ;;  %v1023_v27 = vld [vmem:[%s1351_s1 + $0x88] sm:$0xff]  ;;  %v1014_v30 = vld [vmem:[%s1351_s1 + $0x40] sm:$0xff]  ;;  %v1045_v33 = vld [vmem:[%s1351_s1 + $0x138] sm:$0xff] }
  0x17   :  { %575 = vmatpush.bf16.msra.mxu1 %v1016_v22  ;;  %v1031_v28 = vld [vmem:[%s1351_s1 + $0xc8] sm:$0xff]  ;;  %v1022_v31 = vld [vmem:[%s1351_s1 + $0x80] sm:$0xff]  ;;  %v1053_v34 = vld [vmem:[%s1351_s1 + $0x178] sm:$0xff] }
  0x18   :  { %588 = vmatpush.bf16.msra.mxu2 %v1024_v23  ;;  %v1030_v32 = vld [vmem:[%s1351_s1 + $0xc0] sm:$0xff]  ;;  %v1061_v35 = vld [vmem:[%s1351_s1 + $0x1b8] sm:$0xff]  ;;  %v1044_v37 = vld [vmem:[%s1351_s1 + $0x130] sm:$0xff] }
  0x19   :  { %601 = vmatpush.bf16.msra.mxu3 %v1032_v24  ;;  %v1069_v36 = vld [vmem:[%s1351_s1 + $0x1f8] sm:$0xff]  ;;  %v157_v39 = vld [vmem:[#allocation1] sm:$0xff]  ;;  %v1052_v40 = vld [vmem:[%s1351_s1 + $0x170] sm:$0xff] }
  0x1a   :  { %563 = vmatpush.bf16.msra.mxu0 %v1007_v25  ;;  %v159_v38 = vld [vmem:[#allocation1 + $0x12] sm:$0xff]  ;;  %v160_v41 = vld [vmem:[#allocation1 + $0x1b] sm:$0xff]  ;;  %v158_v42 = vld [vmem:[#allocation1 + $0x9] sm:$0xff] }
  0x1b   :  { %576 = vmatpush.bf16.msra.mxu1 %v1015_v26  ;;  %v1060_v43 = vld [vmem:[%s1351_s1 + $0x1b0] sm:$0xff]  ;;  %v1043_v45 = vld [vmem:[%s1351_s1 + $0x128] sm:$0xff]  ;;  %v1042_v49 = vld [vmem:[%s1351_s1 + $0x120] sm:$0xff] }
  0x1c   :  { %589 = vmatpush.bf16.msra.mxu2 %v1023_v27  ;;  %v1068_v44 = vld [vmem:[%s1351_s1 + $0x1f0] sm:$0xff]  ;;  %v1051_v46 = vld [vmem:[%s1351_s1 + $0x168] sm:$0xff]  ;;  %v1050_v50 = vld [vmem:[%s1351_s1 + $0x160] sm:$0xff] }
  0x1d   :  { %602 = vmatpush.bf16.msra.mxu3 %v1031_v28  ;;  %v1059_v47 = vld [vmem:[%s1351_s1 + $0x1a8] sm:$0xff]  ;;  %v1058_v51 = vld [vmem:[%s1351_s1 + $0x1a0] sm:$0xff]  ;;  %v1041_v53 = vld [vmem:[%s1351_s1 + $0x118] sm:$0xff] }
  0x1e   :  { %564 = vmatpush.bf16.msra.mxu0 %v1006_v29  ;;  %v1067_v48 = vld [vmem:[%s1351_s1 + $0x1e8] sm:$0xff]  ;;  %v1066_v52 = vld [vmem:[%s1351_s1 + $0x1e0] sm:$0xff]  ;;  %v1049_v54 = vld [vmem:[%s1351_s1 + $0x158] sm:$0xff] }
  0x1f   :  { %577 = vmatpush.bf16.msra.mxu1 %v1014_v30  ;;  %v1057_v55 = vld [vmem:[%s1351_s1 + $0x198] sm:$0xff]  ;;  %v1040_v57 = vld [vmem:[%s1351_s1 + $0x110] sm:$0xff]  ;;  %v1039_v61 = vld [vmem:[%s1351_s1 + $0x108] sm:$0xff] }
  0x20   :  { %590 = vmatpush.bf16.msra.mxu2 %v1022_v31  ;;  %v1065_v56 = vld [vmem:[%s1351_s1 + $0x1d8] sm:$0xff]  ;;  %v1048_v58 = vld [vmem:[%s1351_s1 + $0x150] sm:$0xff]  ;;  %v1047_v62 = vld [vmem:[%s1351_s1 + $0x148] sm:$0xff] }
  0x21   :  { %603 = vmatpush.bf16.msra.mxu3 %v1030_v32  ;;  %565 = vmatmul.bf16.vlgmr.msra.gmra.mxu0 %v157_v39  ;;  %v1056_v59 = vld [vmem:[%s1351_s1 + $0x190] sm:$0xff]  ;;  %v1055_v63 = vld [vmem:[%s1351_s1 + $0x188] sm:$0xff]  ;;  %v1038_v1 = vld [vmem:[%s1351_s1 + $0x100] sm:$0xff] }
  0x22   :  { %609 = vmatpush.bf16.msrb.mxu0 %v1045_v33  ;;  %578 = vmatmul.bf16.vlgmr.msra.gmra.mxu1 %v158_v42  ;;  %v1064_v60 = vld [vmem:[%s1351_s1 + $0x1d0] sm:$0xff]  ;;  %v1063_v0 = vld [vmem:[%s1351_s1 + $0x1c8] sm:$0xff]  ;;  %v1046_v2 = vld [vmem:[%s1351_s1 + $0x140] sm:$0xff] }
  0x23   :  { %622 = vmatpush.bf16.msrb.mxu1 %v1053_v34  ;;  %591 = vmatmul.bf16.vlgmr.msra.gmra.mxu2 %v159_v38  ;;  %v1054_v3 = vld [vmem:[%s1351_s1 + $0x180] sm:$0xff]  ;;  %v162_v6 = vld [vmem:[#allocation1 + $0x2d] sm:$0xff]  ;;  %v163_v7 = vld [vmem:[#allocation1 + $0x36] sm:$0xff] }
  0x24   :  { %635 = vmatpush.bf16.msrb.mxu2 %v1061_v35  ;;  %604 = vmatmul.bf16.vlgmr.msra.gmra.mxu3 %v160_v41  ;;  %v1062_v4 = vld [vmem:[%s1351_s1 + $0x1c0] sm:$0xff]  ;;  %v1073_v9 = vld [vmem:[%s1353_s3 + $0x18] sm:$0xff]  ;;  %v1072_v10 = vld [vmem:[%s1353_s3 + $0x10] sm:$0xff] }
  0x25   :  { %648 = vmatpush.bf16.msrb.mxu3 %v1069_v36  ;;  %v161_v5 = vld [vmem:[#allocation1 + $0x24] sm:$0xff]  ;;  %v1075_v19 = vld [vmem:[%s1352_s2] ss:$0 sm:$0xff] }
  0x26   :  { %610 = vmatpush.bf16.msrb.mxu0 %v1044_v37  ;;  %v164_v8 = vld [vmem:[#allocation1 + $0x3f] sm:$0xff]  ;;  %v1071_v12 = vld [vmem:[%s1353_s3 + $0x8] sm:$0xff] }
  0x27   :  { %623 = vmatpush.bf16.msrb.mxu1 %v1052_v40  ;;  %v1070_v15 = vld [vmem:[%s1353_s3] sm:$0xff] }
  0x28   :  { %636 = vmatpush.bf16.msrb.mxu2 %v1060_v43  ;;  %v1076_v39 = vld [vmem:[%s1354_s4] ss:$0 sm:$0xff] }
  0x29   :  { %649 = vmatpush.bf16.msrb.mxu3 %v1068_v44 }
  0x2a   :  { %611 = vmatpush.bf16.msrb.mxu0 %v1043_v45 }
  0x2b   :  { %624 = vmatpush.bf16.msrb.mxu1 %v1051_v46 }
  0x2c   :  { %637 = vmatpush.bf16.msrb.mxu2 %v1059_v47 }
  0x2d   :  { %650 = vmatpush.bf16.msrb.mxu3 %v1067_v48 }
  0x2e   :  { %612 = vmatpush.bf16.msrb.mxu0 %v1042_v49 }
  0x2f   :  { %625 = vmatpush.bf16.msrb.mxu1 %v1050_v50 }
  0x30   :  { %638 = vmatpush.bf16.msrb.mxu2 %v1058_v51 }
  0x31   :  { %651 = vmatpush.bf16.msrb.mxu3 %v1066_v52 }
  0x32   :  { %613 = vmatpush.bf16.msrb.mxu0 %v1041_v53 }
  0x33   :  { %626 = vmatpush.bf16.msrb.mxu1 %v1049_v54 }
  0x34   :  { %639 = vmatpush.bf16.msrb.mxu2 %v1057_v55 }
  0x35   :  { %652 = vmatpush.bf16.msrb.mxu3 %v1065_v56 }
  0x36   :  { %614 = vmatpush.bf16.msrb.mxu0 %v1040_v57 }
  0x37   :  { %627 = vmatpush.bf16.msrb.mxu1 %v1048_v58 }
  0x38   :  { %640 = vmatpush.bf16.msrb.mxu2 %v1056_v59 }
  0x39   :  { %653 = vmatpush.bf16.msrb.mxu3 %v1064_v60 }
  0x3a   :  { %615 = vmatpush.bf16.msrb.mxu0 %v1039_v61 }
  0x3b   :  { %628 = vmatpush.bf16.msrb.mxu1 %v1047_v62 }
  0x3c   :  { %641 = vmatpush.bf16.msrb.mxu2 %v1055_v63 }
  0x3d   :  { %654 = vmatpush.bf16.msrb.mxu3 %v1063_v0 }
  0x3e   :  { %616 = vmatpush.bf16.msrb.mxu0 %v1038_v1 }
  0x3f   :  { %629 = vmatpush.bf16.msrb.mxu1 %v1046_v2 }
  0x40   :  { %642 = vmatpush.bf16.msrb.mxu2 %v1054_v3 }
  0x41   :  { %655 = vmatpush.bf16.msrb.mxu3 %v1062_v4  ;;  %617 = vmatmul.bf16.vlgmr.msrb.gmra.mxu0 %v161_v5 }
  0x42   :  { %630 = vmatmul.bf16.vlgmr.msrb.gmra.mxu1 %v162_v6  ;;  %706 = vmatpush.bf16.msra.mxu0 %v1073_v9 }
  0x43   :  { %643 = vmatmul.bf16.vlgmr.msrb.gmra.mxu2 %v163_v7 }
  0x44   :  { %656 = vmatmul.bf16.vlgmr.msrb.gmra.mxu3 %v164_v8 }
  0x46   :  { %707 = vmatpush.bf16.msra.mxu0 %v1072_v10 }
  0x4a   :  { %708 = vmatpush.bf16.msra.mxu0 %v1071_v12 }
  0x4e   :  { %709 = vmatpush.bf16.msra.mxu0 %v1070_v15 }
  0x9e   :  { %v566_v11 = vpop.f32.mrf.mxu0 }
  0x9f   :  { %v579_v13 = vpop.f32.mrf.mxu1  ;;  %v567_v22 = vadd.f32 %v1075_v19, %v566_v11 }
  0xa1   :  { %v580_v23 = vadd.f32 %v579_v13, %v567_v22 }
  0xa6   :  { %v592_v14 = vpop.f32.mrf.mxu2  ;;  %v568_v17 = vpop.f32.mrf.mxu0 }
  0xa7   :  { %v605_v16 = vpop.f32.mrf.mxu3  ;;  %v581_v18 = vpop.f32.mrf.mxu1  ;;  %v593_v24 = vadd.f32 %v592_v14, %v580_v23 }
  0xa9   :  { %v606_v25 = vadd.f32 %v605_v16, %v593_v24 }
  0xae   :  { %v594_v20 = vpop.f32.mrf.mxu2 }
  0xaf   :  { %v607_v21 = vpop.f32.mrf.mxu3 }
  0xbe   :  { %v618_v26 = vpop.f32.mrf.mxu0 }
  0xbf   :  { %v631_v27 = vpop.f32.mrf.mxu1  ;;  %v619_v28 = vadd.f32 %v618_v26, %v606_v25 }
  0xc1   :  { %v632_v29 = vadd.f32 %v631_v27, %v619_v28 }
  0xc6   :  { %v644_v30 = vpop.f32.mrf.mxu2  ;;  %v620_v33 = vpop.f32.mrf.mxu0 }
  0xc7   :  { %v657_v31 = vpop.f32.mrf.mxu3  ;;  %v645_v32 = vadd.f32 %v644_v30, %v632_v29  ;;  %v633_v34 = vpop.f32.mrf.mxu1 }
  0xc9   :  { %v658_v35 = vadd.f32 %v657_v31, %v645_v32 }
  0xcb   :  { %v661_v36 = vpack.c.bf16 %v658_v35, %v658_v35 }
  0xcd   :  { %1005 = vmatmul.msk.bf16.vlgmr.msra.gmra.mxu0 %vm698_vm0, %v661_v36 }
  0xce   :  { %v646_v37 = vpop.f32.mrf.mxu2 }
  0xcf   :  { %v659_v38 = vpop.f32.mrf.mxu3 }
 0x14a   :  { %v711_v40 = vpop.f32.mrf.mxu0 }
 0x14b   :  { %v712_v41 = vadd.f32 %v1076_v39, %v711_v40 }
 0x14d   :  { %716 = vst.msk [vmem:[#allocation2] sm:$0x3] %vm715_vm1, %v712_v41 }
 0x14e   :  { %727 = dma.vmem_to_hbm [thread:$0]  %s723_s29, 32, %s725_s7, [#allocation3]  }
 0x152   :  { %v713_v42 = vpop.f32.mrf.mxu0 }
 0x153   :  { %1101 = dma.done.wait [#allocation3], 32  }
 0x154   :  { %1102 = vsyncadd [#allocation3], 4294967264 }
 0x155   :  { %732 = vsyncpa [#allocation3], 1 }

</bundles_post_ra>
